<compile_context>
chip_gen: v5e
topology: v5e:2x2
jax: 0.10.0
libtpu: 0.0.40
codegen_flags: <defaults>
</compile_context>

<pallas_src>
import functools

import jax
import jax.numpy as jnp
from jax.experimental import pallas as pl
from jax.experimental.pallas import tpu as pltpu


def _round_up(n: int, m: int) -> int:
    return (n + m - 1) // m * m


def encoder_kernel(x_ref, w_in_ref, b_in_ref, w_head_ref, b_head_ref, eps_ref,
                   z_ref, mean_ref, logvar_ref, *, l_pad):
    # (TB, D)bf16 @ (D, H_pad)bf16 -> fp32 accumulate on MXU
    h = jnp.dot(x_ref[...], w_in_ref[...], preferred_element_type=jnp.float32)
    h = jnp.maximum(h + b_in_ref[...], 0.0)                     # fp32 elementwise

    # fused mean / log_var heads: (TB, H_pad)bf16 @ (H_pad, 2*L_pad)bf16 -> fp32
    heads = jnp.dot(h.astype(jnp.bfloat16), w_head_ref[...],
                    preferred_element_type=jnp.float32) + b_head_ref[...]
    mean = heads[:, :l_pad]
    log_var = heads[:, l_pad:]

    std = jnp.exp(0.5 * log_var)                                # fp32 EUP
    z = mean + std * eps_ref[...]

    z_ref[...] = z
    mean_ref[...] = mean
    logvar_ref[...] = log_var


def encoder_forward(x, params, eps, *, block_b=128):
    """x: (B, D) fp32, eps: (B, latent) fp32, params in PyTorch-equivalent shapes."""
    B, D = x.shape
    hidden_dim = params["w_in"].shape[1]
    latent_dim = params["w_mean"].shape[1]
    h_pad = _round_up(hidden_dim, 128)    # 400 -> 512
    l_pad = _round_up(latent_dim, 128)    # 20  -> 128

    tb = min(block_b, B)
    assert B % tb == 0, "batch must be a multiple of the batch tile"

    # ---- pack parameters: pad hidden, fuse heads, cast matmul weights to bf16 ----
    w_in = (jnp.zeros((D, h_pad), jnp.float32)
            .at[:, :hidden_dim].set(params["w_in"]).astype(jnp.bfloat16))
    b_in = jnp.zeros((1, h_pad), jnp.float32).at[:, :hidden_dim].set(params["b_in"])

    w_head = jnp.zeros((h_pad, 2 * l_pad), jnp.float32)
    w_head = w_head.at[:hidden_dim, :latent_dim].set(params["w_mean"])
    w_head = w_head.at[:hidden_dim, l_pad:l_pad + latent_dim].set(params["w_var"])
    w_head = w_head.astype(jnp.bfloat16)

    b_head = jnp.zeros((1, 2 * l_pad), jnp.float32)
    b_head = b_head.at[:, :latent_dim].set(params["b_mean"])
    b_head = b_head.at[:, l_pad:l_pad + latent_dim].set(params["b_var"])

    x_bf16 = x.astype(jnp.bfloat16)
    eps_pad = jnp.zeros((B, l_pad), jnp.float32).at[:, :latent_dim].set(eps)

    kernel = functools.partial(encoder_kernel, l_pad=l_pad)

    flops = 2 * B * D * h_pad + 2 * B * h_pad * (2 * l_pad)
    bytes_accessed = (x_bf16.size * 2 + w_in.size * 2 + w_head.size * 2
                      + b_in.size * 4 + b_head.size * 4
                      + eps_pad.size * 4 + 3 * B * l_pad * 4)
    cost = pl.CostEstimate(flops=flops, transcendentals=B * l_pad,
                           bytes_accessed=bytes_accessed)

    z_p, mean_p, logvar_p = pl.pallas_call(
        kernel,
        out_shape=(
            jax.ShapeDtypeStruct((B, l_pad), jnp.float32),   # z
            jax.ShapeDtypeStruct((B, l_pad), jnp.float32),   # mean
            jax.ShapeDtypeStruct((B, l_pad), jnp.float32),   # log_var
        ),
        grid_spec=pltpu.PrefetchScalarGridSpec(
            num_scalar_prefetch=0,
            grid=(B // tb,),
            in_specs=[
                pl.BlockSpec((tb, D), lambda i: (i, 0)),             # x tile
                pl.BlockSpec((D, h_pad), lambda i: (0, 0)),          # w_in (resident)
                pl.BlockSpec((1, h_pad), lambda i: (0, 0)),          # b_in (resident)
                pl.BlockSpec((h_pad, 2 * l_pad), lambda i: (0, 0)),  # fused head W
                pl.BlockSpec((1, 2 * l_pad), lambda i: (0, 0)),      # fused head b
                pl.BlockSpec((tb, l_pad), lambda i: (i, 0)),         # eps tile
            ],
            out_specs=[
                pl.BlockSpec((tb, l_pad), lambda i: (i, 0)),
                pl.BlockSpec((tb, l_pad), lambda i: (i, 0)),
                pl.BlockSpec((tb, l_pad), lambda i: (i, 0)),
            ],
        ),
        compiler_params=pltpu.CompilerParams(
            dimension_semantics=("parallel",),
            vmem_limit_bytes=64 * 1024 * 1024,
        ),
        cost_estimate=cost,
    )(x_bf16, w_in, b_in, w_head, b_head, eps_pad)

    # strip lane padding back to the true latent width
    return (z_p[:, :latent_dim], mean_p[:, :latent_dim], logvar_p[:, :latent_dim])


def init_params(key, input_dim, hidden_dim, latent_dim):
    """Deterministic synthetic init (Linear: W stored (in, out), b (1, out))."""
    k1, k2, k3, k4, k5, k6 = jax.random.split(key, 6)
    s_in = 1.0 / jnp.sqrt(input_dim)
    s_h = 1.0 / jnp.sqrt(hidden_dim)
    return {
        "w_in":   jax.random.uniform(k1, (input_dim, hidden_dim), jnp.float32, -s_in, s_in),
        "b_in":   jax.random.uniform(k2, (1, hidden_dim),         jnp.float32, -s_in, s_in),
        "w_mean": jax.random.uniform(k3, (hidden_dim, latent_dim), jnp.float32, -s_h, s_h),
        "b_mean": jax.random.uniform(k4, (1, latent_dim),          jnp.float32, -s_h, s_h),
        "w_var":  jax.random.uniform(k5, (hidden_dim, latent_dim), jnp.float32, -s_h, s_h),
        "b_var":  jax.random.uniform(k6, (1, latent_dim),          jnp.float32, -s_h, s_h),
    }


def encoder_reference(x, params, eps):
    """Pure-JAX reference using the same bf16-operand / fp32-accumulate recipe."""
    bf = lambda a: a.astype(jnp.bfloat16)
    h = jnp.maximum(jnp.dot(bf(x), bf(params["w_in"]),
                            preferred_element_type=jnp.float32) + params["b_in"], 0.0)
    mean = jnp.dot(bf(h), bf(params["w_mean"]),
                   preferred_element_type=jnp.float32) + params["b_mean"]
    log_var = jnp.dot(bf(h), bf(params["w_var"]),
                      preferred_element_type=jnp.float32) + params["b_var"]
    std = jnp.exp(0.5 * log_var)
    return mean + std * eps, mean, log_var


if __name__ == "__main__":
    # MNIST-VAE shapes: 28*28 input, hidden=400, latent=20; batch chosen as two
    # 128-row tiles so the batch grid / weight residency actually exercises.
    batch, input_dim, hidden_dim, latent_dim = 256, 784, 400, 20

    key = jax.random.PRNGKey(0)
    k_x, k_eps, k_params = jax.random.split(key, 3)

    x = jax.random.normal(k_x, (batch, input_dim), jnp.float32)
    eps = jax.random.normal(k_eps, (batch, latent_dim), jnp.float32)  # torch.randn_like(std)
    params = init_params(k_params, input_dim, hidden_dim, latent_dim)

    z, mean, log_var = encoder_forward(x, params, eps)
    jax.block_until_ready((z, mean, log_var))

    z_ref, mean_ref, logvar_ref = encoder_reference(x, params, eps)
    assert jnp.allclose(z, z_ref, atol=1e-3, rtol=1e-3)
    assert jnp.allclose(mean, mean_ref, atol=1e-3, rtol=1e-3)
    assert jnp.allclose(log_var, logvar_ref, atol=1e-3, rtol=1e-3)

    print("KERNEL_OK")
</pallas_src>

<mosaic_0001>
module attributes {stable_mosaic.version = 11 : i64} {
  func.func @encoder_kernel(%arg0: i32, %arg1: memref<128x784xbf16, #tpu.memory_space<vmem>>, %arg2: memref<784x512xbf16, #tpu.memory_space<vmem>>, %arg3: memref<1x512xf32, #tpu.memory_space<vmem>>, %arg4: memref<512x256xbf16, #tpu.memory_space<vmem>>, %arg5: memref<1x256xf32, #tpu.memory_space<vmem>>, %arg6: memref<128x128xf32, #tpu.memory_space<vmem>>, %arg7: memref<128x128xf32, #tpu.memory_space<vmem>>, %arg8: memref<128x128xf32, #tpu.memory_space<vmem>>, %arg9: memref<128x128xf32, #tpu.memory_space<vmem>>) attributes {dimension_semantics = [#tpu.dimension_semantics<parallel>], iteration_bounds = array<i64: 2>, scalar_prefetch = 0 : i64, scratch_operands = 0 : i64, tpu.core_type = #tpu.core_type<tc>, window_params = [{transform_indices = @transform_0, window_bounds = array<i64: 128, 784>}, {pipeline_mode = #tpu.pipeline_mode<synchronous>, transform_indices = @transform_1, window_bounds = array<i64: 784, 512>}, {pipeline_mode = #tpu.pipeline_mode<synchronous>, transform_indices = @transform_2, window_bounds = array<i64: 1, 512>}, {pipeline_mode = #tpu.pipeline_mode<synchronous>, transform_indices = @transform_3, window_bounds = array<i64: 512, 256>}, {pipeline_mode = #tpu.pipeline_mode<synchronous>, transform_indices = @transform_4, window_bounds = array<i64: 1, 256>}, {transform_indices = @transform_5, window_bounds = array<i64: 128, 128>}, {transform_indices = @transform_6, window_bounds = array<i64: 128, 128>}, {transform_indices = @transform_7, window_bounds = array<i64: 128, 128>}, {transform_indices = @transform_8, window_bounds = array<i64: 128, 128>}]} {
    %c0 = arith.constant 0 : index
    %c0_0 = arith.constant 0 : index
    %0 = vector.load %arg1[%c0, %c0_0] : memref<128x784xbf16, #tpu.memory_space<vmem>>, vector<128x784xbf16>
    %c0_1 = arith.constant 0 : index
    %c0_2 = arith.constant 0 : index
    %1 = vector.load %arg2[%c0_1, %c0_2] : memref<784x512xbf16, #tpu.memory_space<vmem>>, vector<784x512xbf16>
    %cst = arith.constant dense<0.000000e+00> : vector<128x512xf32>
    %2 = tpu.matmul %0, %1, %cst {dimension_numbers = #tpu.dot_dimension_numbers<[1], [0], [0], [1], [0, 0, 1, 1], [], []>} : vector<128x784xbf16>, vector<784x512xbf16>, vector<128x512xf32> -> vector<128x512xf32>
    %c0_3 = arith.constant 0 : index
    %c0_4 = arith.constant 0 : index
    %3 = vector.load %arg3[%c0_3, %c0_4] : memref<1x512xf32, #tpu.memory_space<vmem>>, vector<1x512xf32>
    %4 = vector.broadcast %3 : vector<1x512xf32> to vector<128x512xf32>
    %5 = arith.addf %2, %4 : vector<128x512xf32>
    %cst_5 = arith.constant 0.000000e+00 : f32
    %6 = vector.broadcast %cst_5 : f32 to vector<128x512xf32>
    %7 = arith.maximumf %5, %6 : vector<128x512xf32>
    %8 = arith.truncf %7 : vector<128x512xf32> to vector<128x512xbf16>
    %c0_6 = arith.constant 0 : index
    %c0_7 = arith.constant 0 : index
    %9 = vector.load %arg4[%c0_6, %c0_7] : memref<512x256xbf16, #tpu.memory_space<vmem>>, vector<512x256xbf16>
    %cst_8 = arith.constant dense<0.000000e+00> : vector<128x256xf32>
    %10 = tpu.matmul %8, %9, %cst_8 {dimension_numbers = #tpu.dot_dimension_numbers<[1], [0], [0], [1], [0, 0, 1, 1], [], []>} : vector<128x512xbf16>, vector<512x256xbf16>, vector<128x256xf32> -> vector<128x256xf32>
    %c0_9 = arith.constant 0 : index
    %c0_10 = arith.constant 0 : index
    %11 = vector.load %arg5[%c0_9, %c0_10] : memref<1x256xf32, #tpu.memory_space<vmem>>, vector<1x256xf32>
    %12 = vector.broadcast %11 : vector<1x256xf32> to vector<128x256xf32>
    %13 = arith.addf %10, %12 : vector<128x256xf32>
    %14 = vector.extract_strided_slice %13 {offsets = [0, 0], sizes = [128, 128], strides = [1, 1]} : vector<128x256xf32> to vector<128x128xf32>
    %15 = vector.extract_strided_slice %13 {offsets = [0, 128], sizes = [128, 128], strides = [1, 1]} : vector<128x256xf32> to vector<128x128xf32>
    %cst_11 = arith.constant 5.000000e-01 : f32
    %16 = vector.broadcast %cst_11 : f32 to vector<128x128xf32>
    %17 = arith.mulf %16, %15 : vector<128x128xf32>
    %18 = math.exp %17 : vector<128x128xf32>
    %c0_12 = arith.constant 0 : index
    %c0_13 = arith.constant 0 : index
    %19 = vector.load %arg6[%c0_12, %c0_13] : memref<128x128xf32, #tpu.memory_space<vmem>>, vector<128x128xf32>
    %20 = arith.mulf %18, %19 : vector<128x128xf32>
    %21 = arith.addf %14, %20 : vector<128x128xf32>
    %c0_14 = arith.constant 0 : index
    %c0_15 = arith.constant 0 : index
    %22 = vector.load %arg7[%c0_14, %c0_15] : memref<128x128xf32, #tpu.memory_space<vmem>>, vector<128x128xf32>
    tpu.vector_store %arg7[%c0_14, %c0_15], %21 {strides = array<i32>} : memref<128x128xf32, #tpu.memory_space<vmem>>, vector<128x128xf32>,
    %c0_16 = arith.constant 0 : index
    %c0_17 = arith.constant 0 : index
    %23 = vector.load %arg8[%c0_16, %c0_17] : memref<128x128xf32, #tpu.memory_space<vmem>>, vector<128x128xf32>
    tpu.vector_store %arg8[%c0_16, %c0_17], %14 {strides = array<i32>} : memref<128x128xf32, #tpu.memory_space<vmem>>, vector<128x128xf32>,
    %c0_18 = arith.constant 0 : index
    %c0_19 = arith.constant 0 : index
    %24 = vector.load %arg9[%c0_18, %c0_19] : memref<128x128xf32, #tpu.memory_space<vmem>>, vector<128x128xf32>
    tpu.vector_store %arg9[%c0_18, %c0_19], %15 {strides = array<i32>} : memref<128x128xf32, #tpu.memory_space<vmem>>, vector<128x128xf32>,
    return
  }
  func.func @transform_0(%arg0: i32) -> (i32, i32) {
    %c0_i32 = arith.constant 0 : i32
    %c0_i32_0 = arith.constant 0 : i32
    return %arg0, %c0_i32 : i32, i32
  }
  func.func @transform_1(%arg0: i32) -> (i32, i32) {
    %c0_i32 = arith.constant 0 : i32
    %c0_i32_0 = arith.constant 0 : i32
    %c0_i32_1 = arith.constant 0 : i32
    return %c0_i32, %c0_i32_0 : i32, i32
  }
  func.func @transform_2(%arg0: i32) -> (i32, i32) {
    %c0_i32 = arith.constant 0 : i32
    %c0_i32_0 = arith.constant 0 : i32
    %c0_i32_1 = arith.constant 0 : i32
    return %c0_i32, %c0_i32_0 : i32, i32
  }
  func.func @transform_3(%arg0: i32) -> (i32, i32) {
    %c0_i32 = arith.constant 0 : i32
    %c0_i32_0 = arith.constant 0 : i32
    %c0_i32_1 = arith.constant 0 : i32
    return %c0_i32, %c0_i32_0 : i32, i32
  }
  func.func @transform_4(%arg0: i32) -> (i32, i32) {
    %c0_i32 = arith.constant 0 : i32
    %c0_i32_0 = arith.constant 0 : i32
    %c0_i32_1 = arith.constant 0 : i32
    return %c0_i32, %c0_i32_0 : i32, i32
  }
  func.func @transform_5(%arg0: i32) -> (i32, i32) {
    %c0_i32 = arith.constant 0 : i32
    %c0_i32_0 = arith.constant 0 : i32
    return %arg0, %c0_i32 : i32, i32
  }
  func.func @transform_6(%arg0: i32) -> (i32, i32) {
    %c0_i32 = arith.constant 0 : i32
    %c0_i32_0 = arith.constant 0 : i32
    return %arg0, %c0_i32 : i32, i32
  }
  func.func @transform_7(%arg0: i32) -> (i32, i32) {
    %c0_i32 = arith.constant 0 : i32
    %c0_i32_0 = arith.constant 0 : i32
    return %arg0, %c0_i32 : i32, i32
  }
  func.func @transform_8(%arg0: i32) -> (i32, i32) {
    %c0_i32 = arith.constant 0 : i32
    %c0_i32_0 = arith.constant 0 : i32
    return %arg0, %c0_i32 : i32, i32
  }
}

</mosaic_0001>

<bundles_post_ra>
// kernel: tpu_custom_call.1
= control target key start
LH: loop header
LB: loop body
LE: loop exit
PB: predicated region body
PF: predicated region fallthrough
CT: control target
= control target key end

     0   :  { %s9128_s0 = inlined_call_operand.vmem [shape: bf16[256,784], index: 0, kind: input, shape index: {}]   ;;  %s9129_s1 = inlined_call_operand.vmem [shape: bf16[784,512], index: 1, kind: input, shape index: {}]   ;;  %s9130_s2 = inlined_call_operand.vmem [shape: f32[1,512], index: 2, kind: input, shape index: {}]   ;;  %s9131_s3 = inlined_call_operand.hbm [shape: bf16[512,256], index: 3, kind: input, shape index: {}]   ;;  %s9132_s4 = inlined_call_operand.vmem [shape: f32[1,256], index: 4, kind: input, shape index: {}]   ;;  %s9133_s5 = inlined_call_operand.hbm [shape: f32[256,128], index: 5, kind: input, shape index: {}]   ;;  %s9134_s6 = inlined_call_operand.hbm [shape: f32[256,128], index: 6, kind: output, shape index: {0}]   ;;  %s9135_s7 = inlined_call_operand.hbm [shape: f32[256,128], index: 7, kind: output, shape index: {1}]   ;;  %s9136_s8 = inlined_call_operand.hbm [shape: f32[256,128], index: 8, kind: output, shape index: {2}]  }
   0x1   :  { %9225 = sst [smem:[#allocation60_spill]] %s9131_s3 }
   0x2   :  { %9226 = sst [smem:[#allocation61_spill]] %s9133_s5 }
   0x3   :  { %14 = vsyncpa [#allocation3], 0 }
   0x4   :  { %15 = vsyncpa [#allocation6], 0 }
   0x5   :  { %17 = vsyncpa [#allocation6 + $0x1], 0 }
   0x6   :  { %18 = vsyncpa [#allocation4], 0 }
   0x7   :  { %20 = vsyncpa [#allocation4 + $0x1], 0 }
   0x8   :  { %21 = vsyncpa [#allocation9], 0 }
   0x9   :  { %23 = vsyncpa [#allocation9 + $0x1], 0  ;;  %s6550_s27 = smov 0   ;;  %s6552_s28 = smov 0  }
   0xa   :  { %s6554_s29 = smov 0   ;;  %s6556_s30 = smov 0  }
   0xb LB: > { %s6571_s9 = sadd.s32 4294967295, %s6498_s30   ;;  %s9137_s10 = sadd.s32 4294967294, %s6498_s30   ;;  %s6498_s30 = sphi %s6556_s30, %s9369_s30   ;;  %s6494_s29 = sphi %s6554_s29, %s9368_s29   ;;  %s6490_s28 = sphi %s6552_s28, %s9367_s28   ;;  %s6486_s27 = sphi %s6550_s27, %s9366_s27  }
   0xc   : > { %p159_p0 = scmp.ne.s32.totalorder %s6490_s28, %s6486_s27  ;;  %p160_p1 = scmp.eq.s32.totalorder %s6571_s9, 0 }
   0xd   : > { %p183_p2 = scmp.eq.s32.totalorder %s6571_s9, 1  ;;  %p189_p3 = scmp.eq.s32.totalorder %s9137_s10, 1 }
   0xe   : > { %p6582_p4 = por %p160_p1, %p159_p0  ;;  %p4561_p5 = scmp.ge.s32.totalorder %s6498_s30, 1 }
   0xf   : > { %p6587_p6 = por %p189_p3, %p159_p0  ;;  %p248_p7 = scmp.lt.s32.totalorder %s6498_s30, 3 }
  0x10   : > { %s9229_s3 = sld [smem:[#allocation60_spill]]  ;;  %s6500_s17 = smov [#allocation2]  }
  0x11   : > { %p6595_p8 = pnand %p4561_p5, %p248_p7  ;;  %s267_s18 = sshll.u32 %s6500_s17, 4  ;;  %s268_s18 = int_to_ptr.vmem [resolvable:$true] %s267_s18 }
  0x12   : > { %s6605_s19 = sadd.s32 1, %s6498_s30   ;;  %s9138_s20 = smov 128  }
  0x13   : > { %p6215_p9 = pneg %p6595_p8  ;;  %s9139_s21 = smov 8  }
  0x14   : > { %s143_s22 = ssub.s32 %s6498_s30, %s6605_s19  ;;  %s146_s23 = sadd.s32 1, %s6494_s29 }
  0x15   : > { %p6216_p10 = pnand %p6215_p9, %p160_p1  ;;  %p144_p12 = scmp.eq.s32.totalorder %s143_s22, 0 }
  0x16   : > { %s265_s15 = sshll.u32 %s9229_s3, 4  ;;  %p153_p13 = scmp.ne.s32.totalorder %s6494_s29, %s6490_s28  ;;  %s266_s15 = int_to_ptr.hbm [resolvable:$true] %s265_s15 }
  0x17   : > { %6218 = dma.hbm_to_vmem [thread:$0]  (!%p6216_p10), %s266_s15, 8192, %s268_s18, [#allocation3], %s9138_s20, %s9138_s20, %s9139_s21  }
  0x18   : > { %p154_p0 = scmp.eq.s32.totalorder %s6498_s30, 0  ;;  %p6621_p3 = por %p183_p2, %p153_p13 }
  0x19   : > { %s6617_s24 = scalar_select %p144_p12, %s6494_s29, %s146_s23  }
  0x1a   : > { %p6234_p5 = scmp.lt.s32.totalorder %s6498_s30, 2  ;;  %s294_s26 = sand.u32 1, %s6494_s29  }
  0x1b   : > { %9231 = sst [smem:[#allocation15_spill]] %s6617_s24  ;;  %s5882_s13 = sshll.u32 %s6498_s30, 7 }
  0x1c   : > { %p155_p7 = por %p154_p0, %p153_p13  ;;  %s4564_s14 = sshll.u32 %s294_s26, 7 }
  0x1d   : > { %s9233_s5 = sld [smem:[#allocation61_spill]]  ;;  %s298_s22 = scalar_lea.vmem [#allocation5], %s4564_s14 }
  0x1e   : > { %s306_s20 = sshll.u32 %s298_s22, 4  ;;  %p6631_p9 = pnand %p6234_p5, %p155_p7  ;;  %s307_s20 = int_to_ptr.vmem [resolvable:$true] %s306_s20 }
  0x1f   : > { %s295_s21 = scalar_lea.sflag [#allocation6], %s294_s26 }
  0x20   : > { %p6342_p10 = pneg %p6631_p9 }
  0x23   : > { %s303_s15 = scalar_lea.hbm %s9233_s5, %s5882_s13  ;;  %s6345_s14 = scalar_lea.hbm %s9233_s5, 256 }
  0x24   : > { %s304_s18 = sshll.u32 %s303_s15, 4  ;;  %s305_s18 = int_to_ptr.hbm [resolvable:$true] %s304_s18 }
  0x25   : > { %s6338_s3 = sshra.s32 %s305_s18, 4  ;;  %s6339_s3 = int_to_ptr.hbm [resolvable:$true] %s6338_s3 }
  0x26   : > { %s6340_s24 = scalar_lea.hbm %s6339_s3, 128  ;;  %p6346_p0 = scmp.lt.s32.totalorder %s6339_s3, %s9233_s5 }
  0x27   : > { %p6341_p2 = scmp.ne.s32.totalorder %s6339_s3, %s6340_s24  ;;  %p6347_p5 = scmp.lt.s32.totalorder %s6345_s14, %s6340_s24 }
  0x29   : > { %p6343_p12 = pnand %p6342_p10, %p6341_p2  ;;  %p6348_p7 = por %p6347_p5, %p6346_p0 }
  0x2b   : > { %p6344_p13 = pneg %p6343_p12 }
  0x2d   : > { %p6349_p11 = pnand %p6348_p7, %p6344_p13 }
  0x2f   : > { %6352 = shalt.err (!%p6349_p11)
}
  0x30   : > { %s9235_s26 = smov 8   ;;  %s9236_s22 = smov 128  }
  0x31   : > { %6222 = dma.hbm_to_vmem [thread:$0]  (!%p6631_p9), %s305_s18, 2048, %s307_s20, %s295_s21, %s9236_s22, %s9236_s22, %s9235_s26  }
  0x32   : > { %318 = sbr.rel (%p6595_p8) target bundleno = 1413 (0x585), region = 44 }
  0x37   : > { %6469 = dma.done.wait (%p160_p1), [#allocation3], 8192  }
  0x38   : > { %6471 = vsyncadd (%p160_p1), [#allocation3], 4294959104  ;;  %s6655_s3 = sand.u32 1, %s6490_s28  }
  0x39   : > { %s6658_s24 = sshll.u32 %s6655_s3, 7  ;;  %s326_s23 = scalar_lea.sflag [#allocation6], %s6655_s3 }
  0x3a   : > { %s6662_s20 = scalar_lea.vmem [#allocation5], %s6658_s24 }
  0x3b   : > { %6473 = dma.done.wait (%p6582_p4), %s326_s23, 2048  }
  0x3c   : > { %6475 = vsyncadd (%p6582_p4), %s326_s23, 4294965248  ;;  %s4573_s16 = sshll.u32 %s6571_s9, 4  ;;  %v4913_v0 = vld [vmem:[%s9129_s1 + $0xe0] sm:$0xf]  ;;  %v5969_v1 = vld [vmem:[%s9129_s1 + $0xec] sm:$0xf0] }
  0x3d   : > { %v5041_v2 = vld [vmem:[%s9129_s1 + $0x1e0] sm:$0xf]  ;;  %v4914_v3 = vor.u32 %v5969_v1, %v4913_v0  ;;  %v6001_v4 = vld [vmem:[%s9129_s1 + $0x1ec] sm:$0xf0]  ;;  %p6767_p1 = scmp.lt.s32.totalorder %s4573_s16, 31  ;;  %vm1921_vm0 = vcmask 130048  }
  0x3e   : > { %v5169_v5 = vld [vmem:[%s9129_s1 + $0x2e0] sm:$0xf]  ;;  %v6033_v6 = vld [vmem:[%s9129_s1 + $0x2ec] sm:$0xf0]  ;;  %v5042_v7 = vor.u32 %v6001_v4, %v5041_v2  ;;  %s8844_s17 = scalar_lea.vmem [#allocation8], %s6658_s24  ;;  %s8961_s15 = sshll.u32 %s6571_s9, 7 }
  0x3f   : > { %v5170_v8 = vor.u32 %v6033_v6, %v5169_v5  ;;  %v5297_v9 = vld [vmem:[%s9129_s1 + $0x3e0] sm:$0xf]  ;;  %v6065_v10 = vld [vmem:[%s9129_s1 + $0x3ec] sm:$0xf0]  ;;  %1946 = vmatpush.bf16.msra.mxu0 %v4914_v3  ;;  %s9371_s16 = smov (!%p6767_p1, %s4573_s16), 31  ;;  %s4379_s22 = scalar_lea.hbm %s9135_s7, %s8961_s15 }
  0x40   : > { %v4897_v11 = vld [vmem:[%s9129_s1 + $0xc0] sm:$0xf]  ;;  %v5298_v12 = vor.u32 %v6065_v10, %v5297_v9  ;;  %v5965_v13 = vld [vmem:[%s9129_s1 + $0xcc] sm:$0xf0]  ;;  %1995 = vmatpush.bf16.msra.mxu1 %v5042_v7  ;;  %s6202_s21 = smul.u32 28, %s9371_s16  ;;  %s8955_s16 = scalar_lea.vmem [#allocation10], %s6658_s24 }
  0x41   : > { %v5025_v14 = vld [vmem:[%s9129_s1 + $0x1c0] sm:$0xf]  ;;  %v5997_v15 = vld [vmem:[%s9129_s1 + $0x1cc] sm:$0xf0]  ;;  %2044 = vmatpush.bf16.msra.mxu2 %v5170_v8  ;;  %v4898_v16 = vor.u32 %v5965_v13, %v4897_v11  ;;  %s4345_s18 = sand.u32 1, %s6571_s9   ;;  %s4380_s5 = sshll.u32 %s8844_s17, 4  ;;  %s4381_s5 = int_to_ptr.vmem [resolvable:$true] %s4380_s5 }
  0x42   : > { %v5026_v17 = vor.u32 %v5997_v15, %v5025_v14  ;;  %v5153_v18 = vld [vmem:[%s9129_s1 + $0x2c0] sm:$0xf]  ;;  %v6029_v19 = vld [vmem:[%s9129_s1 + $0x2cc] sm:$0xf0]  ;;  %2093 = vmatpush.bf16.msra.mxu3 %v5298_v12  ;;  %s6856_s26 = scalar_lea.vmem %s9128_s0, %s6202_s21  ;;  %s4382_s10 = sshll.u32 %s4379_s22, 4  ;;  %s4383_s10 = int_to_ptr.hbm [resolvable:$true] %s4382_s10 }
  0x43   : > { %v5281_v20 = vld [vmem:[%s9129_s1 + $0x3c0] sm:$0xf]  ;;  %v5154_v21 = vor.u32 %v6029_v19, %v5153_v18  ;;  %v6061_v22 = vld [vmem:[%s9129_s1 + $0x3cc] sm:$0xf0]  ;;  %1947 = vmatpush.bf16.msra.mxu0 %v4898_v16  ;;  %s8972_s21 = scalar_lea.sflag [#allocation9], %s4345_s18  ;;  %s6382_s13 = sshra.s32 %s4383_s10, 4  ;;  %s6383_s13 = int_to_ptr.hbm [resolvable:$true] %s6382_s13 }
  0x44   : > { %v4881_v23 = vld [vmem:[%s9129_s1 + $0xa0] sm:$0xf]  ;;  %v5961_v24 = vld [vmem:[%s9129_s1 + $0xac] sm:$0xf0]  ;;  %v5282_v25 = vor.u32 %v6061_v22, %v5281_v20  ;;  %1996 = vmatpush.bf16.msra.mxu1 %v5026_v17  ;;  %p6389_p9 = scmp.lt.s32.totalorder %s6383_s13, %s9135_s7 }
  0x45   : > { %v5009_v26 = vld [vmem:[%s9129_s1 + $0x1a0] sm:$0xf]  ;;  %v5993_v27 = vld [vmem:[%s9129_s1 + $0x1ac] sm:$0xf0]  ;;  %v4882_v29 = vor.u32 %v5961_v24, %v4881_v23  ;;  %2045 = vmatpush.bf16.msra.mxu2 %v5154_v21 }
  0x46   : > { %v5137_v28 = vld [vmem:[%s9129_s1 + $0x2a0] sm:$0xf]  ;;  %v6025_v30 = vld [vmem:[%s9129_s1 + $0x2ac] sm:$0xf0]  ;;  %v5010_v33 = vor.u32 %v5993_v27, %v5009_v26  ;;  %2094 = vmatpush.bf16.msra.mxu3 %v5282_v25 }
  0x47   : > { %v5265_v31 = vld [vmem:[%s9129_s1 + $0x3a0] sm:$0xf]  ;;  %v6057_v32 = vld [vmem:[%s9129_s1 + $0x3ac] sm:$0xf0]  ;;  %v5138_v34 = vor.u32 %v6025_v30, %v5137_v28  ;;  %1948 = vmatpush.bf16.msra.mxu0 %v4882_v29  ;;  %v5886_v29 = vld [vmem:[%s6856_s26 + $0x18] sm:$0xf0] }
  0x48   : > { %v4865_v35 = vld [vmem:[%s9129_s1 + $0x80] sm:$0xf]  ;;  %v5957_v36 = vld [vmem:[%s9129_s1 + $0x8c] sm:$0xf0]  ;;  %v5266_v38 = vor.u32 %v6057_v32, %v5265_v31  ;;  %1997 = vmatpush.bf16.msra.mxu1 %v5010_v33  ;;  %v5883_v30 = vld [vmem:[%s6856_s26 + $0x4] sm:$0xf] }
  0x49   : > { %v4993_v37 = vld [vmem:[%s9129_s1 + $0x180] sm:$0xf]  ;;  %v5989_v39 = vld [vmem:[%s9129_s1 + $0x18c] sm:$0xf0]  ;;  %v4866_v44 = vor.u32 %v5957_v36, %v4865_v35  ;;  %2046 = vmatpush.bf16.msra.mxu2 %v5138_v34  ;;  %v5967_v35 = vld [vmem:[%s9129_s1 + $0xe4] sm:$0xf] }
  0x4a   : > { %v5121_v40 = vld [vmem:[%s9129_s1 + $0x280] sm:$0xf]  ;;  %v6021_v41 = vld [vmem:[%s9129_s1 + $0x28c] sm:$0xf0]  ;;  %v4994_v45 = vor.u32 %v5989_v39, %v4993_v37  ;;  %2095 = vmatpush.bf16.msra.mxu3 %v5266_v38  ;;  %v4915_v36 = vld [vmem:[%s9129_s1 + $0xf0] sm:$0xf0] }
  0x4b   : > { %v5249_v42 = vld [vmem:[%s9129_s1 + $0x380] sm:$0xf]  ;;  %v6053_v43 = vld [vmem:[%s9129_s1 + $0x38c] sm:$0xf0]  ;;  %v5122_v46 = vor.u32 %v6021_v41, %v5121_v40  ;;  %1949 = vmatpush.bf16.msra.mxu0 %v4866_v44  ;;  %v4585_v39 = vld [vmem:[%s6856_s26 + $0x8] sm:$0xf] }
  0x4c   : > { %v4849_v47 = vld [vmem:[%s9129_s1 + $0x60] sm:$0xf]  ;;  %v5953_v48 = vld [vmem:[%s9129_s1 + $0x6c] sm:$0xf0]  ;;  %v5250_v50 = vor.u32 %v6053_v43, %v5249_v42  ;;  %1998 = vmatpush.bf16.msra.mxu1 %v4994_v45  ;;  %v5887_v40 = vld [vmem:[%s6856_s26 + $0x20] sm:$0xf0] }
  0x4d   : > { %v4977_v49 = vld [vmem:[%s9129_s1 + $0x160] sm:$0xf]  ;;  %v5985_v51 = vld [vmem:[%s9129_s1 + $0x16c] sm:$0xf0]  ;;  %v4850_v56 = vor.u32 %v5953_v48, %v4849_v47  ;;  %2047 = vmatpush.bf16.msra.mxu2 %v5122_v46  ;;  %v5884_v41 = vld [vmem:[%s6856_s26 + $0xc] sm:$0xf]  ;;  %v4918_v48 = vor.u32 %v5967_v35, %v4915_v36 }
  0x4e   : > { %v5105_v52 = vld [vmem:[%s9129_s1 + $0x260] sm:$0xf]  ;;  %v6017_v53 = vld [vmem:[%s9129_s1 + $0x26c] sm:$0xf0]  ;;  %v4978_v57 = vor.u32 %v5985_v51, %v4977_v49  ;;  %2096 = vmatpush.bf16.msra.mxu3 %v5250_v50  ;;  %v4587_v43 = vld [vmem:[%s6856_s26 + $0x24] sm:$0xf0] }
  0x4f   : > { %v5233_v54 = vld [vmem:[%s9129_s1 + $0x360] sm:$0xf]  ;;  %v6049_v55 = vld [vmem:[%s9129_s1 + $0x36c] sm:$0xf0]  ;;  %v5106_v58 = vor.u32 %v6017_v53, %v5105_v52  ;;  %1950 = vmatpush.bf16.msra.mxu0 %v4850_v56  ;;  %v6915_v52 = vor.u32 %v5887_v40, %v4585_v39  ;;  %v5963_v53 = vld [vmem:[%s9129_s1 + $0xc4] sm:$0xf] }
  0x50   : > { %v4833_v59 = vld [vmem:[%s9129_s1 + $0x40] sm:$0xf]  ;;  %v5949_v60 = vld [vmem:[%s9129_s1 + $0x4c] sm:$0xf0]  ;;  %v5234_v62 = vor.u32 %v6049_v55, %v5233_v54  ;;  %1999 = vmatpush.bf16.msra.mxu1 %v4978_v57  ;;  %v4899_v54 = vld [vmem:[%s9129_s1 + $0xd0] sm:$0xf0]  ;;  %v6923_v55 = vor.u32 %v5884_v41, %v4587_v43 }
  0x51   : > { %v4961_v61 = vld [vmem:[%s9129_s1 + $0x140] sm:$0xf]  ;;  %v5981_v63 = vld [vmem:[%s9129_s1 + $0x14c] sm:$0xf0]  ;;  %v4834_v4 = vor.u32 %v5949_v60, %v4833_v59  ;;  %2048 = vmatpush.bf16.msra.mxu2 %v5106_v58  ;;  %v4902_v60 = vor.u32 %v5963_v53, %v4899_v54  ;;  %v4641_v35 = vld [vmem:[%s6856_s26 + $0x78] sm:$0xf] }
  0x52   : > { %v5089_v0 = vld [vmem:[%s9129_s1 + $0x240] sm:$0xf]  ;;  %v6013_v1 = vld [vmem:[%s9129_s1 + $0x24c] sm:$0xf0]  ;;  %v4962_v5 = vor.u32 %v5981_v63, %v4961_v61  ;;  %2097 = vmatpush.bf16.msra.mxu3 %v5234_v62  ;;  %v5901_v36 = vld [vmem:[%s6856_s26 + $0x90] sm:$0xf0] }
  0x53   : > { %v5217_v2 = vld [vmem:[%s9129_s1 + $0x340] sm:$0xf]  ;;  %v6045_v3 = vld [vmem:[%s9129_s1 + $0x34c] sm:$0xf0]  ;;  %v5090_v6 = vor.u32 %v6013_v1, %v5089_v0  ;;  %1951 = vmatpush.bf16.msra.mxu0 %v4834_v4  ;;  %v5959_v0 = vld [vmem:[%s9129_s1 + $0xa4] sm:$0xf]  ;;  %v7009_v41 = vor.u32 %v5901_v36, %v4641_v35 }
  0x54   : > { %v4817_v7 = vld [vmem:[%s9129_s1 + $0x20] sm:$0xf]  ;;  %v5945_v8 = vld [vmem:[%s9129_s1 + $0x2c] sm:$0xf0]  ;;  %v5218_v10 = vor.u32 %v6045_v3, %v5217_v2  ;;  %2000 = vmatpush.bf16.msra.mxu1 %v4962_v5  ;;  %v4883_v4 = vld [vmem:[%s9129_s1 + $0xb0] sm:$0xf0] }
  0x55   : > { %v4945_v9 = vld [vmem:[%s9129_s1 + $0x120] sm:$0xf]  ;;  %v5977_v11 = vld [vmem:[%s9129_s1 + $0x12c] sm:$0xf0]  ;;  %v4818_v17 = vor.u32 %v5945_v8, %v4817_v7  ;;  %2049 = vmatpush.bf16.msra.mxu2 %v5090_v6  ;;  %v4886_v5 = vor.u32 %v5959_v0, %v4883_v4 }
  0x56   : > { %v5073_v12 = vld [vmem:[%s9129_s1 + $0x220] sm:$0xf]  ;;  %v6009_v13 = vld [vmem:[%s9129_s1 + $0x22c] sm:$0xf0]  ;;  %v4946_v21 = vor.u32 %v5977_v11, %v4945_v9  ;;  %2098 = vmatpush.bf16.msra.mxu3 %v5218_v10  ;;  %v4605_v10 = vld [vmem:[%s6856_s26 + $0x38] sm:$0xf] }
  0x57   : > { %v5201_v14 = vld [vmem:[%s9129_s1 + $0x320] sm:$0xf]  ;;  %v6041_v15 = vld [vmem:[%s9129_s1 + $0x32c] sm:$0xf0]  ;;  %v5074_v22 = vor.u32 %v6009_v13, %v5073_v12  ;;  %1952 = vmatpush.bf16.msra.mxu0 %v4818_v17  ;;  %v5893_v11 = vld [vmem:[%s6856_s26 + $0x50] sm:$0xf0] }
  0x58   : > { %v4801_v16 = vld [vmem:[%s9129_s1] sm:$0xf]  ;;  %v5941_v18 = vld [vmem:[%s9129_s1 + $0xc] sm:$0xf0]  ;;  %v5202_v26 = vor.u32 %v6041_v15, %v5201_v14  ;;  %2001 = vmatpush.bf16.msra.mxu1 %v4946_v21  ;;  %v5890_v12 = vld [vmem:[%s6856_s26 + $0x3c] sm:$0xf] }
  0x59   : > { %v4929_v19 = vld [vmem:[%s9129_s1 + $0x100] sm:$0xf]  ;;  %v5973_v20 = vld [vmem:[%s9129_s1 + $0x10c] sm:$0xf0]  ;;  %v4802_v33 = vor.u32 %v5941_v18, %v4801_v16  ;;  %2050 = vmatpush.bf16.msra.mxu2 %v5074_v22  ;;  %v4607_v13 = vld [vmem:[%s6856_s26 + $0x54] sm:$0xf0]  ;;  %v6967_v18 = vor.u32 %v5893_v11, %v4605_v10 }
  0x5a   : > { %v5057_v23 = vld [vmem:[%s9129_s1 + $0x200] sm:$0xf]  ;;  %v6005_v24 = vld [vmem:[%s9129_s1 + $0x20c] sm:$0xf0]  ;;  %v4930_v37 = vor.u32 %v5973_v20, %v4929_v19  ;;  %2099 = vmatpush.bf16.msra.mxu3 %v5202_v26  ;;  %v5894_v15 = vld [vmem:[%s6856_s26 + $0x58] sm:$0xf0]  ;;  %v6969_v19 = vor.u32 %v5890_v12, %v4607_v13 }
  0x5b   : > { %v5185_v25 = vld [vmem:[%s9129_s1 + $0x300] sm:$0xf]  ;;  %v6037_v27 = vld [vmem:[%s9129_s1 + $0x30c] sm:$0xf0]  ;;  %v5058_v38 = vor.u32 %v6005_v24, %v5057_v23  ;;  %1953 = vmatpush.bf16.msra.mxu0 %v4802_v33  ;;  %v5891_v16 = vld [vmem:[%s6856_s26 + $0x44] sm:$0xf] }
  0x5c   : > { %v4577_v28 = vld [vmem:[%s6856_s26] sm:$0xf]  ;;  %v6133_v32 = vld [vmem:[%s9129_s1 + $0x60c] sm:$0xf0]  ;;  %v5186_v42 = vor.u32 %v6037_v27, %v5185_v25  ;;  %2002 = vmatpush.bf16.msra.mxu1 %v4930_v37  ;;  %9240 = vst [vmem:[#allocation18_spill] sm:$0xff] %v6967_v18 }
  0x5d   : > { %v5569_v31 = vld [vmem:[%s9129_s1 + $0x600] sm:$0xf]  ;;  %v6097_v46 = vld [vmem:[%s9129_s1 + $0x4ec] sm:$0xf0]  ;;  %v6905_v47 = vor.u32 %v5886_v29, %v4577_v28  ;;  %2051 = vmatpush.bf16.msra.mxu2 %v5058_v38  ;;  %9241 = vst [vmem:[#allocation19_spill] sm:$0xff] %v6969_v19 }
  0x5e   : > { %v4579_v34 = vld [vmem:[%s6856_s26 + $0x1c] sm:$0xf0]  ;;  %v5570_v44 = vor.u32 %v6133_v32, %v5569_v31  ;;  %v6129_v50 = vld [vmem:[%s9129_s1 + $0x5ec] sm:$0xf0]  ;;  %2100 = vmatpush.bf16.msra.mxu3 %v5186_v42  ;;  %v5955_v24 = vld [vmem:[%s9129_s1 + $0x84] sm:$0xf] }
  0x5f   : > { %v5425_v45 = vld [vmem:[%s9129_s1 + $0x4e0] sm:$0xf]  ;;  %9238 = vst [vmem:[#allocation16_spill] sm:$0xff] %v6905_v47  ;;  %v6913_v51 = vor.u32 %v5883_v30, %v4579_v34  ;;  %v6093_v59 = vld [vmem:[%s9129_s1 + $0x4cc] sm:$0xf0]  ;;  %1954 = vmatmul.bf16.vlgmr.msra.gmra.mxu0 %v6905_v47 }
  0x60   : > { %v5553_v49 = vld [vmem:[%s9129_s1 + $0x5e0] sm:$0xf]  ;;  %v5426_v56 = vor.u32 %v6097_v46, %v5425_v45  ;;  %v6125_v62 = vld [vmem:[%s9129_s1 + $0x5cc] sm:$0xf0]  ;;  %2052 = vmatmul.bf16.vlgmr.msra.gmra.mxu2 %v6915_v52  ;;  %v4867_v26 = vld [vmem:[%s9129_s1 + $0x90] sm:$0xf0] }
  0x61   : > { %9239 = vst [vmem:[#allocation17_spill] sm:$0xff] %v6913_v51  ;;  %2247 = vmatpush.bf16.msrb.mxu2 %v5570_v44  ;;  %v5554_v57 = vor.u32 %v6129_v50, %v5553_v49  ;;  %v5409_v58 = vld [vmem:[%s9129_s1 + $0x4c0] sm:$0xf]  ;;  %2003 = vmatmul.bf16.vlgmr.msra.gmra.mxu1 %v6913_v51  ;;  %v6089_v3 = vld [vmem:[%s9129_s1 + $0x4ac] sm:$0xf0]  ;;  %v4870_v29 = vor.u32 %v5955_v24, %v4867_v26 }
  0x62   : > { %2289 = vmatpush.bf16.msrb.mxu3 %v4918_v48  ;;  %v5537_v61 = vld [vmem:[%s9129_s1 + $0x5c0] sm:$0xf]  ;;  %2142 = vmatpush.bf16.msrb.mxu0 %v5426_v56  ;;  %v5410_v63 = vor.u32 %v6093_v59, %v5409_v58  ;;  %v6121_v7 = vld [vmem:[%s9129_s1 + $0x5ac] sm:$0xf0]  ;;  %v5900_v32 = vld [vmem:[%s6856_s26 + $0x88] sm:$0xf0] }
  0x63   : > { %2101 = vmatmul.bf16.vlgmr.msra.gmra.mxu3 %v6923_v55  ;;  %2191 = vmatpush.bf16.msrb.mxu1 %v5554_v57  ;;  %v5538_v1 = vor.u32 %v6125_v62, %v5537_v61  ;;  %v5393_v2 = vld [vmem:[%s9129_s1 + $0x4a0] sm:$0xf]  ;;  %v6085_v23 = vld [vmem:[%s9129_s1 + $0x48c] sm:$0xf0]  ;;  %v5897_v33 = vld [vmem:[%s6856_s26 + $0x74] sm:$0xf] }
  0x64   : > { %v5521_v6 = vld [vmem:[%s9129_s1 + $0x5a0] sm:$0xf]  ;;  %v5394_v8 = vor.u32 %v6089_v3, %v5393_v2  ;;  %v6117_v28 = vld [vmem:[%s9129_s1 + $0x58c] sm:$0xf0]  ;;  %v5898_v37 = vld [vmem:[%s6856_s26 + $0x7c] sm:$0xf] }
  0x65   : > { %v5522_v9 = vor.u32 %v6121_v7, %v5521_v6  ;;  %v4613_v14 = vld [vmem:[%s6856_s26 + $0x40] sm:$0xf]  ;;  %v4633_v31 = vld [vmem:[%s6856_s26 + $0x70] sm:$0xf]  ;;  %v4643_v38 = vld [vmem:[%s6856_s26 + $0x94] sm:$0xf0] }
  0x66   : > { %2290 = vmatpush.bf16.msrb.mxu3 %v4902_v60  ;;  %2143 = vmatpush.bf16.msrb.mxu0 %v5410_v63  ;;  %v4615_v17 = vld [vmem:[%s6856_s26 + $0x5c] sm:$0xf0]  ;;  %v6971_v20 = vor.u32 %v5894_v15, %v4613_v14  ;;  %v4635_v34 = vld [vmem:[%s6856_s26 + $0x8c] sm:$0xf0]  ;;  %v7005_v39 = vor.u32 %v5900_v32, %v4633_v31  ;;  %v7011_v42 = vor.u32 %v5898_v37, %v4643_v38  ;;  %v5951_v45 = vld [vmem:[%s9129_s1 + $0x64] sm:$0xf] }
  0x67   : > { %2192 = vmatpush.bf16.msrb.mxu1 %v5538_v1  ;;  %v6973_v21 = vor.u32 %v5891_v16, %v4615_v17  ;;  %v5377_v22 = vld [vmem:[%s9129_s1 + $0x480] sm:$0xf]  ;;  %v7007_v40 = vor.u32 %v5897_v33, %v4635_v34  ;;  %v6081_v44 = vld [vmem:[%s9129_s1 + $0x46c] sm:$0xf0]  ;;  %v4851_v48 = vld [vmem:[%s9129_s1 + $0x70] sm:$0xf0] }
  0x68   : > { %v5378_v25 = vor.u32 %v6085_v23, %v5377_v22  ;;  %v5505_v27 = vld [vmem:[%s9129_s1 + $0x580] sm:$0xf]  ;;  %9242 = vst [vmem:[#allocation20_spill] sm:$0xff] %v7005_v39  ;;  %v6113_v50 = vld [vmem:[%s9129_s1 + $0x56c] sm:$0xf0]  ;;  %v4854_v53 = vor.u32 %v5951_v45, %v4851_v48 }
  0x69   : > { %v5506_v30 = vor.u32 %v6117_v28, %v5505_v27  ;;  %9243 = vst [vmem:[#allocation21_spill] sm:$0xff] %v7007_v40  ;;  %v5361_v43 = vld [vmem:[%s9129_s1 + $0x460] sm:$0xf]  ;;  %v4661_v56 = vld [vmem:[%s6856_s26 + $0xa8] sm:$0xf] }
  0x6a   : > { %2291 = vmatpush.bf16.msrb.mxu3 %v4886_v5  ;;  %2144 = vmatpush.bf16.msrb.mxu0 %v5394_v8  ;;  %v5362_v46 = vor.u32 %v6081_v44, %v5361_v43  ;;  %v5489_v49 = vld [vmem:[%s9129_s1 + $0x560] sm:$0xf]  ;;  %v5907_v57 = vld [vmem:[%s6856_s26 + $0xc0] sm:$0xf0]  ;;  %v5904_v58 = vld [vmem:[%s6856_s26 + $0xac] sm:$0xf] }
  0x6b   : > { %2193 = vmatpush.bf16.msrb.mxu1 %v5522_v9  ;;  %v5490_v54 = vor.u32 %v6113_v50, %v5489_v49  ;;  %v4663_v59 = vld [vmem:[%s6856_s26 + $0xc4] sm:$0xf0]  ;;  %v4669_v60 = vld [vmem:[%s6856_s26 + $0xb0] sm:$0xf]  ;;  %v5908_v61 = vld [vmem:[%s6856_s26 + $0xc8] sm:$0xf0]  ;;  %v7043_v0 = vor.u32 %v5907_v57, %v4661_v56 }
  0x6c   : > { %v5905_v62 = vld [vmem:[%s6856_s26 + $0xb4] sm:$0xf]  ;;  %v4671_v63 = vld [vmem:[%s6856_s26 + $0xcc] sm:$0xf0]  ;;  %v7045_v1 = vor.u32 %v5904_v58, %v4663_v59  ;;  %v7047_v2 = vor.u32 %v5908_v61, %v4669_v60  ;;  %v5345_v4 = vld [vmem:[%s9129_s1 + $0x440] sm:$0xf] }
  0x6d   : > { %9244 = vst [vmem:[#allocation22_spill] sm:$0xff] %v7043_v0  ;;  %v7049_v3 = vor.u32 %v5905_v62, %v4671_v63  ;;  %v6077_v5 = vld [vmem:[%s9129_s1 + $0x44c] sm:$0xf0]  ;;  %v5947_v6 = vld [vmem:[%s9129_s1 + $0x44] sm:$0xf] }
  0x6e   : > { %2145 = vmatpush.bf16.msrb.mxu0 %v5378_v25  ;;  %2292 = vmatpush.bf16.msrb.mxu3 %v4870_v29  ;;  %9245 = vst [vmem:[#allocation23_spill] sm:$0xff] %v7045_v1  ;;  %v5346_v7 = vor.u32 %v6077_v5, %v5345_v4  ;;  %v4835_v8 = vld [vmem:[%s9129_s1 + $0x50] sm:$0xf0]  ;;  %v5473_v9 = vld [vmem:[%s9129_s1 + $0x540] sm:$0xf] }
  0x6f   : > { %1959 = vmatmul.bf16.gmra.mxu0 %v6967_v18  ;;  %2194 = vmatpush.bf16.msrb.mxu1 %v5506_v30  ;;  %v6109_v10 = vld [vmem:[%s9129_s1 + $0x54c] sm:$0xf0]  ;;  %v4838_v11 = vor.u32 %v5947_v6, %v4835_v8  ;;  %v4689_v13 = vld [vmem:[%s6856_s26 + $0xe0] sm:$0xf]  ;;  %v5914_v14 = vld [vmem:[%s6856_s26 + $0xf8] sm:$0xf0] }
  0x70   : > { %2057 = vmatmul.bf16.gmra.mxu2 %v6971_v20  ;;  %v5474_v12 = vor.u32 %v6109_v10, %v5473_v9  ;;  %v5911_v15 = vld [vmem:[%s6856_s26 + $0xe4] sm:$0xf]  ;;  %v4691_v16 = vld [vmem:[%s6856_s26 + $0xfc] sm:$0xf0]  ;;  %v4697_v17 = vld [vmem:[%s6856_s26 + $0xe8] sm:$0xf]  ;;  %v7081_v25 = vor.u32 %v5914_v14, %v4689_v13 }
  0x71   : > { %2008 = vmatmul.bf16.gmra.mxu1 %v6969_v19  ;;  %v5915_v22 = vld [vmem:[%s6856_s26 + $0x100] sm:$0xf0]  ;;  %v5912_v23 = vld [vmem:[%s6856_s26 + $0xec] sm:$0xf]  ;;  %v4699_v24 = vld [vmem:[%s6856_s26 + $0x104] sm:$0xf0]  ;;  %v7083_v26 = vor.u32 %v5911_v15, %v4691_v16 }
  0x72   : > { %2146 = vmatpush.bf16.msrb.mxu0 %v5362_v46  ;;  %2293 = vmatpush.bf16.msrb.mxu3 %v4854_v53  ;;  %9246 = vst [vmem:[#allocation24_spill] sm:$0xff] %v7081_v25  ;;  %v7085_v27 = vor.u32 %v5915_v22, %v4697_v17  ;;  %v7087_v28 = vor.u32 %v5912_v23, %v4699_v24  ;;  %v5329_v29 = vld [vmem:[%s9129_s1 + $0x420] sm:$0xf]  ;;  %v6073_v30 = vld [vmem:[%s9129_s1 + $0x42c] sm:$0xf0] }
  0x73   : > { %2106 = vmatmul.bf16.gmra.mxu3 %v6973_v21  ;;  %2195 = vmatpush.bf16.msrb.mxu1 %v5490_v54  ;;  %9247 = vst [vmem:[#allocation25_spill] sm:$0xff] %v7083_v26  ;;  %v5943_v31 = vld [vmem:[%s9129_s1 + $0x24] sm:$0xf]  ;;  %v5330_v32 = vor.u32 %v6073_v30, %v5329_v29  ;;  %v4819_v33 = vld [vmem:[%s9129_s1 + $0x30] sm:$0xf0] }
  0x74   : > { %v5457_v34 = vld [vmem:[%s9129_s1 + $0x520] sm:$0xf]  ;;  %v6105_v35 = vld [vmem:[%s9129_s1 + $0x52c] sm:$0xf0]  ;;  %v4822_v36 = vor.u32 %v5943_v31, %v4819_v33  ;;  %v4717_v38 = vld [vmem:[%s6856_s26 + $0x118] sm:$0xf] }
  0x75   : > { %v5458_v37 = vor.u32 %v6105_v35, %v5457_v34  ;;  %v5921_v43 = vld [vmem:[%s6856_s26 + $0x130] sm:$0xf0]  ;;  %v5918_v44 = vld [vmem:[%s6856_s26 + $0x11c] sm:$0xf]  ;;  %v4719_v45 = vld [vmem:[%s6856_s26 + $0x134] sm:$0xf0] }
  0x76   : > { %2147 = vmatpush.bf16.msrb.mxu0 %v5346_v7  ;;  %2294 = vmatpush.bf16.msrb.mxu3 %v4838_v11  ;;  %v4725_v46 = vld [vmem:[%s6856_s26 + $0x120] sm:$0xf]  ;;  %v5922_v48 = vld [vmem:[%s6856_s26 + $0x138] sm:$0xf0]  ;;  %v5919_v49 = vld [vmem:[%s6856_s26 + $0x124] sm:$0xf]  ;;  %v7119_v53 = vor.u32 %v5921_v43, %v4717_v38  ;;  %v7121_v54 = vor.u32 %v5918_v44, %v4719_v45 }
  0x77   : > { %2196 = vmatpush.bf16.msrb.mxu1 %v5474_v12  ;;  %v4727_v50 = vld [vmem:[%s6856_s26 + $0x13c] sm:$0xf0]  ;;  %v7123_v56 = vor.u32 %v5922_v48, %v4725_v46  ;;  %v6069_v59 = vld [vmem:[%s9129_s1 + $0x40c] sm:$0xf0]  ;;  %v5939_v60 = vld [vmem:[%s9129_s1 + $0x4] sm:$0xf] }
  0x78   : > { %9248 = vst [vmem:[#allocation26_spill] sm:$0xff] %v7119_v53  ;;  %v7125_v57 = vor.u32 %v5919_v49, %v4727_v50  ;;  %v5313_v58 = vld [vmem:[%s9129_s1 + $0x400] sm:$0xf]  ;;  %v4803_v62 = vld [vmem:[%s9129_s1 + $0x10] sm:$0xf0] }
  0x79   : > { %9249 = vst [vmem:[#allocation27_spill] sm:$0xff] %v7121_v54  ;;  %v5314_v61 = vor.u32 %v6069_v59, %v5313_v58  ;;  %v5441_v63 = vld [vmem:[%s9129_s1 + $0x500] sm:$0xf]  ;;  %v6101_v4 = vld [vmem:[%s9129_s1 + $0x50c] sm:$0xf0]  ;;  %v4806_v5 = vor.u32 %v5939_v60, %v4803_v62 }
  0x7a   : > { %2148 = vmatpush.bf16.msrb.mxu0 %v5330_v32  ;;  %2295 = vmatpush.bf16.msrb.mxu3 %v4822_v36  ;;  %v5442_v6 = vor.u32 %v6101_v4, %v5441_v63  ;;  %v4745_v7 = vld [vmem:[%s6856_s26 + $0x150] sm:$0xf]  ;;  %v5928_v8 = vld [vmem:[%s6856_s26 + $0x168] sm:$0xf0]  ;;  %v5925_v9 = vld [vmem:[%s6856_s26 + $0x154] sm:$0xf] }
  0x7b   : > { %2197 = vmatpush.bf16.msrb.mxu1 %v5458_v37  ;;  %v4747_v10 = vld [vmem:[%s6856_s26 + $0x16c] sm:$0xf0]  ;;  %v4753_v11 = vld [vmem:[%s6856_s26 + $0x158] sm:$0xf]  ;;  %v5929_v12 = vld [vmem:[%s6856_s26 + $0x170] sm:$0xf0]  ;;  %v7157_v15 = vor.u32 %v5928_v8, %v4745_v7 }
  0x7c   : > { %v5926_v13 = vld [vmem:[%s6856_s26 + $0x15c] sm:$0xf]  ;;  %v4755_v14 = vld [vmem:[%s6856_s26 + $0x174] sm:$0xf0]  ;;  %v7159_v16 = vor.u32 %v5925_v9, %v4747_v10  ;;  %v7161_v17 = vor.u32 %v5929_v12, %v4753_v11  ;;  %v6063_v23 = vld [vmem:[%s9129_s1 + $0x3e4] sm:$0xf] }
  0x7d   : > { %9250 = vst [vmem:[#allocation28_spill] sm:$0xff] %v7157_v15  ;;  %v7163_v22 = vor.u32 %v5926_v13, %v4755_v14  ;;  %v5299_v24 = vld [vmem:[%s9129_s1 + $0x3f0] sm:$0xf0]  ;;  %v5999_v29 = vld [vmem:[%s9129_s1 + $0x1e4] sm:$0xf] }
  0x7e   : > { %2149 = vmatpush.bf16.msrb.mxu0 %v5314_v61  ;;  %2296 = vmatpush.bf16.msrb.mxu3 %v4806_v5  ;;  %9251 = vst [vmem:[#allocation29_spill] sm:$0xff] %v7159_v16  ;;  %v5302_v30 = vor.u32 %v6063_v23, %v5299_v24  ;;  %v5043_v31 = vld [vmem:[%s9129_s1 + $0x1f0] sm:$0xf0]  ;;  %v6095_v32 = vld [vmem:[%s9129_s1 + $0x4e4] sm:$0xf] }
  0x7f   : > { %1964 = vmatmul.bf16.gmra.mxu0 %v7005_v39  ;;  %2198 = vmatpush.bf16.msrb.mxu1 %v5442_v6  ;;  %v5427_v33 = vld [vmem:[%s9129_s1 + $0x4f0] sm:$0xf0]  ;;  %v5046_v34 = vor.u32 %v5999_v29, %v5043_v31  ;;  %v6031_v36 = vld [vmem:[%s9129_s1 + $0x2e4] sm:$0xf]  ;;  %v4773_v43 = vld [vmem:[%s6856_s26 + $0x188] sm:$0xf] }
  0x80   : > { %2062 = vmatmul.bf16.gmra.mxu2 %v7009_v41  ;;  %v5430_v35 = vor.u32 %v6095_v32, %v5427_v33  ;;  %v5171_v37 = vld [vmem:[%s9129_s1 + $0x2f0] sm:$0xf0]  ;;  %v5935_v44 = vld [vmem:[%s6856_s26 + $0x1a0] sm:$0xf0]  ;;  %v5932_v45 = vld [vmem:[%s6856_s26 + $0x18c] sm:$0xf] }
  0x81   : > { %2013 = vmatmul.bf16.gmra.mxu1 %v7007_v40  ;;  %2436 = vmatpush.bf16.msra.mxu2 %v5302_v30  ;;  %v5174_v38 = vor.u32 %v6031_v36, %v5171_v37  ;;  %v4775_v46 = vld [vmem:[%s6856_s26 + $0x1a4] sm:$0xf0]  ;;  %v4781_v48 = vld [vmem:[%s6856_s26 + $0x190] sm:$0xf]  ;;  %v5936_v49 = vld [vmem:[%s6856_s26 + $0x1a8] sm:$0xf0]  ;;  %v7201_v59 = vor.u32 %v5935_v44, %v4773_v43 }
  0x82   : > { %2338 = vmatpush.bf16.msra.mxu0 %v5046_v34  ;;  %2485 = vmatpush.bf16.msra.mxu3 %v5430_v35  ;;  %v5933_v50 = vld [vmem:[%s6856_s26 + $0x194] sm:$0xf]  ;;  %v4783_v58 = vld [vmem:[%s6856_s26 + $0x1ac] sm:$0xf0]  ;;  %v7203_v60 = vor.u32 %v5932_v45, %v4775_v46  ;;  %v7205_v61 = vor.u32 %v5936_v49, %v4781_v48  ;;  %v6059_v63 = vld [vmem:[%s9129_s1 + $0x3c4] sm:$0xf] }
  0x83   : > { %2111 = vmatmul.bf16.gmra.mxu3 %v7011_v42  ;;  %2387 = vmatpush.bf16.msra.mxu1 %v5174_v38  ;;  %9252 = vst [vmem:[#allocation30_spill] sm:$0xff] %v7201_v59  ;;  %v7207_v62 = vor.u32 %v5933_v50, %v4783_v58  ;;  %v5283_v4 = vld [vmem:[%s9129_s1 + $0x3d0] sm:$0xf0]  ;;  %v5995_v5 = vld [vmem:[%s9129_s1 + $0x1c4] sm:$0xf] }
  0x84   : > { %9253 = vst [vmem:[#allocation31_spill] sm:$0xff] %v7203_v60  ;;  %v5286_v6 = vor.u32 %v6059_v63, %v5283_v4  ;;  %v5027_v7 = vld [vmem:[%s9129_s1 + $0x1d0] sm:$0xf0]  ;;  %v6091_v8 = vld [vmem:[%s9129_s1 + $0x4c4] sm:$0xf] }
  0x85   : > { %9254 = vst [vmem:[#allocation32_spill] sm:$0xff] %v7205_v61  ;;  %v5411_v9 = vld [vmem:[%s9129_s1 + $0x4d0] sm:$0xf0]  ;;  %v5030_v10 = vor.u32 %v5995_v5, %v5027_v7  ;;  %v651_v12 = vld [vmem:[%s9130_s2] sm:$0xf] }
  0x86   : > { %9255 = vst [vmem:[#allocation33_spill] sm:$0xff] %v7207_v62  ;;  %v5414_v11 = vor.u32 %v6091_v8, %v5411_v9  ;;  %2437 = vmatpush.bf16.msra.mxu2 %v5286_v6  ;;  %v6027_v13 = vld [vmem:[%s9129_s1 + $0x2c4] sm:$0xf]  ;;  %v5155_v14 = vld [vmem:[%s9129_s1 + $0x2d0] sm:$0xf0]  ;;  %v7240_v23 = vperm.slane %v651_v12, 0 }
  0x87   : > { %2339 = vmatpush.bf16.msra.mxu0 %v5030_v10  ;;  %v5158_v24 = vor.u32 %v6027_v13, %v5155_v14  ;;  %v4593_v29 = vld [vmem:[%s6856_s26 + $0x10] sm:$0xf]  ;;  %v5888_v30 = vld [vmem:[%s6856_s26 + $0x28] sm:$0xf0]  ;;  %v5885_v31 = vld [vmem:[%s6856_s26 + $0x14] sm:$0xf] }
  0x88   : > { %2486 = vmatpush.bf16.msra.mxu3 %v5414_v11  ;;  %v4595_v32 = vld [vmem:[%s6856_s26 + $0x2c] sm:$0xf0]  ;;  %v4601_v33 = vld [vmem:[%s6856_s26 + $0x18] sm:$0xf]  ;;  %v5889_v34 = vld [vmem:[%s6856_s26 + $0x30] sm:$0xf0]  ;;  %v7248_v35 = vor.u32 %v5888_v30, %v4593_v29 }
  0x89   : > { %2388 = vmatpush.bf16.msra.mxu1 %v5158_v24  ;;  %v7250_v37 = vor.u32 %v5885_v31, %v4595_v32  ;;  %v7252_v38 = vor.u32 %v5889_v34, %v4601_v33  ;;  %v6055_v46 = vld [vmem:[%s9129_s1 + $0x3a4] sm:$0xf]  ;;  %v5267_v48 = vld [vmem:[%s9129_s1 + $0x3b0] sm:$0xf0]  ;;  %v4621_v31 = vld [vmem:[%s6856_s26 + $0x48] sm:$0xf] }
  0x8a   : > { %9256 = vst [vmem:[#allocation34_spill] sm:$0xff] %v7248_v35  ;;  %v5991_v49 = vld [vmem:[%s9129_s1 + $0x1a4] sm:$0xf]  ;;  %v5270_v50 = vor.u32 %v6055_v46, %v5267_v48  ;;  %v5011_v58 = vld [vmem:[%s9129_s1 + $0x1b0] sm:$0xf0] }
  0x8b   : > { %9257 = vst [vmem:[#allocation35_spill] sm:$0xff] %v7250_v37  ;;  %v6087_v63 = vld [vmem:[%s9129_s1 + $0x4a4] sm:$0xf]  ;;  %v5395_v4 = vld [vmem:[%s9129_s1 + $0x4b0] sm:$0xf0]  ;;  %v5014_v6 = vor.u32 %v5991_v49, %v5011_v58 }
  0x8c   : > { %9258 = vst [vmem:[#allocation36_spill] sm:$0xff] %v7252_v38  ;;  %v5398_v7 = vor.u32 %v6087_v63, %v5395_v4  ;;  %2438 = vmatpush.bf16.msra.mxu2 %v5270_v50  ;;  %v6023_v14 = vld [vmem:[%s9129_s1 + $0x2a4] sm:$0xf]  ;;  %v5139_v24 = vld [vmem:[%s9129_s1 + $0x2b0] sm:$0xf0] }
  0x8d   : > { %2340 = vmatpush.bf16.msra.mxu0 %v5014_v6  ;;  %v5142_v30 = vor.u32 %v6023_v14, %v5139_v24  ;;  %v5895_v32 = vld [vmem:[%s6856_s26 + $0x60] sm:$0xf0]  ;;  %v5892_v33 = vld [vmem:[%s6856_s26 + $0x4c] sm:$0xf]  ;;  %v4623_v34 = vld [vmem:[%s6856_s26 + $0x64] sm:$0xf0] }
  0x8e   : > { %2487 = vmatpush.bf16.msra.mxu3 %v5398_v7  ;;  %v7295_v50 = vor.u32 %v5892_v33, %v4623_v34  ;;  %v6051_v7 = vld [vmem:[%s9129_s1 + $0x384] sm:$0xf]  ;;  %v5379_v14 = vld [vmem:[%s9129_s1 + $0x490] sm:$0xf0] }
  0x8f   : > { %1969 = vmatmul.bf16.gmra.mxu0 %v7043_v0  ;;  %2389 = vmatpush.bf16.msra.mxu1 %v5142_v30 }
  0x90   : > { %2067 = vmatmul.bf16.gmra.mxu2 %v7047_v2  ;;  %9259 = vst [vmem:[#allocation37_spill] sm:$0xff] %v7295_v50 }
  0x91   : > { %2018 = vmatmul.bf16.gmra.mxu1 %v7045_v1 }
  0x93   : > { %2116 = vmatmul.bf16.gmra.mxu3 %v7049_v3 }
  0x9f   : > { %1974 = vmatmul.bf16.gmra.mxu0 %v7081_v25 }
  0xa0   : > { %2072 = vmatmul.bf16.gmra.mxu2 %v7085_v27 }
  0xa1   : > { %2023 = vmatmul.bf16.gmra.mxu1 %v7083_v26 }
  0xa3   : > { %2121 = vmatmul.bf16.gmra.mxu3 %v7087_v28 }
  0xaf   : > { %1979 = vmatmul.bf16.gmra.mxu0 %v7119_v53 }
  0xb0   : > { %2077 = vmatmul.bf16.gmra.mxu2 %v7123_v56 }
  0xb1   : > { %2028 = vmatmul.bf16.gmra.mxu1 %v7121_v54 }
  0xb3   : > { %2126 = vmatmul.bf16.gmra.mxu3 %v7125_v57 }
  0xbf   : > { %1984 = vmatmul.bf16.gmra.mxu0 %v7157_v15 }
  0xc0   : > { %2082 = vmatmul.bf16.gmra.mxu2 %v7161_v17 }
  0xc1   : > { %2033 = vmatmul.bf16.gmra.mxu1 %v7159_v16 }
  0xc3   : > { %2131 = vmatmul.bf16.gmra.mxu3 %v7163_v22 }
  0xcf   : > { %1989 = vmatmul.bf16.gmra.mxu0 %v7201_v59 }
  0xd0   : > { %2087 = vmatmul.bf16.gmra.mxu2 %v7205_v61 }
  0xd1   : > { %2038 = vmatmul.bf16.gmra.mxu1 %v7203_v60 }
  0xd3   : > { %2136 = vmatmul.bf16.gmra.mxu3 %v7207_v62 }
  0xdc   : > { %v1955_v36 = vpop.f32.mrf.mxu0 }
  0xdd   : > { %v1956_v43 = vadd.f32 %v1955_v36, %v7240_v23  ;;  %v4629_v36 = vld [vmem:[%s6856_s26 + $0x50] sm:$0xf] }
  0xde   : > { %v2004_v44 = vpop.f32.mrf.mxu1 }
  0xdf   : > { %v2005_v45 = vadd.f32 %v2004_v44, %v1956_v43  ;;  %2150 = vmatmul.bf16.vlgmr.msrb.gmra.mxu0 %v7248_v35  ;;  %v5896_v43 = vld [vmem:[%s6856_s26 + $0x68] sm:$0xf0] }
  0xe0   : > { %5583 = vmatmul.msk.bf16.vlgmr.msrb.gmra.mxu2 %vm1921_vm0, %v7252_v38  ;;  %v7297_v58 = vor.u32 %v5896_v43, %v4629_v36 }
  0xe1   : > { %2199 = vmatmul.bf16.vlgmr.msrb.gmra.mxu1 %v7250_v37 }
  0xe2   : > { %9260 = vst [vmem:[#allocation38_spill] sm:$0xff] %v7297_v58 }
  0xe3   : > { %2297 = vmatmul.bf16.vlgmr.msrb.gmra.mxu3 %v6905_v47  ;;  %v2053_v5 = vpop.f32.mrf.mxu2 }
  0xe4   : > { %v2054_v8 = vadd.f32 %v2053_v5, %v2005_v45  ;;  %v1957_v10 = vpop.f32.mrf.mxu0  ;;  %v7293_v45 = vor.u32 %v5895_v32, %v4621_v31 }
  0xe5   : > { %v1958_v11 = vadd.f32 %v1957_v10, %v7240_v23 }
  0xe6   : > { %v2102_v9 = vpop.f32.mrf.mxu3  ;;  %v2006_v12 = vpop.f32.mrf.mxu1 }
  0xe7   : > { %v7279_v13 = vadd.f32 %v2102_v9, %v2054_v8  ;;  %v2007_v29 = vadd.f32 %v2006_v12, %v1958_v11  ;;  %v5251_v8 = vld [vmem:[%s9129_s1 + $0x390] sm:$0xf0]  ;;  %v5987_v9 = vld [vmem:[%s9129_s1 + $0x184] sm:$0xf] }
  0xe8   : > { %v5254_v10 = vor.u32 %v6051_v7, %v5251_v8  ;;  %v4995_v11 = vld [vmem:[%s9129_s1 + $0x190] sm:$0xf0]  ;;  %v6083_v12 = vld [vmem:[%s9129_s1 + $0x484] sm:$0xf]  ;;  %v4651_v7 = vld [vmem:[%s6856_s26 + $0x9c] sm:$0xf0] }
  0xe9   : > { %v5382_v30 = vor.u32 %v6083_v12, %v5379_v14  ;;  %v4657_v8 = vld [vmem:[%s6856_s26 + $0x88] sm:$0xf] }
  0xea   : > { %2439 = vmatpush.bf16.msra.mxu2 %v5254_v10 }
  0xeb   : > { %v2055_v44 = vpop.f32.mrf.mxu2  ;;  %2488 = vmatpush.bf16.msra.mxu3 %v5382_v30 }
  0xec   : > { %v2056_v46 = vadd.f32 %v2055_v44, %v2007_v29  ;;  %v1960_v49 = vpop.f32.mrf.mxu0  ;;  %v4998_v29 = vor.u32 %v5987_v9, %v4995_v11  ;;  %v6019_v44 = vld [vmem:[%s9129_s1 + $0x284] sm:$0xf] }
  0xed   : > { %v1961_v63 = vadd.f32 %v1960_v49, %v7240_v23  ;;  %v5903_v9 = vld [vmem:[%s6856_s26 + $0xa0] sm:$0xf0] }
  0xee   : > { %v2104_v48 = vpop.f32.mrf.mxu3  ;;  %v2009_v4 = vpop.f32.mrf.mxu1  ;;  %2341 = vmatpush.bf16.msra.mxu0 %v4998_v29  ;;  %v7344_v30 = vor.u32 %v5903_v9, %v4657_v8 }
  0xef   : > { %v7300_v5 = vadd.f32 %v2104_v48, %v2056_v46  ;;  %v2010_v6 = vadd.f32 %v2009_v4, %v1961_v63  ;;  %2155 = vmatmul.bf16.gmra.mxu0 %v7293_v45  ;;  %v5123_v46 = vld [vmem:[%s9129_s1 + $0x290] sm:$0xf0]  ;;  %v4649_v63 = vld [vmem:[%s6856_s26 + $0x80] sm:$0xf]  ;;  %v5902_v4 = vld [vmem:[%s6856_s26 + $0x98] sm:$0xf0] }
  0xf0   : > { %5584 = vmatmul.msk.bf16.gmra.mxu2 %vm1921_vm0, %v7297_v58  ;;  %v5126_v49 = vor.u32 %v6019_v44, %v5123_v46  ;;  %v7340_v11 = vor.u32 %v5902_v4, %v4649_v63  ;;  %9262 = vst [vmem:[#allocation40_spill] sm:$0xff] %v7344_v30  ;;  %v5235_v44 = vld [vmem:[%s9129_s1 + $0x370] sm:$0xf0]  ;;  %v5983_v46 = vld [vmem:[%s9129_s1 + $0x164] sm:$0xf] }
  0xf1   : > { %2204 = vmatmul.bf16.gmra.mxu1 %v7295_v50  ;;  %v6079_v63 = vld [vmem:[%s9129_s1 + $0x464] sm:$0xf]  ;;  %v5363_v4 = vld [vmem:[%s9129_s1 + $0x470] sm:$0xf0] }
  0xf2   : > { %2390 = vmatpush.bf16.msra.mxu1 %v5126_v49  ;;  %v4979_v49 = vld [vmem:[%s9129_s1 + $0x170] sm:$0xf0]  ;;  %v5366_v8 = vor.u32 %v6079_v63, %v5363_v4  ;;  %v4679_v63 = vld [vmem:[%s6856_s26 + $0xd4] sm:$0xf0]  ;;  %v4685_v4 = vld [vmem:[%s6856_s26 + $0xc0] sm:$0xf] }
  0xf3   : > { %2302 = vmatmul.bf16.gmra.mxu3 %v6967_v18  ;;  %v2058_v24 = vpop.f32.mrf.mxu2 }
  0xf4   : > { %v2059_v31 = vadd.f32 %v2058_v24, %v2010_v6  ;;  %v1962_v33 = vpop.f32.mrf.mxu0  ;;  %v5899_v6 = vld [vmem:[%s6856_s26 + $0x84] sm:$0xf]  ;;  %2489 = vmatpush.bf16.msra.mxu3 %v5366_v8 }
  0xf5   : > { %v1963_v34 = vadd.f32 %v1962_v33, %v7240_v23  ;;  %v7342_v29 = vor.u32 %v5899_v6, %v4651_v7  ;;  %v4982_v7 = vor.u32 %v5983_v46, %v4979_v49  ;;  %v4677_v46 = vld [vmem:[%s6856_s26 + $0xb8] sm:$0xf]  ;;  %v5909_v49 = vld [vmem:[%s6856_s26 + $0xd0] sm:$0xf0] }
  0xf6   : > { %v2107_v32 = vpop.f32.mrf.mxu3  ;;  %v2011_v36 = vpop.f32.mrf.mxu1  ;;  %v7387_v8 = vor.u32 %v5909_v49, %v4677_v46  ;;  %v5979_v46 = vld [vmem:[%s9129_s1 + $0x144] sm:$0xf] }
  0xf7   : > { %v7326_v43 = vadd.f32 %v2107_v32, %v2059_v31  ;;  %v2012_v48 = vadd.f32 %v2011_v36, %v1963_v34  ;;  %9261 = vst [vmem:[#allocation39_spill] sm:$0xff] %v7342_v29  ;;  %v6047_v36 = vld [vmem:[%s9129_s1 + $0x364] sm:$0xf]  ;;  %2342 = vmatpush.bf16.msra.mxu0 %v4982_v7 }
  0xfb   : > { %v2060_v10 = vpop.f32.mrf.mxu2 }
  0xfc   : > { %v2061_v12 = vadd.f32 %v2060_v10, %v2012_v48  ;;  %v1965_v24 = vpop.f32.mrf.mxu0  ;;  %v5238_v48 = vor.u32 %v6047_v36, %v5235_v44 }
  0xfd   : > { %v1966_v31 = vadd.f32 %v1965_v24, %v7240_v23 }
  0xfe   : > { %v2109_v14 = vpop.f32.mrf.mxu3  ;;  %v2014_v32 = vpop.f32.mrf.mxu1  ;;  %2440 = vmatpush.bf16.msra.mxu2 %v5238_v48  ;;  %v5906_v48 = vld [vmem:[%s6856_s26 + $0xbc] sm:$0xf] }
  0xff   : > { %v7347_v33 = vadd.f32 %v2109_v14, %v2061_v12  ;;  %v2015_v34 = vadd.f32 %v2014_v32, %v1966_v31  ;;  %2160 = vmatmul.bf16.gmra.mxu0 %v7340_v11  ;;  %v6015_v32 = vld [vmem:[%s9129_s1 + $0x264] sm:$0xf] }
 0x100   : > { %5585 = vmatmul.msk.bf16.gmra.mxu2 %vm1921_vm0, %v7344_v30 }
 0x101   : > { %2209 = vmatmul.bf16.gmra.mxu1 %v7342_v29 }
 0x103   : > { %2307 = vmatmul.bf16.gmra.mxu3 %v7005_v39  ;;  %v2063_v6 = vpop.f32.mrf.mxu2  ;;  %v7389_v39 = vor.u32 %v5906_v48, %v4679_v63  ;;  %v4963_v48 = vld [vmem:[%s9129_s1 + $0x150] sm:$0xf0]  ;;  %v6075_v63 = vld [vmem:[%s9129_s1 + $0x444] sm:$0xf] }
 0x104   : > { %v2064_v9 = vadd.f32 %v2063_v6, %v2015_v34  ;;  %v1967_v12 = vpop.f32.mrf.mxu0  ;;  %v5107_v34 = vld [vmem:[%s9129_s1 + $0x270] sm:$0xf0]  ;;  %v5910_v6 = vld [vmem:[%s6856_s26 + $0xd8] sm:$0xf0] }
 0x105   : > { %v1968_v14 = vadd.f32 %v1967_v12, %v7240_v23  ;;  %v5110_v44 = vor.u32 %v6015_v32, %v5107_v34  ;;  %9263 = vst [vmem:[#allocation41_spill] sm:$0xff] %v7389_v39  ;;  %v7391_v30 = vor.u32 %v5910_v6, %v4685_v4  ;;  %v5347_v4 = vld [vmem:[%s9129_s1 + $0x450] sm:$0xf0] }
 0x106   : > { %v2112_v10 = vpop.f32.mrf.mxu3  ;;  %v2016_v24 = vpop.f32.mrf.mxu1 }
 0x107   : > { %v7373_v31 = vadd.f32 %v2112_v10, %v2064_v9  ;;  %v2017_v36 = vadd.f32 %v2016_v24, %v1968_v14  ;;  %2391 = vmatpush.bf16.msra.mxu1 %v5110_v44  ;;  %9264 = vst [vmem:[#allocation42_spill] sm:$0xff] %v7391_v30  ;;  %v5219_v44 = vld [vmem:[%s9129_s1 + $0x350] sm:$0xf0] }
 0x10b   : > { %v2065_v7 = vpop.f32.mrf.mxu2 }
 0x10c   : > { %v2066_v9 = vadd.f32 %v2065_v7, %v2017_v36  ;;  %v1970_v12 = vpop.f32.mrf.mxu0  ;;  %v6043_v36 = vld [vmem:[%s9129_s1 + $0x344] sm:$0xf]  ;;  %v4966_v7 = vor.u32 %v5979_v46, %v4963_v48 }
 0x10d   : > { %v1971_v14 = vadd.f32 %v1970_v12, %v7240_v23  ;;  %v5222_v49 = vor.u32 %v6043_v36, %v5219_v44  ;;  %v6011_v46 = vld [vmem:[%s9129_s1 + $0x244] sm:$0xf] }
 0x10e   : > { %v2114_v10 = vpop.f32.mrf.mxu3  ;;  %v2019_v24 = vpop.f32.mrf.mxu1  ;;  %2343 = vmatpush.bf16.msra.mxu0 %v4966_v7 }
 0x10f   : > { %v7394_v32 = vadd.f32 %v2114_v10, %v2066_v9  ;;  %v2020_v34 = vadd.f32 %v2019_v24, %v1971_v14  ;;  %2165 = vmatmul.bf16.gmra.mxu0 %v7387_v8  ;;  %v5350_v9 = vor.u32 %v6075_v63, %v5347_v4  ;;  %2441 = vmatpush.bf16.msra.mxu2 %v5222_v49  ;;  %v4705_v4 = vld [vmem:[%s6856_s26 + $0xf0] sm:$0xf]  ;;  %v5913_v49 = vld [vmem:[%s6856_s26 + $0xf4] sm:$0xf] }
 0x110   : > { %5586 = vmatmul.msk.bf16.gmra.mxu2 %vm1921_vm0, %v7391_v30  ;;  %v5917_v30 = vld [vmem:[%s6856_s26 + $0x110] sm:$0xf0] }
 0x111   : > { %2214 = vmatmul.bf16.gmra.mxu1 %v7389_v39  ;;  %2490 = vmatpush.bf16.msra.mxu3 %v5350_v9 }
 0x113   : > { %2312 = vmatmul.bf16.gmra.mxu3 %v7043_v0  ;;  %v2068_v6 = vpop.f32.mrf.mxu2  ;;  %v4707_v0 = vld [vmem:[%s6856_s26 + $0x10c] sm:$0xf0] }
 0x114   : > { %v2069_v10 = vadd.f32 %v2068_v6, %v2020_v34  ;;  %v1972_v14 = vpop.f32.mrf.mxu0  ;;  %v5091_v34 = vld [vmem:[%s9129_s1 + $0x250] sm:$0xf0]  ;;  %v5916_v6 = vld [vmem:[%s6856_s26 + $0x108] sm:$0xf0]  ;;  %v7436_v29 = vor.u32 %v5913_v49, %v4707_v0  ;;  %v6039_v0 = vld [vmem:[%s9129_s1 + $0x324] sm:$0xf] }
 0x115   : > { %v1973_v24 = vadd.f32 %v1972_v14, %v7240_v23  ;;  %v5094_v63 = vor.u32 %v6011_v46, %v5091_v34  ;;  %v4713_v14 = vld [vmem:[%s6856_s26 + $0xf8] sm:$0xf]  ;;  %v7434_v9 = vor.u32 %v5916_v6, %v4705_v4  ;;  %v6071_v4 = vld [vmem:[%s9129_s1 + $0x424] sm:$0xf]  ;;  %v5331_v6 = vld [vmem:[%s9129_s1 + $0x430] sm:$0xf0] }
 0x116   : > { %v2117_v12 = vpop.f32.mrf.mxu3  ;;  %v2021_v36 = vpop.f32.mrf.mxu1  ;;  %9265 = vst [vmem:[#allocation43_spill] sm:$0xff] %v7436_v29  ;;  %v7438_v18 = vor.u32 %v5917_v30, %v4713_v14  ;;  %v5975_v30 = vld [vmem:[%s9129_s1 + $0x124] sm:$0xf] }
 0x117   : > { %v7420_v44 = vadd.f32 %v2117_v12, %v2069_v10  ;;  %v2022_v48 = vadd.f32 %v2021_v36, %v1973_v24  ;;  %2392 = vmatpush.bf16.msra.mxu1 %v5094_v63  ;;  %v4947_v63 = vld [vmem:[%s9129_s1 + $0x130] sm:$0xf0] }
 0x118   : > { %9266 = vst [vmem:[#allocation44_spill] sm:$0xff] %v7438_v18  ;;  %v4950_v14 = vor.u32 %v5975_v30, %v4947_v63  ;;  %v6007_v30 = vld [vmem:[%s9129_s1 + $0x224] sm:$0xf] }
 0x11a   : > { %2344 = vmatpush.bf16.msra.mxu0 %v4950_v14 }
 0x11b   : > { %v2070_v7 = vpop.f32.mrf.mxu2 }
 0x11c   : > { %v2071_v10 = vadd.f32 %v2070_v7, %v2022_v48  ;;  %v1975_v39 = vpop.f32.mrf.mxu0  ;;  %v5334_v7 = vor.u32 %v6071_v4, %v5331_v6  ;;  %v4733_v6 = vld [vmem:[%s6856_s26 + $0x128] sm:$0xf] }
 0x11d   : > { %v1976_v24 = vadd.f32 %v1975_v39, %v7240_v23  ;;  %v5203_v39 = vld [vmem:[%s9129_s1 + $0x330] sm:$0xf0] }
 0x11e   : > { %v2119_v12 = vpop.f32.mrf.mxu3  ;;  %v2024_v36 = vpop.f32.mrf.mxu1  ;;  %v5206_v48 = vor.u32 %v6039_v0, %v5203_v39  ;;  %2491 = vmatpush.bf16.msra.mxu3 %v5334_v7 }
 0x11f   : > { %v7441_v46 = vadd.f32 %v2119_v12, %v2071_v10  ;;  %v2025_v34 = vadd.f32 %v2024_v36, %v1976_v24  ;;  %2170 = vmatmul.bf16.gmra.mxu0 %v7434_v9 }
 0x120   : > { %5587 = vmatmul.msk.bf16.gmra.mxu2 %vm1921_vm0, %v7438_v18  ;;  %v5924_v18 = vld [vmem:[%s6856_s26 + $0x148] sm:$0xf0] }
 0x121   : > { %2219 = vmatmul.bf16.gmra.mxu1 %v7436_v29  ;;  %2442 = vmatpush.bf16.msra.mxu2 %v5206_v48  ;;  %v5920_v48 = vld [vmem:[%s6856_s26 + $0x12c] sm:$0xf] }
 0x123   : > { %2317 = vmatmul.bf16.gmra.mxu3 %v7081_v25  ;;  %v2073_v49 = vpop.f32.mrf.mxu2  ;;  %v4735_v25 = vld [vmem:[%s6856_s26 + $0x144] sm:$0xf0] }
 0x124   : > { %v2074_v10 = vadd.f32 %v2073_v49, %v2025_v34  ;;  %v1977_v24 = vpop.f32.mrf.mxu0  ;;  %v5075_v34 = vld [vmem:[%s9129_s1 + $0x230] sm:$0xf0]  ;;  %v5923_v49 = vld [vmem:[%s6856_s26 + $0x140] sm:$0xf0]  ;;  %v7483_v58 = vor.u32 %v5920_v48, %v4735_v25 }
 0x125   : > { %v1978_v36 = vadd.f32 %v1977_v24, %v7240_v23  ;;  %v5078_v4 = vor.u32 %v6007_v30, %v5075_v34  ;;  %v4741_v24 = vld [vmem:[%s6856_s26 + $0x130] sm:$0xf]  ;;  %v7481_v7 = vor.u32 %v5923_v49, %v4733_v6  ;;  %v5187_v25 = vld [vmem:[%s9129_s1 + $0x310] sm:$0xf0]  ;;  %v6067_v6 = vld [vmem:[%s9129_s1 + $0x404] sm:$0xf] }
 0x126   : > { %v2122_v12 = vpop.f32.mrf.mxu3  ;;  %v2026_v0 = vpop.f32.mrf.mxu1  ;;  %9267 = vst [vmem:[#allocation45_spill] sm:$0xff] %v7483_v58  ;;  %v7485_v50 = vor.u32 %v5924_v18, %v4741_v24  ;;  %v6035_v18 = vld [vmem:[%s9129_s1 + $0x304] sm:$0xf]  ;;  %v5315_v49 = vld [vmem:[%s9129_s1 + $0x410] sm:$0xf0] }
 0x127   : > { %v7467_v39 = vadd.f32 %v2122_v12, %v2074_v10  ;;  %v2027_v63 = vadd.f32 %v2026_v0, %v1978_v36  ;;  %2393 = vmatpush.bf16.msra.mxu1 %v5078_v4  ;;  %v4931_v4 = vld [vmem:[%s9129_s1 + $0x110] sm:$0xf0] }
 0x128   : > { %9268 = vst [vmem:[#allocation46_spill] sm:$0xff] %v7485_v50 }
 0x12b   : > { %v2075_v14 = vpop.f32.mrf.mxu2 }
 0x12c   : > { %v2076_v10 = vadd.f32 %v2075_v14, %v2027_v63  ;;  %v1980_v29 = vpop.f32.mrf.mxu0  ;;  %v5190_v63 = vor.u32 %v6035_v18, %v5187_v25  ;;  %v5318_v14 = vor.u32 %v6067_v6, %v5315_v49  ;;  %v4761_v49 = vld [vmem:[%s6856_s26 + $0x160] sm:$0xf] }
 0x12d   : > { %v1981_v36 = vadd.f32 %v1980_v29, %v7240_v23  ;;  %v5971_v29 = vld [vmem:[%s9129_s1 + $0x104] sm:$0xf] }
 0x12e   : > { %v2124_v12 = vpop.f32.mrf.mxu3  ;;  %v2029_v0 = vpop.f32.mrf.mxu1  ;;  %v4934_v24 = vor.u32 %v5971_v29, %v4931_v4  ;;  %2443 = vmatpush.bf16.msra.mxu2 %v5190_v63  ;;  %2492 = vmatpush.bf16.msra.mxu3 %v5318_v14  ;;  %v6003_v29 = vld [vmem:[%s9129_s1 + $0x204] sm:$0xf] }
 0x12f   : > { %v7488_v30 = vadd.f32 %v2124_v12, %v2076_v10  ;;  %v2030_v34 = vadd.f32 %v2029_v0, %v1981_v36  ;;  %2175 = vmatmul.bf16.gmra.mxu0 %v7481_v7  ;;  %v5927_v63 = vld [vmem:[%s6856_s26 + $0x164] sm:$0xf] }
 0x130   : > { %5588 = vmatmul.msk.bf16.gmra.mxu2 %vm1921_vm0, %v7485_v50  ;;  %2345 = vmatpush.bf16.msra.mxu0 %v4934_v24  ;;  %v5931_v50 = vld [vmem:[%s6856_s26 + $0x180] sm:$0xf0] }
 0x131   : > { %2224 = vmatmul.bf16.gmra.mxu1 %v7483_v58 }
 0x133   : > { %2322 = vmatmul.bf16.gmra.mxu3 %v7119_v53  ;;  %v2078_v48 = vpop.f32.mrf.mxu2  ;;  %v4763_v53 = vld [vmem:[%s6856_s26 + $0x17c] sm:$0xf0] }
 0x134   : > { %v2079_v10 = vadd.f32 %v2078_v48, %v2030_v34  ;;  %v1982_v36 = vpop.f32.mrf.mxu0  ;;  %v5059_v34 = vld [vmem:[%s9129_s1 + $0x210] sm:$0xf0]  ;;  %v5930_v48 = vld [vmem:[%s6856_s26 + $0x178] sm:$0xf0]  ;;  %v7530_v47 = vor.u32 %v5927_v63, %v4763_v53  ;;  %v4921_v53 = vld [vmem:[%s9129_s1 + $0xe8] sm:$0xf] }
 0x135   : > { %v1983_v0 = vadd.f32 %v1982_v36, %v7240_v23  ;;  %v5062_v6 = vor.u32 %v6003_v29, %v5059_v34  ;;  %v4769_v36 = vld [vmem:[%s6856_s26 + $0x168] sm:$0xf]  ;;  %v7528_v14 = vor.u32 %v5930_v48, %v4761_v49  ;;  %v6002_v48 = vld [vmem:[%s9129_s1 + $0x1f4] sm:$0xf0] }
 0x136   : > { %v2127_v12 = vpop.f32.mrf.mxu3  ;;  %v2031_v18 = vpop.f32.mrf.mxu1  ;;  %9270 = vst [vmem:[#allocation48_spill] sm:$0xff] %v7530_v47  ;;  %v7532_v38 = vor.u32 %v5931_v50, %v4769_v36  ;;  %v5970_v50 = vld [vmem:[%s9129_s1 + $0xf4] sm:$0xf0]  ;;  %v5049_v49 = vld [vmem:[%s9129_s1 + $0x1e8] sm:$0xf] }
 0x137   : > { %v7514_v25 = vadd.f32 %v2127_v12, %v2079_v10  ;;  %v2032_v4 = vadd.f32 %v2031_v18, %v1983_v0  ;;  %2394 = vmatpush.bf16.msra.mxu1 %v5062_v6  ;;  %9269 = vst [vmem:[#allocation47_spill] sm:$0xff] %v7528_v14  ;;  %v5555_v6 = vld [vmem:[%s9129_s1 + $0x5f0] sm:$0xf0] }
 0x138   : > { %9271 = vst [vmem:[#allocation49_spill] sm:$0xff] %v7532_v38 }
 0x13b   : > { %v2080_v24 = vpop.f32.mrf.mxu2 }
 0x13c   : > { %v2081_v10 = vadd.f32 %v2080_v24, %v2032_v4  ;;  %v1985_v58 = vpop.f32.mrf.mxu0  ;;  %v4922_v4 = vor.u32 %v5970_v50, %v4921_v53  ;;  %v5050_v24 = vor.u32 %v6002_v48, %v5049_v49  ;;  %v4789_v48 = vld [vmem:[%s6856_s26 + $0x198] sm:$0xf] }
 0x13d   : > { %v1986_v0 = vadd.f32 %v1985_v58, %v7240_v23  ;;  %v6127_v58 = vld [vmem:[%s9129_s1 + $0x5e4] sm:$0xf] }
 0x13e   : > { %v2129_v12 = vpop.f32.mrf.mxu3  ;;  %v2034_v18 = vpop.f32.mrf.mxu1  ;;  %v5558_v36 = vor.u32 %v6127_v58, %v5555_v6  ;;  %2632 = vmatpush.bf16.msrb.mxu2 %v4922_v4  ;;  %2681 = vmatpush.bf16.msrb.mxu3 %v5050_v24  ;;  %v6131_v58 = vld [vmem:[%s9129_s1 + $0x604] sm:$0xf]  ;;  %v5934_v4 = vld [vmem:[%s6856_s26 + $0x19c] sm:$0xf] }
 0x13f   : > { %v7535_v29 = vadd.f32 %v2129_v12, %v2081_v10  ;;  %v2035_v34 = vadd.f32 %v2034_v18, %v1986_v0  ;;  %2180 = vmatmul.bf16.gmra.mxu0 %v7528_v14 }
 0x140   : > { %5589 = vmatmul.msk.bf16.gmra.mxu2 %vm1921_vm0, %v7532_v38  ;;  %2534 = vmatpush.bf16.msrb.mxu0 %v5558_v36  ;;  %v5938_v38 = vld [vmem:[%s6856_s26 + $0x1b8] sm:$0xf0] }
 0x141   : > { %2229 = vmatmul.bf16.gmra.mxu1 %v7530_v47 }
 0x143   : > { %2327 = vmatmul.bf16.gmra.mxu3 %v7157_v15  ;;  %v2083_v63 = vpop.f32.mrf.mxu2  ;;  %v4791_v15 = vld [vmem:[%s6856_s26 + $0x1b4] sm:$0xf0] }
 0x144   : > { %v2084_v10 = vadd.f32 %v2083_v63, %v2035_v34  ;;  %v1987_v0 = vpop.f32.mrf.mxu0  ;;  %v5571_v34 = vld [vmem:[%s9129_s1 + $0x610] sm:$0xf0]  ;;  %v7577_v37 = vor.u32 %v5934_v4, %v4791_v15  ;;  %v4905_v15 = vld [vmem:[%s9129_s1 + $0xc8] sm:$0xf] }
 0x145   : > { %v1988_v18 = vadd.f32 %v1987_v0, %v7240_v23  ;;  %v5574_v49 = vor.u32 %v6131_v58, %v5571_v34  ;;  %v5937_v63 = vld [vmem:[%s6856_s26 + $0x1b0] sm:$0xf0]  ;;  %v4797_v0 = vld [vmem:[%s6856_s26 + $0x1a0] sm:$0xf]  ;;  %s6384_s26 = scalar_lea.hbm %s6383_s13, 128 }
 0x146   : > { %v2132_v12 = vpop.f32.mrf.mxu3  ;;  %v2036_v53 = vpop.f32.mrf.mxu1  ;;  %v7575_v24 = vor.u32 %v5937_v63, %v4789_v48  ;;  %9273 = vst [vmem:[#allocation51_spill] sm:$0xff] %v7577_v37  ;;  %v7579_v62 = vor.u32 %v5938_v38, %v4797_v0  ;;  %v6123_v38 = vld [vmem:[%s9129_s1 + $0x5c4] sm:$0xf]  ;;  %v5033_v48 = vld [vmem:[%s9129_s1 + $0x1c8] sm:$0xf]  ;;  %p6385_p4 = scmp.ne.s32.totalorder %s6383_s13, %s6384_s26 }
 0x147   : > { %v7561_v50 = vadd.f32 %v2132_v12, %v2084_v10  ;;  %v2037_v6 = vadd.f32 %v2036_v53, %v1988_v18  ;;  %2590 = vmatpush.bf16.msrb.mxu1 %v5574_v49  ;;  %v5539_v49 = vld [vmem:[%s9129_s1 + $0x5d0] sm:$0xf0]  ;;  %v5998_v63 = vld [vmem:[%s9129_s1 + $0x1d4] sm:$0xf0] }
 0x148   : > { %9272 = vst [vmem:[#allocation50_spill] sm:$0xff] %v7575_v24  ;;  %v5542_v0 = vor.u32 %v6123_v38, %v5539_v49  ;;  %p6386_p8 = pnand %p6385_p4, %p6621_p3 }
 0x149   : > { %9274 = vst [vmem:[#allocation52_spill] sm:$0xff] %v7579_v62 }
 0x14a   : > { %2535 = vmatpush.bf16.msrb.mxu0 %v5542_v0  ;;  %p6387_p11 = pneg %p6386_p8 }
 0x14b   : > { %v2085_v36 = vpop.f32.mrf.mxu2 }
 0x14c   : > { %v2086_v10 = vadd.f32 %v2085_v36, %v2037_v6  ;;  %v1990_v47 = vpop.f32.mrf.mxu0  ;;  %v5034_v36 = vor.u32 %v5998_v63, %v5033_v48 }
 0x14d   : > { %v1991_v18 = vadd.f32 %v1990_v47, %v7240_v23  ;;  %v5966_v47 = vld [vmem:[%s9129_s1 + $0xd4] sm:$0xf0] }
 0x14e   : > { %v2134_v12 = vpop.f32.mrf.mxu3  ;;  %v2039_v53 = vpop.f32.mrf.mxu1  ;;  %v4906_v6 = vor.u32 %v5966_v47, %v4905_v15  ;;  %2682 = vmatpush.bf16.msrb.mxu3 %v5034_v36 }
 0x14f   : > { %v7582_v58 = vadd.f32 %v2134_v12, %v2086_v10  ;;  %v2040_v34 = vadd.f32 %v2039_v53, %v1991_v18  ;;  %2185 = vmatmul.bf16.gmra.mxu0 %v7575_v24 }
 0x150   : > { %5590 = vmatmul.msk.bf16.gmra.mxu2 %vm1921_vm0, %v7579_v62 }
 0x151   : > { %2234 = vmatmul.bf16.gmra.mxu1 %v7577_v37  ;;  %2633 = vmatpush.bf16.msrb.mxu2 %v4906_v6 }
 0x153   : > { %2332 = vmatmul.bf16.gmra.mxu3 %v7201_v59  ;;  %v2088_v4 = vpop.f32.mrf.mxu2 }
 0x154   : > { %v2089_v10 = vadd.f32 %v2088_v4, %v2040_v34  ;;  %v1992_v18 = vpop.f32.mrf.mxu0 }
 0x155   : > { %v1993_v53 = vadd.f32 %v1992_v18, %v7240_v23  ;;  %v5523_v23 = vld [vmem:[%s9129_s1 + $0x5b0] sm:$0xf0] }
 0x156   : > { %v2137_v12 = vpop.f32.mrf.mxu3  ;;  %v2041_v15 = vpop.f32.mrf.mxu1 }
 0x157   : > { %v7608_v47 = vadd.f32 %v2137_v12, %v2089_v10  ;;  %v2042_v59 = vadd.f32 %v2041_v15, %v1993_v53 }
 0x15b   : > { %v2090_v62 = vpop.f32.mrf.mxu2 }
 0x15c   : > { %v2091_v37 = vadd.f32 %v2090_v62, %v2042_v59  ;;  %v2151_v61 = vpop.f32.mrf.mxu0  ;;  %v4889_v59 = vld [vmem:[%s9129_s1 + $0xa8] sm:$0xf] }
 0x15d   : > { %v2152_v60 = vadd.f32 %v2151_v61, %v7279_v13  ;;  %v5962_v61 = vld [vmem:[%s9129_s1 + $0xb4] sm:$0xf0] }
 0x15e   : > { %v2139_v24 = vpop.f32.mrf.mxu3  ;;  %v2200_v38 = vpop.f32.mrf.mxu1  ;;  %v4890_v62 = vor.u32 %v5962_v61, %v4889_v59  ;;  %v5994_v13 = vld [vmem:[%s9129_s1 + $0x1b4] sm:$0xf0] }
 0x15f   : > { %v7611_v49 = vadd.f32 %v2139_v24, %v2091_v37  ;;  %v2201_v34 = vadd.f32 %v2200_v38, %v2152_v60  ;;  %2346 = vmatmul.bf16.vlgmr.msra.gmra.mxu0 %v6913_v51  ;;  %v6119_v60 = vld [vmem:[%s9129_s1 + $0x5a4] sm:$0xf]  ;;  %v5017_v37 = vld [vmem:[%s9129_s1 + $0x1a8] sm:$0xf] }
 0x160   : > { %2444 = vmatmul.bf16.vlgmr.msra.gmra.mxu2 %v6923_v55  ;;  %v5526_v6 = vor.u32 %v6119_v60, %v5523_v23  ;;  %v5018_v48 = vor.u32 %v5994_v13, %v5017_v37  ;;  %v6115_v37 = vld [vmem:[%s9129_s1 + $0x584] sm:$0xf] }
 0x161   : > { %2395 = vmatmul.bf16.vlgmr.msra.gmra.mxu1 %v6915_v52  ;;  %2634 = vmatpush.bf16.msrb.mxu2 %v4890_v62 }
 0x162   : > { %2536 = vmatpush.bf16.msrb.mxu0 %v5526_v6  ;;  %2683 = vmatpush.bf16.msrb.mxu3 %v5018_v48  ;;  %v5001_v6 = vld [vmem:[%s9129_s1 + $0x188] sm:$0xf]  ;;  %v5990_v48 = vld [vmem:[%s9129_s1 + $0x194] sm:$0xf0] }
 0x163   : > { %2493 = vmatmul.bf16.vlgmr.msra.gmra.mxu3 %v7248_v35  ;;  %v2249_v24 = vpop.f32.mrf.mxu2 }
 0x164   : > { %v2250_v63 = vadd.f32 %v2249_v24, %v2201_v34  ;;  %v2153_v0 = vpop.f32.mrf.mxu0  ;;  %v5507_v24 = vld [vmem:[%s9129_s1 + $0x590] sm:$0xf0] }
 0x165   : > { %v2154_v36 = vadd.f32 %v2153_v0, %v7300_v5  ;;  %v4873_v5 = vld [vmem:[%s9129_s1 + $0x88] sm:$0xf]  ;;  %v5510_v0 = vor.u32 %v6115_v37, %v5507_v24 }
 0x166   : > { %v7635_v4 = vpop.f32.mrf.mxu3  ;;  %v2202_v10 = vpop.f32.mrf.mxu1  ;;  %v3318_v60 = vmax.f32 %v2250_v63, 0.0 }
 0x167   : > { %v2203_v12 = vadd.f32 %v2202_v10, %v2154_v36  ;;  %v5002_v36 = vor.u32 %v5990_v48, %v5001_v6  ;;  %2537 = vmatpush.bf16.msrb.mxu0 %v5510_v0  ;;  %v6111_v48 = vld [vmem:[%s9129_s1 + $0x564] sm:$0xf]  ;;  %v5491_v0 = vld [vmem:[%s9129_s1 + $0x570] sm:$0xf0] }
 0x169   : > { %2684 = vmatpush.bf16.msrb.mxu3 %v5002_v36  ;;  %v4985_v36 = vld [vmem:[%s9129_s1 + $0x168] sm:$0xf] }
 0x16b   : > { %v2251_v18 = vpop.f32.mrf.mxu2 }
 0x16c   : > { %v2252_v53 = vadd.f32 %v2251_v18, %v2203_v12  ;;  %v2156_v38 = vpop.f32.mrf.mxu0 }
 0x16d   : > { %v2157_v59 = vadd.f32 %v2156_v38, %v7326_v43  ;;  %v5958_v43 = vld [vmem:[%s9129_s1 + $0x94] sm:$0xf0] }
 0x16e   : > { %v7638_v15 = vpop.f32.mrf.mxu3  ;;  %v2205_v61 = vpop.f32.mrf.mxu1  ;;  %v3322_v34 = vmax.f32 %v2252_v53, 0.0  ;;  %v4874_v13 = vor.u32 %v5958_v43, %v4873_v5 }
 0x16f   : > { %v2206_v23 = vadd.f32 %v2205_v61, %v2157_v59  ;;  %2351 = vmatmul.bf16.gmra.mxu0 %v6969_v19 }
 0x170   : > { %v7642_v62 = vpack.c.bf16 %v3322_v34, %v3318_v60  ;;  %2449 = vmatmul.bf16.gmra.mxu2 %v6973_v21 }
 0x171   : > { %2400 = vmatmul.bf16.gmra.mxu1 %v6971_v20  ;;  %2635 = vmatpush.bf16.msrb.mxu2 %v4874_v13  ;;  %v4857_v13 = vld [vmem:[%s9129_s1 + $0x68] sm:$0xf] }
 0x172   : > { %9275 = vst [vmem:[#allocation53_spill] sm:$0xff] %v7642_v62 }
 0x173   : > { %2498 = vmatmul.bf16.gmra.mxu3 %v7293_v45  ;;  %v2254_v63 = vpop.f32.mrf.mxu2 }
 0x174   : > { %v2255_v10 = vadd.f32 %v2254_v63, %v2206_v23  ;;  %v2158_v18 = vpop.f32.mrf.mxu0 }
 0x175   : > { %v2159_v53 = vadd.f32 %v2158_v18, %v7347_v33 }
 0x176   : > { %v7665_v12 = vpop.f32.mrf.mxu3  ;;  %v2207_v38 = vpop.f32.mrf.mxu1  ;;  %v3326_v24 = vmax.f32 %v2255_v10, 0.0  ;;  %v5986_v10 = vld [vmem:[%s9129_s1 + $0x174] sm:$0xf0] }
 0x177   : > { %v2208_v59 = vadd.f32 %v2207_v38, %v2159_v53  ;;  %v5494_v53 = vor.u32 %v6111_v48, %v5491_v0  ;;  %v4986_v38 = vor.u32 %v5986_v10, %v4985_v36 }
 0x179   : > { %2538 = vmatpush.bf16.msrb.mxu0 %v5494_v53  ;;  %2685 = vmatpush.bf16.msrb.mxu3 %v4986_v38  ;;  %v4969_v53 = vld [vmem:[%s9129_s1 + $0x148] sm:$0xf]  ;;  %v5982_v38 = vld [vmem:[%s9129_s1 + $0x154] sm:$0xf0] }
 0x17b   : > { %v2256_v61 = vpop.f32.mrf.mxu2 }
 0x17c   : > { %v2257_v60 = vadd.f32 %v2256_v61, %v2208_v59  ;;  %v2161_v5 = vpop.f32.mrf.mxu0 }
 0x17d   : > { %v2162_v43 = vadd.f32 %v2161_v5, %v7373_v31  ;;  %v5954_v31 = vld [vmem:[%s9129_s1 + $0x74] sm:$0xf0] }
 0x17e   : > { %v7668_v34 = vpop.f32.mrf.mxu3  ;;  %v2210_v37 = vpop.f32.mrf.mxu1  ;;  %v3330_v23 = vmax.f32 %v2257_v60, 0.0  ;;  %v4858_v63 = vor.u32 %v5954_v31, %v4857_v13 }
 0x17f   : > { %v2211_v6 = vadd.f32 %v2210_v37, %v2162_v43  ;;  %2356 = vmatmul.bf16.gmra.mxu0 %v7007_v40 }
 0x180   : > { %2454 = vmatmul.bf16.gmra.mxu2 %v7011_v42  ;;  %v7674_v33 = vpack.c.bf16 %v3330_v23, %v3326_v24 }
 0x181   : > { %2405 = vmatmul.bf16.gmra.mxu1 %v7009_v41  ;;  %2636 = vmatpush.bf16.msrb.mxu2 %v4858_v63  ;;  %v4841_v63 = vld [vmem:[%s9129_s1 + $0x48] sm:$0xf] }
 0x182   : > { %9276 = vst [vmem:[#allocation54_spill] sm:$0xff] %v7674_v33 }
 0x183   : > { %2503 = vmatmul.bf16.gmra.mxu3 %v7340_v11  ;;  %v2259_v18 = vpop.f32.mrf.mxu2 }
 0x184   : > { %v2260_v59 = vadd.f32 %v2259_v18, %v2211_v6  ;;  %v2163_v60 = vpop.f32.mrf.mxu0  ;;  %v5475_v18 = vld [vmem:[%s9129_s1 + $0x550] sm:$0xf0] }
 0x185   : > { %v2164_v5 = vadd.f32 %v2163_v60, %v7394_v32 }
 0x186   : > { %v7695_v61 = vpop.f32.mrf.mxu3  ;;  %v2212_v43 = vpop.f32.mrf.mxu1  ;;  %v3334_v0 = vmax.f32 %v2260_v59, 0.0 }
 0x187   : > { %v2213_v37 = vadd.f32 %v2212_v43, %v2164_v5  ;;  %v4970_v5 = vor.u32 %v5982_v38, %v4969_v53 }
 0x189   : > { %2686 = vmatpush.bf16.msrb.mxu3 %v4970_v5  ;;  %v5978_v5 = vld [vmem:[%s9129_s1 + $0x134] sm:$0xf0] }
 0x18b   : > { %v2261_v24 = vpop.f32.mrf.mxu2 }
 0x18c   : > { %v2262_v23 = vadd.f32 %v2261_v24, %v2213_v37  ;;  %v2166_v31 = vpop.f32.mrf.mxu0 }
 0x18d   : > { %v2167_v33 = vadd.f32 %v2166_v31, %v7420_v44  ;;  %v5950_v44 = vld [vmem:[%s9129_s1 + $0x54] sm:$0xf0] }
 0x18e   : > { %v7698_v13 = vpop.f32.mrf.mxu3  ;;  %v2215_v48 = vpop.f32.mrf.mxu1  ;;  %v3338_v6 = vmax.f32 %v2262_v23, 0.0  ;;  %v4842_v10 = vor.u32 %v5950_v44, %v4841_v63 }
 0x18f   : > { %v2216_v36 = vadd.f32 %v2215_v48, %v2167_v33  ;;  %2361 = vmatmul.bf16.gmra.mxu0 %v7045_v1  ;;  %v6107_v33 = vld [vmem:[%s9129_s1 + $0x544] sm:$0xf] }
 0x190   : > { %2459 = vmatmul.bf16.gmra.mxu2 %v7049_v3  ;;  %v7704_v32 = vpack.c.bf16 %v3338_v6, %v3334_v0  ;;  %v5478_v60 = vor.u32 %v6107_v33, %v5475_v18 }
 0x191   : > { %2410 = vmatmul.bf16.gmra.mxu1 %v7047_v2  ;;  %2637 = vmatpush.bf16.msrb.mxu2 %v4842_v10  ;;  %v4825_v10 = vld [vmem:[%s9129_s1 + $0x28] sm:$0xf] }
 0x192   : > { %9277 = vst [vmem:[#allocation55_spill] sm:$0xff] %v7704_v32  ;;  %2539 = vmatpush.bf16.msrb.mxu0 %v5478_v60  ;;  %v4953_v60 = vld [vmem:[%s9129_s1 + $0x128] sm:$0xf] }
 0x193   : > { %2508 = vmatmul.bf16.gmra.mxu3 %v7387_v8  ;;  %v2264_v59 = vpop.f32.mrf.mxu2 }
 0x194   : > { %v2265_v43 = vadd.f32 %v2264_v59, %v2216_v36  ;;  %v2168_v24 = vpop.f32.mrf.mxu0  ;;  %v5459_v59 = vld [vmem:[%s9129_s1 + $0x530] sm:$0xf0] }
 0x195   : > { %v2169_v23 = vadd.f32 %v2168_v24, %v7441_v46 }
 0x196   : > { %v7725_v37 = vpop.f32.mrf.mxu3  ;;  %v2217_v31 = vpop.f32.mrf.mxu1  ;;  %v3342_v18 = vmax.f32 %v2265_v43, 0.0 }
 0x197   : > { %v2218_v48 = vadd.f32 %v2217_v31, %v2169_v23  ;;  %v4954_v23 = vor.u32 %v5978_v5, %v4953_v60 }
 0x199   : > { %2687 = vmatpush.bf16.msrb.mxu3 %v4954_v23  ;;  %v5974_v23 = vld [vmem:[%s9129_s1 + $0x114] sm:$0xf0] }
 0x19b   : > { %v2266_v0 = vpop.f32.mrf.mxu2 }
 0x19c   : > { %v2267_v6 = vadd.f32 %v2266_v0, %v2218_v48  ;;  %v2171_v44 = vpop.f32.mrf.mxu0 }
 0x19d   : > { %v2172_v32 = vadd.f32 %v2171_v44, %v7467_v39  ;;  %v5946_v39 = vld [vmem:[%s9129_s1 + $0x34] sm:$0xf0] }
 0x19e   : > { %v7728_v63 = vpop.f32.mrf.mxu3  ;;  %v2220_v33 = vpop.f32.mrf.mxu1  ;;  %v3346_v36 = vmax.f32 %v2267_v6, 0.0  ;;  %v4826_v38 = vor.u32 %v5946_v39, %v4825_v10 }
 0x19f   : > { %v2221_v53 = vadd.f32 %v2220_v33, %v2172_v32  ;;  %2366 = vmatmul.bf16.gmra.mxu0 %v7083_v26  ;;  %v6103_v32 = vld [vmem:[%s9129_s1 + $0x524] sm:$0xf] }
 0x1a0   : > { %2464 = vmatmul.bf16.gmra.mxu2 %v7087_v28  ;;  %v7734_v46 = vpack.c.bf16 %v3346_v36, %v3342_v18  ;;  %v5462_v24 = vor.u32 %v6103_v32, %v5459_v59 }
 0x1a1   : > { %2415 = vmatmul.bf16.gmra.mxu1 %v7085_v27  ;;  %2638 = vmatpush.bf16.msrb.mxu2 %v4826_v38  ;;  %v4809_v38 = vld [vmem:[%s9129_s1 + $0x8] sm:$0xf] }
 0x1a2   : > { %9278 = vst [vmem:[#allocation56_spill] sm:$0xff] %v7734_v46  ;;  %2540 = vmatpush.bf16.msrb.mxu0 %v5462_v24  ;;  %v4937_v24 = vld [vmem:[%s9129_s1 + $0x108] sm:$0xf] }
 0x1a3   : > { %2513 = vmatmul.bf16.gmra.mxu3 %v7434_v9  ;;  %v2269_v43 = vpop.f32.mrf.mxu2 }
 0x1a4   : > { %v2270_v31 = vadd.f32 %v2269_v43, %v2221_v53  ;;  %v2173_v0 = vpop.f32.mrf.mxu0  ;;  %v5443_v43 = vld [vmem:[%s9129_s1 + $0x510] sm:$0xf0] }
 0x1a5   : > { %v2174_v6 = vadd.f32 %v2173_v0, %v7488_v30 }
 0x1a6   : > { %v7755_v48 = vpop.f32.mrf.mxu3  ;;  %v2222_v44 = vpop.f32.mrf.mxu1  ;;  %v3350_v59 = vmax.f32 %v2270_v31, 0.0 }
 0x1a7   : > { %v2223_v33 = vadd.f32 %v2222_v44, %v2174_v6  ;;  %v4938_v6 = vor.u32 %v5974_v23, %v4937_v24 }
 0x1a9   : > { %2688 = vmatpush.bf16.msrb.mxu3 %v4938_v6  ;;  %v6130_v6 = vld [vmem:[%s9129_s1 + $0x5f4] sm:$0xf0] }
 0x1ab   : > { %v2271_v18 = vpop.f32.mrf.mxu2 }
 0x1ac   : > { %v2272_v36 = vadd.f32 %v2271_v18, %v2223_v33  ;;  %v2176_v39 = vpop.f32.mrf.mxu0 }
 0x1ad   : > { %v2177_v46 = vadd.f32 %v2176_v39, %v7514_v25  ;;  %v5942_v25 = vld [vmem:[%s9129_s1 + $0x14] sm:$0xf0] }
 0x1ae   : > { %v7758_v10 = vpop.f32.mrf.mxu3  ;;  %v2225_v32 = vpop.f32.mrf.mxu1  ;;  %v3354_v53 = vmax.f32 %v2272_v36, 0.0  ;;  %v4810_v5 = vor.u32 %v5942_v25, %v4809_v38 }
 0x1af   : > { %v2226_v60 = vadd.f32 %v2225_v32, %v2177_v46  ;;  %2371 = vmatmul.bf16.gmra.mxu0 %v7121_v54  ;;  %v6099_v46 = vld [vmem:[%s9129_s1 + $0x504] sm:$0xf] }
 0x1b0   : > { %2469 = vmatmul.bf16.gmra.mxu2 %v7125_v57  ;;  %v7764_v30 = vpack.c.bf16 %v3354_v53, %v3350_v59  ;;  %v5446_v0 = vor.u32 %v6099_v46, %v5443_v43 }
 0x1b1   : > { %2420 = vmatmul.bf16.gmra.mxu1 %v7123_v56  ;;  %2639 = vmatpush.bf16.msrb.mxu2 %v4810_v5  ;;  %v5433_v5 = vld [vmem:[%s9129_s1 + $0x4e8] sm:$0xf] }
 0x1b2   : > { %9279 = vst [vmem:[#allocation57_spill] sm:$0xff] %v7764_v30  ;;  %2541 = vmatpush.bf16.msrb.mxu0 %v5446_v0  ;;  %v5561_v0 = vld [vmem:[%s9129_s1 + $0x5e8] sm:$0xf] }
 0x1b3   : > { %2518 = vmatmul.bf16.gmra.mxu3 %v7481_v7  ;;  %v2274_v31 = vpop.f32.mrf.mxu2 }
 0x1b4   : > { %v2275_v44 = vadd.f32 %v2274_v31, %v2226_v60  ;;  %v2178_v18 = vpop.f32.mrf.mxu0  ;;  %v6034_v31 = vld [vmem:[%s9129_s1 + $0x2f4] sm:$0xf0] }
 0x1b5   : > { %v2179_v36 = vadd.f32 %v2178_v18, %v7535_v29 }
 0x1b6   : > { %v7785_v33 = vpop.f32.mrf.mxu3  ;;  %v2227_v39 = vpop.f32.mrf.mxu1  ;;  %v3358_v43 = vmax.f32 %v2275_v44, 0.0 }
 0x1b7   : > { %v2228_v32 = vadd.f32 %v2227_v39, %v2179_v36  ;;  %v5562_v36 = vor.u32 %v6130_v6, %v5561_v0 }
 0x1b9   : > { %2877 = vmatpush.bf16.msra.mxu3 %v5562_v36  ;;  %v9282_v36 = vld [vmem:[#allocation32_spill] sm:$0xff] }
 0x1bb   : > { %v2276_v59 = vpop.f32.mrf.mxu2 }
 0x1bc   : > { %v2277_v53 = vadd.f32 %v2276_v59, %v2228_v32  ;;  %v2181_v25 = vpop.f32.mrf.mxu0 }
 0x1bd   : > { %v2182_v30 = vadd.f32 %v2181_v25, %v7561_v50  ;;  %v6098_v50 = vld [vmem:[%s9129_s1 + $0x4f4] sm:$0xf0] }
 0x1be   : > { %v7788_v38 = vpop.f32.mrf.mxu3  ;;  %v2230_v46 = vpop.f32.mrf.mxu1  ;;  %v3362_v60 = vmax.f32 %v2277_v53, 0.0  ;;  %v5434_v23 = vor.u32 %v6098_v50, %v5433_v5 }
 0x1bf   : > { %v2231_v24 = vadd.f32 %v2230_v46, %v2182_v30  ;;  %2376 = vmatmul.bf16.gmra.mxu0 %v7159_v16  ;;  %v5177_v30 = vld [vmem:[%s9129_s1 + $0x2e8] sm:$0xf] }
 0x1c0   : > { %2474 = vmatmul.bf16.gmra.mxu2 %v7163_v22  ;;  %v7794_v29 = vpack.c.bf16 %v3362_v60, %v3358_v43  ;;  %v5178_v18 = vor.u32 %v6034_v31, %v5177_v30  ;;  %v5305_v46 = vld [vmem:[%s9129_s1 + $0x3e8] sm:$0xf]  ;;  %v6066_v43 = vld [vmem:[%s9129_s1 + $0x3f4] sm:$0xf0] }
 0x1c1   : > { %2425 = vmatmul.bf16.gmra.mxu1 %v7161_v17  ;;  %2828 = vmatpush.bf16.msra.mxu2 %v5434_v23  ;;  %v5306_v5 = vor.u32 %v6066_v43, %v5305_v46  ;;  %v5417_v46 = vld [vmem:[%s9129_s1 + $0x4c8] sm:$0xf] }
 0x1c2   : > { %9280 = vst [vmem:[#allocation58_spill] sm:$0xff] %v7794_v29  ;;  %2730 = vmatpush.bf16.msra.mxu0 %v5178_v18  ;;  %v9281_v18 = vld [vmem:[#allocation31_spill] sm:$0xff] }
 0x1c3   : > { %2523 = vmatmul.bf16.gmra.mxu3 %v7528_v14  ;;  %v2279_v44 = vpop.f32.mrf.mxu2  ;;  %2779 = vmatpush.bf16.msra.mxu1 %v5306_v5  ;;  %v5545_v5 = vld [vmem:[%s9129_s1 + $0x5c8] sm:$0xf]  ;;  %v6062_v29 = vld [vmem:[%s9129_s1 + $0x3d4] sm:$0xf0]  ;;  %v9287_v14 = vld [vmem:[#allocation36_spill] sm:$0xff] }
 0x1c4   : > { %v2280_v39 = vadd.f32 %v2279_v44, %v2231_v24  ;;  %v2183_v59 = vpop.f32.mrf.mxu0 }
 0x1c5   : > { %v2184_v53 = vadd.f32 %v2183_v59, %v7582_v58  ;;  %v9283_v59 = vld [vmem:[#allocation33_spill] sm:$0xff] }
 0x1c6   : > { %v7815_v32 = vpop.f32.mrf.mxu3  ;;  %v2232_v25 = vpop.f32.mrf.mxu1  ;;  %v3366_v0 = vmax.f32 %v2280_v39, 0.0  ;;  %v5161_v39 = vld [vmem:[%s9129_s1 + $0x2c8] sm:$0xf] }
 0x1c7   : > { %v2233_v60 = vadd.f32 %v2232_v25, %v2184_v53  ;;  %v9285_v25 = vld [vmem:[#allocation50_spill] sm:$0xff] }
 0x1cb   : > { %v2281_v24 = vpop.f32.mrf.mxu2 }
 0x1cc   : > { %v2282_v50 = vadd.f32 %v2281_v24, %v2233_v60  ;;  %v2186_v23 = vpop.f32.mrf.mxu0  ;;  %v6030_v60 = vld [vmem:[%s9129_s1 + $0x2d4] sm:$0xf0] }
 0x1cd   : > { %v2187_v58 = vadd.f32 %v2186_v23, %v7608_v47  ;;  %v6094_v47 = vld [vmem:[%s9129_s1 + $0x4d4] sm:$0xf0]  ;;  %v5162_v23 = vor.u32 %v6030_v60, %v5161_v39 }
 0x1ce   : > { %v7824_v30 = vpop.f32.mrf.mxu3  ;;  %v2235_v31 = vpop.f32.mrf.mxu1  ;;  %v3370_v6 = vmax.f32 %v2282_v50, 0.0  ;;  %v5418_v43 = vor.u32 %v6094_v47, %v5417_v46  ;;  %v6126_v24 = vld [vmem:[%s9129_s1 + $0x5d4] sm:$0xf0] }
 0x1cf   : > { %v2236_v44 = vadd.f32 %v2235_v31, %v2187_v58  ;;  %2381 = vmatmul.bf16.gmra.mxu0 %v9281_v18  ;;  %v5546_v58 = vor.u32 %v6126_v24, %v5545_v5 }
 0x1d0   : > { %2479 = vmatmul.bf16.gmra.mxu2 %v9283_v59  ;;  %v7830_v53 = vpack.c.bf16 %v3370_v6, %v3366_v0  ;;  %2731 = vmatpush.bf16.msra.mxu0 %v5162_v23 }
 0x1d1   : > { %2430 = vmatmul.bf16.gmra.mxu1 %v9282_v36  ;;  %2829 = vmatpush.bf16.msra.mxu2 %v5418_v43  ;;  %v9286_v36 = vld [vmem:[#allocation35_spill] sm:$0xff] }
 0x1d2   : > { %9284 = vst [vmem:[#allocation59_spill] sm:$0xff] %v7830_v53  ;;  %2878 = vmatpush.bf16.msra.mxu3 %v5546_v58  ;;  %v5289_v53 = vld [vmem:[%s9129_s1 + $0x3c8] sm:$0xf] }
 0x1d3   : > { %2528 = vmatmul.bf16.gmra.mxu3 %v9285_v25  ;;  %v2284_v50 = vpop.f32.mrf.mxu2  ;;  %v5290_v43 = vor.u32 %v6062_v29, %v5289_v53  ;;  %v9288_v29 = vld [vmem:[#allocation16_spill] sm:$0xff] }
 0x1d4   : > { %v2285_v31 = vadd.f32 %v2284_v50, %v2236_v44  ;;  %v2188_v6 = vpop.f32.mrf.mxu0  ;;  %v7863_v44 = vld [vmem:[%s9130_s2] sm:$0xf] }
 0x1d5   : > { %v2189_v46 = vadd.f32 %v2188_v6, %v7611_v49  ;;  %v7866_v39 = vperm.slane %v7863_v44, 1  ;;  %2780 = vmatpush.bf16.msra.mxu1 %v5290_v43 }
 0x1d6   : > { %v7851_v0 = vpop.f32.mrf.mxu3  ;;  %v2237_v47 = vpop.f32.mrf.mxu1  ;;  %v3374_v62 = vmax.f32 %v2285_v31, 0.0  ;;  %v6090_v31 = vld [vmem:[%s9129_s1 + $0x4b4] sm:$0xf0] }
 0x1d7   : > { %v2238_v49 = vadd.f32 %v2237_v47, %v2189_v46  ;;  %v2299_v60 = vadd.f32 %v7635_v4, %v7866_v39  ;;  %v5401_v4 = vld [vmem:[%s9129_s1 + $0x4a8] sm:$0xf]  ;;  %v2301_v43 = vadd.f32 %v7638_v15, %v7866_v39  ;;  %v6058_v15 = vld [vmem:[%s9129_s1 + $0x3b4] sm:$0xf0] }
 0x1d8   : > { %v5145_v46 = vld [vmem:[%s9129_s1 + $0x2a8] sm:$0xf]  ;;  %v5402_v47 = vor.u32 %v6090_v31, %v5401_v4 }
 0x1da   : > { %2830 = vmatpush.bf16.msra.mxu2 %v5402_v47 }
 0x1db   : > { %v2286_v5 = vpop.f32.mrf.mxu2 }
 0x1dc   : > { %v2287_v24 = vadd.f32 %v2286_v5, %v2238_v49  ;;  %v2347_v23 = vpop.f32.mrf.mxu0  ;;  %v6122_v49 = vld [vmem:[%s9129_s1 + $0x5b4] sm:$0xf0] }
 0x1dd   : > { %v2348_v58 = vadd.f32 %v2347_v23, %v2299_v60 }
 0x1de   : > { %v7870_v50 = vpop.f32.mrf.mxu3  ;;  %v2396_v6 = vpop.f32.mrf.mxu1  ;;  %v3378_v25 = vmax.f32 %v2287_v24, 0.0 }
 0x1df   : > { %v2397_v59 = vadd.f32 %v2396_v6, %v2348_v58  ;;  %2542 = vmatmul.bf16.vlgmr.msrb.gmra.mxu0 %v9286_v36 }
 0x1e0   : > { %2640 = vmatmul.bf16.vlgmr.msrb.gmra.mxu2 %v9288_v29  ;;  %v7876_v53 = vpack.c.bf16 %v3378_v25, %v3374_v62  ;;  %v6026_v62 = vld [vmem:[%s9129_s1 + $0x2b4] sm:$0xf0]  ;;  %v5529_v25 = vld [vmem:[%s9129_s1 + $0x5a8] sm:$0xf] }
 0x1e1   : > { %5591 = vmatmul.msk.bf16.vlgmr.msrb.gmra.mxu1 %vm1921_vm0, %v9287_v14  ;;  %v5146_v5 = vor.u32 %v6026_v62, %v5145_v46  ;;  %v5530_v24 = vor.u32 %v6122_v49, %v5529_v25 }
 0x1e2   : > { %9289 = vst [vmem:[#allocation36_spill] sm:$0xff] %v7876_v53 }
 0x1e3   : > { %2689 = vmatmul.bf16.vlgmr.msrb.gmra.mxu3 %v6913_v51  ;;  %v2445_v60 = vpop.f32.mrf.mxu2  ;;  %2732 = vmatpush.bf16.msra.mxu0 %v5146_v5  ;;  %v5273_v51 = vld [vmem:[%s9129_s1 + $0x3a8] sm:$0xf] }
 0x1e4   : > { %v2446_v23 = vadd.f32 %v2445_v60, %v2397_v59  ;;  %v2349_v6 = vpop.f32.mrf.mxu0  ;;  %2879 = vmatpush.bf16.msra.mxu3 %v5530_v24  ;;  %v5274_v62 = vor.u32 %v6058_v15, %v5273_v51  ;;  %v2304_v59 = vadd.f32 %v7665_v12, %v7866_v39  ;;  %v5385_v51 = vld [vmem:[%s9129_s1 + $0x488] sm:$0xf]  ;;  %v6086_v12 = vld [vmem:[%s9129_s1 + $0x494] sm:$0xf0] }
 0x1e5   : > { %v2350_v4 = vadd.f32 %v2349_v6, %v2301_v43  ;;  %v9291_v6 = vld [vmem:[#allocation38_spill] sm:$0xff]  ;;  %v5386_v15 = vor.u32 %v6086_v12, %v5385_v51 }
 0x1e6   : > { %v2494_v58 = vpop.f32.mrf.mxu3  ;;  %v2398_v31 = vpop.f32.mrf.mxu1  ;;  %2781 = vmatpush.bf16.msra.mxu1 %v5274_v62  ;;  %v5513_v62 = vld [vmem:[%s9129_s1 + $0x588] sm:$0xf] }
 0x1e7   : > { %v7899_v53 = vadd.f32 %v2494_v58, %v2446_v23  ;;  %v2399_v46 = vadd.f32 %v2398_v31, %v2350_v4  ;;  %v9290_v58 = vld [vmem:[#allocation37_spill] sm:$0xff]  ;;  %v9292_v4 = vld [vmem:[#allocation18_spill] sm:$0xff]  ;;  %2831 = vmatpush.bf16.msra.mxu2 %v5386_v15 }
 0x1e8   : > { %v5129_v31 = vld [vmem:[%s9129_s1 + $0x288] sm:$0xf] }
 0x1eb   : > { %v2447_v47 = vpop.f32.mrf.mxu2 }
 0x1ec   : > { %v2448_v25 = vadd.f32 %v2447_v47, %v2399_v46  ;;  %v2352_v43 = vpop.f32.mrf.mxu0  ;;  %v6022_v46 = vld [vmem:[%s9129_s1 + $0x294] sm:$0xf0]  ;;  %v2306_v47 = vadd.f32 %v7668_v34, %v7866_v39 }
 0x1ed   : > { %v2353_v60 = vadd.f32 %v2352_v43, %v2304_v59  ;;  %v6118_v59 = vld [vmem:[%s9129_s1 + $0x594] sm:$0xf0] }
 0x1ee   : > { %v2496_v49 = vpop.f32.mrf.mxu3  ;;  %v2401_v5 = vpop.f32.mrf.mxu1  ;;  %v5514_v43 = vor.u32 %v6118_v59, %v5513_v62  ;;  %v6054_v34 = vld [vmem:[%s9129_s1 + $0x394] sm:$0xf0] }
 0x1ef   : > { %v7909_v24 = vadd.f32 %v2496_v49, %v2448_v25  ;;  %v2402_v23 = vadd.f32 %v2401_v5, %v2353_v60  ;;  %2547 = vmatmul.bf16.gmra.mxu0 %v9290_v58  ;;  %v5130_v49 = vor.u32 %v6022_v46, %v5129_v31 }
 0x1f0   : > { %2645 = vmatmul.bf16.gmra.mxu2 %v9292_v4  ;;  %2880 = vmatpush.bf16.msra.mxu3 %v5514_v43 }
 0x1f1   : > { %5592 = vmatmul.msk.bf16.gmra.mxu1 %vm1921_vm0, %v9291_v6  ;;  %2733 = vmatpush.bf16.msra.mxu0 %v5130_v49  ;;  %v5257_v6 = vld [vmem:[%s9129_s1 + $0x388] sm:$0xf] }
 0x1f2   : > { %v5258_v46 = vor.u32 %v6054_v34, %v5257_v6  ;;  %v6082_v6 = vld [vmem:[%s9129_s1 + $0x474] sm:$0xf0] }
 0x1f3   : > { %2694 = vmatmul.bf16.gmra.mxu3 %v6969_v19  ;;  %v2450_v25 = vpop.f32.mrf.mxu2 }
 0x1f4   : > { %v2451_v60 = vadd.f32 %v2450_v25, %v2402_v23  ;;  %v2354_v51 = vpop.f32.mrf.mxu0  ;;  %2782 = vmatpush.bf16.msra.mxu1 %v5258_v46  ;;  %v2309_v23 = vadd.f32 %v7695_v61, %v7866_v39  ;;  %v5369_v61 = vld [vmem:[%s9129_s1 + $0x468] sm:$0xf] }
 0x1f5   : > { %v2355_v12 = vadd.f32 %v2354_v51, %v2306_v47  ;;  %v9294_v51 = vld [vmem:[#allocation40_spill] sm:$0xff]  ;;  %v5370_v34 = vor.u32 %v6082_v6, %v5369_v61  ;;  %v5497_v46 = vld [vmem:[%s9129_s1 + $0x568] sm:$0xf] }
 0x1f6   : > { %v2499_v5 = vpop.f32.mrf.mxu3  ;;  %v2403_v19 = vpop.f32.mrf.mxu1 }
 0x1f7   : > { %v7936_v4 = vadd.f32 %v2499_v5, %v2451_v60  ;;  %v2404_v31 = vadd.f32 %v2403_v19, %v2355_v12  ;;  %v9293_v5 = vld [vmem:[#allocation39_spill] sm:$0xff]  ;;  %v9295_v19 = vld [vmem:[#allocation20_spill] sm:$0xff]  ;;  %v5113_v12 = vld [vmem:[%s9129_s1 + $0x268] sm:$0xf]  ;;  %2832 = vmatpush.bf16.msra.mxu2 %v5370_v34 }
 0x1fb   : > { %v2452_v15 = vpop.f32.mrf.mxu2 }
 0x1fc   : > { %v2453_v62 = vadd.f32 %v2452_v15, %v2404_v31  ;;  %v2357_v47 = vpop.f32.mrf.mxu0  ;;  %v6018_v31 = vld [vmem:[%s9129_s1 + $0x274] sm:$0xf0]  ;;  %v2311_v15 = vadd.f32 %v7698_v13, %v7866_v39 }
 0x1fd   : > { %v2358_v25 = vadd.f32 %v2357_v47, %v2309_v23  ;;  %v6114_v23 = vld [vmem:[%s9129_s1 + $0x574] sm:$0xf0] }
 0x1fe   : > { %v2501_v59 = vpop.f32.mrf.mxu3  ;;  %v2406_v49 = vpop.f32.mrf.mxu1  ;;  %v5498_v47 = vor.u32 %v6114_v23, %v5497_v46  ;;  %v6050_v13 = vld [vmem:[%s9129_s1 + $0x374] sm:$0xf0] }
 0x1ff   : > { %v7946_v43 = vadd.f32 %v2501_v59, %v2453_v62  ;;  %v2407_v60 = vadd.f32 %v2406_v49, %v2358_v25  ;;  %2552 = vmatmul.bf16.gmra.mxu0 %v9293_v5  ;;  %v5114_v59 = vor.u32 %v6018_v31, %v5113_v12 }
 0x200   : > { %2650 = vmatmul.bf16.gmra.mxu2 %v9295_v19  ;;  %2881 = vmatpush.bf16.msra.mxu3 %v5498_v47 }
 0x201   : > { %5593 = vmatmul.msk.bf16.gmra.mxu1 %vm1921_vm0, %v9294_v51  ;;  %2734 = vmatpush.bf16.msra.mxu0 %v5114_v59  ;;  %v5241_v51 = vld [vmem:[%s9129_s1 + $0x368] sm:$0xf] }
 0x202   : > { %v5242_v31 = vor.u32 %v6050_v13, %v5241_v51  ;;  %v6078_v51 = vld [vmem:[%s9129_s1 + $0x454] sm:$0xf0] }
 0x203   : > { %2699 = vmatmul.bf16.gmra.mxu3 %v7007_v40  ;;  %v2455_v62 = vpop.f32.mrf.mxu2 }
 0x204   : > { %v2456_v25 = vadd.f32 %v2455_v62, %v2407_v60  ;;  %v2359_v61 = vpop.f32.mrf.mxu0  ;;  %2783 = vmatpush.bf16.msra.mxu1 %v5242_v31  ;;  %v2314_v60 = vadd.f32 %v7725_v37, %v7866_v39  ;;  %v5353_v37 = vld [vmem:[%s9129_s1 + $0x448] sm:$0xf] }
 0x205   : > { %v2360_v6 = vadd.f32 %v2359_v61, %v2311_v15  ;;  %v9297_v61 = vld [vmem:[#allocation42_spill] sm:$0xff]  ;;  %v5354_v13 = vor.u32 %v6078_v51, %v5353_v37  ;;  %v5481_v31 = vld [vmem:[%s9129_s1 + $0x548] sm:$0xf] }
 0x206   : > { %v2504_v49 = vpop.f32.mrf.mxu3  ;;  %v2408_v40 = vpop.f32.mrf.mxu1 }
 0x207   : > { %v7973_v19 = vadd.f32 %v2504_v49, %v2456_v25  ;;  %v2409_v12 = vadd.f32 %v2408_v40, %v2360_v6  ;;  %v9296_v49 = vld [vmem:[#allocation41_spill] sm:$0xff]  ;;  %v9298_v40 = vld [vmem:[#allocation22_spill] sm:$0xff]  ;;  %2833 = vmatpush.bf16.msra.mxu2 %v5354_v13 }
 0x208   : > { %v5097_v6 = vld [vmem:[%s9129_s1 + $0x248] sm:$0xf] }
 0x20b   : > { %v2457_v34 = vpop.f32.mrf.mxu2 }
 0x20c   : > { %v2458_v46 = vadd.f32 %v2457_v34, %v2409_v12  ;;  %v2362_v15 = vpop.f32.mrf.mxu0  ;;  %v6014_v12 = vld [vmem:[%s9129_s1 + $0x254] sm:$0xf0]  ;;  %v2316_v34 = vadd.f32 %v7728_v63, %v7866_v39 }
 0x20d   : > { %v2363_v62 = vadd.f32 %v2362_v15, %v2314_v60  ;;  %v6110_v60 = vld [vmem:[%s9129_s1 + $0x554] sm:$0xf0] }
 0x20e   : > { %v2506_v23 = vpop.f32.mrf.mxu3  ;;  %v2411_v59 = vpop.f32.mrf.mxu1  ;;  %v5482_v15 = vor.u32 %v6110_v60, %v5481_v31  ;;  %v6046_v63 = vld [vmem:[%s9129_s1 + $0x354] sm:$0xf0] }
 0x20f   : > { %v7983_v47 = vadd.f32 %v2506_v23, %v2458_v46  ;;  %v2412_v25 = vadd.f32 %v2411_v59, %v2363_v62  ;;  %2557 = vmatmul.bf16.gmra.mxu0 %v9296_v49  ;;  %v5098_v23 = vor.u32 %v6014_v12, %v5097_v6 }
 0x210   : > { %2655 = vmatmul.bf16.gmra.mxu2 %v9298_v40  ;;  %2882 = vmatpush.bf16.msra.mxu3 %v5482_v15 }
 0x211   : > { %5594 = vmatmul.msk.bf16.gmra.mxu1 %vm1921_vm0, %v9297_v61  ;;  %2735 = vmatpush.bf16.msra.mxu0 %v5098_v23  ;;  %v5225_v61 = vld [vmem:[%s9129_s1 + $0x348] sm:$0xf] }
 0x212   : > { %v5226_v12 = vor.u32 %v6046_v63, %v5225_v61  ;;  %v6074_v61 = vld [vmem:[%s9129_s1 + $0x434] sm:$0xf0] }
 0x213   : > { %2704 = vmatmul.bf16.gmra.mxu3 %v7045_v1  ;;  %v2460_v46 = vpop.f32.mrf.mxu2 }
 0x214   : > { %v2461_v62 = vadd.f32 %v2460_v46, %v2412_v25  ;;  %v2364_v37 = vpop.f32.mrf.mxu0  ;;  %2784 = vmatpush.bf16.msra.mxu1 %v5226_v12  ;;  %v2319_v25 = vadd.f32 %v7755_v48, %v7866_v39  ;;  %v5337_v48 = vld [vmem:[%s9129_s1 + $0x428] sm:$0xf] }
 0x215   : > { %v2365_v51 = vadd.f32 %v2364_v37, %v2316_v34  ;;  %v9300_v37 = vld [vmem:[#allocation44_spill] sm:$0xff]  ;;  %v5338_v63 = vor.u32 %v6074_v61, %v5337_v48  ;;  %v5465_v12 = vld [vmem:[%s9129_s1 + $0x528] sm:$0xf] }
 0x216   : > { %v2509_v59 = vpop.f32.mrf.mxu3  ;;  %v2413_v1 = vpop.f32.mrf.mxu1 }
 0x217   : > { %v8010_v40 = vadd.f32 %v2509_v59, %v2461_v62  ;;  %v2414_v6 = vadd.f32 %v2413_v1, %v2365_v51  ;;  %v9299_v59 = vld [vmem:[#allocation43_spill] sm:$0xff]  ;;  %v9301_v1 = vld [vmem:[#allocation24_spill] sm:$0xff]  ;;  %v5081_v51 = vld [vmem:[%s9129_s1 + $0x228] sm:$0xf]  ;;  %2834 = vmatpush.bf16.msra.mxu2 %v5338_v63 }
 0x21b   : > { %v2462_v13 = vpop.f32.mrf.mxu2 }
 0x21c   : > { %v2463_v31 = vadd.f32 %v2462_v13, %v2414_v6  ;;  %v2367_v34 = vpop.f32.mrf.mxu0  ;;  %v6010_v6 = vld [vmem:[%s9129_s1 + $0x234] sm:$0xf0]  ;;  %v2321_v13 = vadd.f32 %v7758_v10, %v7866_v39 }
 0x21d   : > { %v2368_v46 = vadd.f32 %v2367_v34, %v2319_v25  ;;  %v6106_v25 = vld [vmem:[%s9129_s1 + $0x534] sm:$0xf0] }
 0x21e   : > { %v2511_v60 = vpop.f32.mrf.mxu3  ;;  %v2416_v23 = vpop.f32.mrf.mxu1  ;;  %v5466_v34 = vor.u32 %v6106_v25, %v5465_v12  ;;  %v6042_v10 = vld [vmem:[%s9129_s1 + $0x334] sm:$0xf0] }
 0x21f   : > { %v8020_v15 = vadd.f32 %v2511_v60, %v2463_v31  ;;  %v2417_v62 = vadd.f32 %v2416_v23, %v2368_v46  ;;  %2562 = vmatmul.bf16.gmra.mxu0 %v9299_v59  ;;  %v5082_v60 = vor.u32 %v6010_v6, %v5081_v51 }
 0x220   : > { %2660 = vmatmul.bf16.gmra.mxu2 %v9301_v1  ;;  %2883 = vmatpush.bf16.msra.mxu3 %v5466_v34 }
 0x221   : > { %5595 = vmatmul.msk.bf16.gmra.mxu1 %vm1921_vm0, %v9300_v37  ;;  %2736 = vmatpush.bf16.msra.mxu0 %v5082_v60  ;;  %v5209_v37 = vld [vmem:[%s9129_s1 + $0x328] sm:$0xf] }
 0x222   : > { %v5210_v6 = vor.u32 %v6042_v10, %v5209_v37  ;;  %v6070_v37 = vld [vmem:[%s9129_s1 + $0x414] sm:$0xf0] }
 0x223   : > { %2709 = vmatmul.bf16.gmra.mxu3 %v7083_v26  ;;  %v2465_v31 = vpop.f32.mrf.mxu2 }
 0x224   : > { %v2466_v46 = vadd.f32 %v2465_v31, %v2417_v62  ;;  %v2369_v48 = vpop.f32.mrf.mxu0  ;;  %2785 = vmatpush.bf16.msra.mxu1 %v5210_v6  ;;  %v2324_v62 = vadd.f32 %v7785_v33, %v7866_v39  ;;  %v5321_v33 = vld [vmem:[%s9129_s1 + $0x408] sm:$0xf] }
 0x225   : > { %v2370_v61 = vadd.f32 %v2369_v48, %v2321_v13  ;;  %v9303_v48 = vld [vmem:[#allocation46_spill] sm:$0xff]  ;;  %v5322_v10 = vor.u32 %v6070_v37, %v5321_v33  ;;  %v5449_v6 = vld [vmem:[%s9129_s1 + $0x508] sm:$0xf] }
 0x226   : > { %v2514_v23 = vpop.f32.mrf.mxu3  ;;  %v2418_v26 = vpop.f32.mrf.mxu1 }
 0x227   : > { %v8047_v1 = vadd.f32 %v2514_v23, %v2466_v46  ;;  %v2419_v51 = vadd.f32 %v2418_v26, %v2370_v61  ;;  %v9302_v23 = vld [vmem:[#allocation45_spill] sm:$0xff]  ;;  %v9304_v26 = vld [vmem:[#allocation26_spill] sm:$0xff]  ;;  %2835 = vmatpush.bf16.msra.mxu2 %v5322_v10 }
 0x228   : > { %v5065_v61 = vld [vmem:[%s9129_s1 + $0x208] sm:$0xf] }
 0x22b   : > { %v2467_v63 = vpop.f32.mrf.mxu2 }
 0x22c   : > { %v2468_v12 = vadd.f32 %v2467_v63, %v2419_v51  ;;  %v2372_v13 = vpop.f32.mrf.mxu0  ;;  %v6006_v51 = vld [vmem:[%s9129_s1 + $0x214] sm:$0xf0]  ;;  %v2326_v63 = vadd.f32 %v7788_v38, %v7866_v39 }
 0x22d   : > { %v2373_v31 = vadd.f32 %v2372_v13, %v2324_v62  ;;  %v6102_v62 = vld [vmem:[%s9129_s1 + $0x514] sm:$0xf0] }
 0x22e   : > { %v2516_v25 = vpop.f32.mrf.mxu3  ;;  %v2421_v60 = vpop.f32.mrf.mxu1  ;;  %v5450_v13 = vor.u32 %v6102_v62, %v5449_v6  ;;  %v6038_v38 = vld [vmem:[%s9129_s1 + $0x314] sm:$0xf0] }
 0x22f   : > { %v8057_v34 = vadd.f32 %v2516_v25, %v2468_v12  ;;  %v2422_v46 = vadd.f32 %v2421_v60, %v2373_v31  ;;  %2567 = vmatmul.bf16.gmra.mxu0 %v9302_v23  ;;  %v5066_v25 = vor.u32 %v6006_v51, %v5065_v61 }
 0x230   : > { %2665 = vmatmul.bf16.gmra.mxu2 %v9304_v26  ;;  %2884 = vmatpush.bf16.msra.mxu3 %v5450_v13 }
 0x231   : > { %5596 = vmatmul.msk.bf16.gmra.mxu1 %vm1921_vm0, %v9303_v48  ;;  %2737 = vmatpush.bf16.msra.mxu0 %v5066_v25  ;;  %v5193_v48 = vld [vmem:[%s9129_s1 + $0x308] sm:$0xf] }
 0x232   : > { %v5194_v51 = vor.u32 %v6038_v38, %v5193_v48  ;;  %v5051_v48 = vld [vmem:[%s9129_s1 + $0x1f8] sm:$0xf0] }
 0x233   : > { %2714 = vmatmul.bf16.gmra.mxu3 %v7121_v54  ;;  %v2470_v12 = vpop.f32.mrf.mxu2 }
 0x234   : > { %v2471_v31 = vadd.f32 %v2470_v12, %v2422_v46  ;;  %v2374_v33 = vpop.f32.mrf.mxu0  ;;  %2786 = vmatpush.bf16.msra.mxu1 %v5194_v51  ;;  %v2329_v46 = vadd.f32 %v7815_v32, %v7866_v39  ;;  %v6000_v32 = vld [vmem:[%s9129_s1 + $0x1ec] sm:$0xf] }
 0x235   : > { %v2375_v37 = vadd.f32 %v2374_v33, %v2326_v63  ;;  %v9306_v33 = vld [vmem:[#allocation49_spill] sm:$0xff]  ;;  %v5054_v38 = vor.u32 %v6000_v32, %v5051_v48 }
 0x236   : > { %v2519_v60 = vpop.f32.mrf.mxu3  ;;  %v2423_v54 = vpop.f32.mrf.mxu1  ;;  %v6032_v51 = vld [vmem:[%s9129_s1 + $0x2ec] sm:$0xf] }
 0x237   : > { %v8084_v26 = vadd.f32 %v2519_v60, %v2471_v31  ;;  %v2424_v61 = vadd.f32 %v2423_v54, %v2375_v37  ;;  %v9305_v60 = vld [vmem:[#allocation48_spill] sm:$0xff]  ;;  %v5577_v37 = vld [vmem:[%s9129_s1 + $0x608] sm:$0xf]  ;;  %3024 = vmatpush.bf16.msrb.mxu2 %v5054_v38 }
 0x238   : > { %v9307_v54 = vld [vmem:[#allocation28_spill] sm:$0xff] }
 0x23b   : > { %v2472_v10 = vpop.f32.mrf.mxu2 }
 0x23c   : > { %v2473_v6 = vadd.f32 %v2472_v10, %v2424_v61  ;;  %v2377_v63 = vpop.f32.mrf.mxu0  ;;  %v6134_v61 = vld [vmem:[%s9129_s1 + $0x614] sm:$0xf0]  ;;  %v2331_v10 = vadd.f32 %v7824_v30, %v7866_v39  ;;  %v4923_v30 = vld [vmem:[%s9129_s1 + $0xf8] sm:$0xf0] }
 0x23d   : > { %v2378_v12 = vadd.f32 %v2377_v63, %v2329_v46  ;;  %v5179_v46 = vld [vmem:[%s9129_s1 + $0x2f8] sm:$0xf0] }
 0x23e   : > { %v2521_v62 = vpop.f32.mrf.mxu3  ;;  %v2426_v25 = vpop.f32.mrf.mxu1  ;;  %v5182_v63 = vor.u32 %v6032_v51, %v5179_v46 }
 0x23f   : > { %v8094_v13 = vadd.f32 %v2521_v62, %v2473_v6  ;;  %v2427_v31 = vadd.f32 %v2426_v25, %v2378_v12  ;;  %2572 = vmatmul.bf16.gmra.mxu0 %v9305_v60  ;;  %v5578_v62 = vor.u32 %v6134_v61, %v5577_v37 }
 0x240   : > { %2670 = vmatmul.bf16.gmra.mxu2 %v9307_v54  ;;  %3073 = vmatpush.bf16.msrb.mxu3 %v5182_v63 }
 0x241   : > { %5597 = vmatmul.msk.bf16.gmra.mxu1 %vm1921_vm0, %v9306_v33  ;;  %2933 = vmatpush.bf16.msrb.mxu0 %v5578_v62  ;;  %v5968_v33 = vld [vmem:[%s9129_s1 + $0xec] sm:$0xf] }
 0x242   : > { %v4926_v61 = vor.u32 %v5968_v33, %v4923_v30  ;;  %v5035_v33 = vld [vmem:[%s9129_s1 + $0x1d8] sm:$0xf0] }
 0x243   : > { %2719 = vmatmul.bf16.gmra.mxu3 %v7159_v16  ;;  %v2475_v6 = vpop.f32.mrf.mxu2 }
 0x244   : > { %v2476_v12 = vadd.f32 %v2475_v6, %v2427_v31  ;;  %v2379_v32 = vpop.f32.mrf.mxu0  ;;  %2975 = vmatpush.bf16.msrb.mxu1 %v4926_v61  ;;  %v2334_v31 = vadd.f32 %v7851_v0, %v7866_v39  ;;  %v5996_v0 = vld [vmem:[%s9129_s1 + $0x1cc] sm:$0xf]  ;;  %v2336_v61 = vadd.f32 %v7870_v50, %v7866_v39 }
 0x245   : > { %v2380_v48 = vadd.f32 %v2379_v32, %v2331_v10  ;;  %v9309_v32 = vld [vmem:[#allocation52_spill] sm:$0xff]  ;;  %v5038_v30 = vor.u32 %v5996_v0, %v5035_v33  ;;  %v5964_v0 = vld [vmem:[%s9129_s1 + $0xcc] sm:$0xf]  ;;  %v4907_v33 = vld [vmem:[%s9129_s1 + $0xd8] sm:$0xf0] }
 0x246   : > { %v2524_v25 = vpop.f32.mrf.mxu3  ;;  %v2428_v16 = vpop.f32.mrf.mxu1  ;;  %v4910_v50 = vor.u32 %v5964_v0, %v4907_v33 }
 0x247   : > { %v8121_v54 = vadd.f32 %v2524_v25, %v2476_v12  ;;  %v2429_v37 = vadd.f32 %v2428_v16, %v2380_v48  ;;  %v9308_v25 = vld [vmem:[#allocation51_spill] sm:$0xff]  ;;  %v9310_v16 = vld [vmem:[#allocation30_spill] sm:$0xff]  ;;  %v6028_v48 = vld [vmem:[%s9129_s1 + $0x2cc] sm:$0xf]  ;;  %3025 = vmatpush.bf16.msrb.mxu2 %v5038_v30 }
 0x248   : > { %2976 = vmatpush.bf16.msrb.mxu1 %v4910_v50 }
 0x24b   : > { %v2477_v38 = vpop.f32.mrf.mxu2 }
 0x24c   : > { %v2478_v51 = vadd.f32 %v2477_v38, %v2429_v37  ;;  %v2382_v10 = vpop.f32.mrf.mxu0  ;;  %v5163_v37 = vld [vmem:[%s9129_s1 + $0x2d8] sm:$0xf0] }
 0x24d   : > { %v2383_v6 = vadd.f32 %v2382_v10, %v2334_v31  ;;  %v5166_v38 = vor.u32 %v6028_v48, %v5163_v37 }
 0x24e   : > { %v2526_v46 = vpop.f32.mrf.mxu3  ;;  %v2431_v62 = vpop.f32.mrf.mxu1 }
 0x24f   : > { %v8131_v63 = vadd.f32 %v2526_v46, %v2478_v51  ;;  %v2432_v12 = vadd.f32 %v2431_v62, %v2383_v6  ;;  %2577 = vmatmul.bf16.gmra.mxu0 %v9308_v25  ;;  %3074 = vmatpush.bf16.msrb.mxu3 %v5166_v38 }
 0x250   : > { %2675 = vmatmul.bf16.gmra.mxu2 %v9310_v16 }
 0x251   : > { %5598 = vmatmul.msk.bf16.gmra.mxu1 %vm1921_vm0, %v9309_v32 }
 0x253   : > { %2724 = vmatmul.bf16.gmra.mxu3 %v9281_v18  ;;  %v2480_v31 = vpop.f32.mrf.mxu2 }
 0x254   : > { %v2481_v51 = vadd.f32 %v2480_v31, %v2432_v12  ;;  %v2384_v10 = vpop.f32.mrf.mxu0 }
 0x255   : > { %v2385_v6 = vadd.f32 %v2384_v10, %v2336_v61  ;;  %v5992_v10 = vld [vmem:[%s9129_s1 + $0x1ac] sm:$0xf] }
 0x256   : > { %v2529_v46 = vpop.f32.mrf.mxu3  ;;  %v2433_v62 = vpop.f32.mrf.mxu1 }
 0x257   : > { %v8152_v18 = vadd.f32 %v2529_v46, %v2481_v51  ;;  %v2434_v39 = vadd.f32 %v2433_v62, %v2385_v6  ;;  %v8167_v46 = vperm.slane %v7863_v44, 2  ;;  %v6024_v62 = vld [vmem:[%s9129_s1 + $0x2ac] sm:$0xf]  ;;  %v5147_v44 = vld [vmem:[%s9129_s1 + $0x2b8] sm:$0xf0] }
 0x258   : > { %v5150_v33 = vor.u32 %v6024_v62, %v5147_v44 }
 0x25a   : > { %3075 = vmatpush.bf16.msrb.mxu3 %v5150_v33 }
 0x25b   : > { %v2482_v12 = vpop.f32.mrf.mxu2 }
 0x25c   : > { %v2483_v48 = vadd.f32 %v2482_v12, %v2434_v39  ;;  %v2543_v30 = vpop.f32.mrf.mxu0 }
 0x25d   : > { %v2544_v61 = vadd.f32 %v2543_v30, %v7899_v53  ;;  %v5019_v53 = vld [vmem:[%s9129_s1 + $0x1b8] sm:$0xf0] }
 0x25e   : > { %v2531_v37 = vpop.f32.mrf.mxu3  ;;  %v2592_v31 = vpop.f32.mrf.mxu1  ;;  %v5022_v6 = vor.u32 %v5992_v10, %v5019_v53 }
 0x25f   : > { %v8161_v38 = vadd.f32 %v2531_v37, %v2483_v48  ;;  %v2593_v51 = vadd.f32 %v2592_v31, %v2544_v61  ;;  %2738 = vmatmul.bf16.vlgmr.msra.gmra.mxu0 %v6915_v52  ;;  %v5960_v61 = vld [vmem:[%s9129_s1 + $0xac] sm:$0xf]  ;;  %v4891_v31 = vld [vmem:[%s9129_s1 + $0xb8] sm:$0xf0] }
 0x260   : > { %2836 = vmatmul.bf16.vlgmr.msra.gmra.mxu2 %v7248_v35  ;;  %v4894_v53 = vor.u32 %v5960_v61, %v4891_v31  ;;  %v5131_v61 = vld [vmem:[%s9129_s1 + $0x298] sm:$0xf0] }
 0x261   : > { %2787 = vmatmul.bf16.vlgmr.msra.gmra.mxu1 %v6923_v55  ;;  %3026 = vmatpush.bf16.msrb.mxu2 %v5022_v6  ;;  %v3319_v62 = vmax.f32 %v2593_v51, 0.0  ;;  %v5988_v51 = vld [vmem:[%s9129_s1 + $0x18c] sm:$0xf] }
 0x262   : > { %2977 = vmatpush.bf16.msrb.mxu1 %v4894_v53 }
 0x263   : > { %2885 = vmatmul.bf16.vlgmr.msra.gmra.mxu3 %v9286_v36  ;;  %v2641_v0 = vpop.f32.mrf.mxu2 }
 0x264   : > { %v2642_v39 = vadd.f32 %v2641_v0, %v8167_v46  ;;  %v2545_v12 = vpop.f32.mrf.mxu0 }
 0x265   : > { %v2546_v48 = vadd.f32 %v2545_v12, %v7909_v24 }
 0x266   : > { %v2690_v50 = vpop.f32.mrf.mxu3  ;;  %v2594_v37 = vpop.f32.mrf.mxu1 }
 0x267   : > { %v8184_v30 = vadd.f32 %v2690_v50, %v2642_v39  ;;  %v2595_v10 = vadd.f32 %v2594_v37, %v2546_v48  ;;  %v6020_v37 = vld [vmem:[%s9129_s1 + $0x28c] sm:$0xf] }
 0x269   : > { %v3323_v44 = vmax.f32 %v2595_v10, 0.0  ;;  %v5134_v10 = vor.u32 %v6020_v37, %v5131_v61 }
 0x26b   : > { %v8192_v6 = vpack.c.bf16 %v3323_v44, %v3319_v62  ;;  %v2643_v24 = vpop.f32.mrf.mxu2  ;;  %3076 = vmatpush.bf16.msrb.mxu3 %v5134_v10 }
 0x26c   : > { %v2644_v0 = vadd.f32 %v2643_v24, %v8167_v46  ;;  %v2548_v39 = vpop.f32.mrf.mxu0 }
 0x26d   : > { %9311 = vst [vmem:[#allocation16_spill] sm:$0xff] %v8192_v6  ;;  %v2549_v50 = vadd.f32 %v2548_v39, %v7936_v4  ;;  %v5003_v4 = vld [vmem:[%s9129_s1 + $0x198] sm:$0xf0]  ;;  %v5956_v39 = vld [vmem:[%s9129_s1 + $0x8c] sm:$0xf] }
 0x26e   : > { %v2692_v33 = vpop.f32.mrf.mxu3  ;;  %v2597_v12 = vpop.f32.mrf.mxu1  ;;  %v5006_v48 = vor.u32 %v5988_v51, %v5003_v4 }
 0x26f   : > { %v8196_v36 = vadd.f32 %v2692_v33, %v2644_v0  ;;  %v2598_v35 = vadd.f32 %v2597_v12, %v2549_v50  ;;  %2743 = vmatmul.bf16.gmra.mxu0 %v6971_v20  ;;  %v4875_v50 = vld [vmem:[%s9129_s1 + $0x98] sm:$0xf0] }
 0x270   : > { %2841 = vmatmul.bf16.gmra.mxu2 %v7293_v45  ;;  %v4878_v51 = vor.u32 %v5956_v39, %v4875_v50  ;;  %v5115_v39 = vld [vmem:[%s9129_s1 + $0x278] sm:$0xf0] }
 0x271   : > { %2792 = vmatmul.bf16.gmra.mxu1 %v6973_v21  ;;  %3027 = vmatpush.bf16.msrb.mxu2 %v5006_v48  ;;  %v3327_v4 = vmax.f32 %v2598_v35, 0.0  ;;  %v5984_v35 = vld [vmem:[%s9129_s1 + $0x16c] sm:$0xf] }
 0x272   : > { %2978 = vmatpush.bf16.msrb.mxu1 %v4878_v51 }
 0x273   : > { %2890 = vmatmul.bf16.gmra.mxu3 %v9290_v58  ;;  %v2646_v31 = vpop.f32.mrf.mxu2 }
 0x274   : > { %v2647_v53 = vadd.f32 %v2646_v31, %v8167_v46  ;;  %v2550_v44 = vpop.f32.mrf.mxu0 }
 0x275   : > { %v2551_v24 = vadd.f32 %v2550_v44, %v7946_v43 }
 0x276   : > { %v2695_v62 = vpop.f32.mrf.mxu3  ;;  %v2599_v0 = vpop.f32.mrf.mxu1 }
 0x277   : > { %v8216_v33 = vadd.f32 %v2695_v62, %v2647_v53  ;;  %v2600_v12 = vadd.f32 %v2599_v0, %v2551_v24  ;;  %v6016_v0 = vld [vmem:[%s9129_s1 + $0x26c] sm:$0xf] }
 0x279   : > { %v3331_v37 = vmax.f32 %v2600_v12, 0.0  ;;  %v5118_v12 = vor.u32 %v6016_v0, %v5115_v39 }
 0x27b   : > { %v2648_v48 = vpop.f32.mrf.mxu2  ;;  %v8224_v61 = vpack.c.bf16 %v3331_v37, %v3327_v4  ;;  %3077 = vmatpush.bf16.msrb.mxu3 %v5118_v12 }
 0x27c   : > { %v2649_v43 = vadd.f32 %v2648_v48, %v8167_v46  ;;  %v2553_v10 = vpop.f32.mrf.mxu0 }
 0x27d   : > { %9312 = vst [vmem:[#allocation37_spill] sm:$0xff] %v8224_v61  ;;  %v2554_v53 = vadd.f32 %v2553_v10, %v7973_v19  ;;  %v4987_v19 = vld [vmem:[%s9129_s1 + $0x178] sm:$0xf0]  ;;  %v5952_v10 = vld [vmem:[%s9129_s1 + $0x6c] sm:$0xf] }
 0x27e   : > { %v2697_v31 = vpop.f32.mrf.mxu3  ;;  %v2602_v62 = vpop.f32.mrf.mxu1  ;;  %v4990_v24 = vor.u32 %v5984_v35, %v4987_v19 }
 0x27f   : > { %v8228_v44 = vadd.f32 %v2697_v31, %v2649_v43  ;;  %v2603_v6 = vadd.f32 %v2602_v62, %v2554_v53  ;;  %2748 = vmatmul.bf16.gmra.mxu0 %v7009_v41  ;;  %v4859_v53 = vld [vmem:[%s9129_s1 + $0x78] sm:$0xf0] }
 0x280   : > { %2846 = vmatmul.bf16.gmra.mxu2 %v7340_v11  ;;  %v4862_v35 = vor.u32 %v5952_v10, %v4859_v53  ;;  %v5099_v10 = vld [vmem:[%s9129_s1 + $0x258] sm:$0xf0] }
 0x281   : > { %2797 = vmatmul.bf16.gmra.mxu1 %v7011_v42  ;;  %3028 = vmatpush.bf16.msrb.mxu2 %v4990_v24  ;;  %v3335_v19 = vmax.f32 %v2603_v6, 0.0  ;;  %v5980_v6 = vld [vmem:[%s9129_s1 + $0x14c] sm:$0xf] }
 0x282   : > { %2979 = vmatpush.bf16.msrb.mxu1 %v4862_v35 }
 0x283   : > { %2895 = vmatmul.bf16.gmra.mxu3 %v9293_v5  ;;  %v2651_v50 = vpop.f32.mrf.mxu2 }
 0x284   : > { %v2652_v51 = vadd.f32 %v2651_v50, %v8167_v46  ;;  %v2555_v37 = vpop.f32.mrf.mxu0 }
 0x285   : > { %v2556_v48 = vadd.f32 %v2555_v37, %v7983_v47 }
 0x286   : > { %v2700_v4 = vpop.f32.mrf.mxu3  ;;  %v2604_v43 = vpop.f32.mrf.mxu1 }
 0x287   : > { %v8248_v31 = vadd.f32 %v2700_v4, %v2652_v51  ;;  %v2605_v62 = vadd.f32 %v2604_v43, %v2556_v48  ;;  %v6012_v43 = vld [vmem:[%s9129_s1 + $0x24c] sm:$0xf] }
 0x289   : > { %v3339_v0 = vmax.f32 %v2605_v62, 0.0  ;;  %v5102_v62 = vor.u32 %v6012_v43, %v5099_v10 }
 0x28b   : > { %v2653_v24 = vpop.f32.mrf.mxu2  ;;  %v8256_v39 = vpack.c.bf16 %v3339_v0, %v3335_v19  ;;  %3078 = vmatpush.bf16.msrb.mxu3 %v5102_v62 }
 0x28c   : > { %v2654_v47 = vadd.f32 %v2653_v24, %v8167_v46  ;;  %v2558_v12 = vpop.f32.mrf.mxu0 }
 0x28d   : > { %9313 = vst [vmem:[#allocation39_spill] sm:$0xff] %v8256_v39  ;;  %v2559_v51 = vadd.f32 %v2558_v12, %v8010_v40  ;;  %v4971_v40 = vld [vmem:[%s9129_s1 + $0x158] sm:$0xf0]  ;;  %v5948_v12 = vld [vmem:[%s9129_s1 + $0x4c] sm:$0xf] }
 0x28e   : > { %v2702_v50 = vpop.f32.mrf.mxu3  ;;  %v2607_v4 = vpop.f32.mrf.mxu1  ;;  %v4974_v48 = vor.u32 %v5980_v6, %v4971_v40 }
 0x28f   : > { %v8260_v37 = vadd.f32 %v2702_v50, %v2654_v47  ;;  %v2608_v61 = vadd.f32 %v2607_v4, %v2559_v51  ;;  %2753 = vmatmul.bf16.gmra.mxu0 %v7047_v2  ;;  %v4843_v51 = vld [vmem:[%s9129_s1 + $0x58] sm:$0xf0] }
 0x290   : > { %2851 = vmatmul.bf16.gmra.mxu2 %v7387_v8  ;;  %v4846_v6 = vor.u32 %v5948_v12, %v4843_v51  ;;  %v5083_v12 = vld [vmem:[%s9129_s1 + $0x238] sm:$0xf0] }
 0x291   : > { %2802 = vmatmul.bf16.gmra.mxu1 %v7049_v3  ;;  %3029 = vmatpush.bf16.msrb.mxu2 %v4974_v48  ;;  %v3343_v40 = vmax.f32 %v2608_v61, 0.0  ;;  %v5976_v61 = vld [vmem:[%s9129_s1 + $0x12c] sm:$0xf] }
 0x292   : > { %2980 = vmatpush.bf16.msrb.mxu1 %v4846_v6 }
 0x293   : > { %2900 = vmatmul.bf16.gmra.mxu3 %v9296_v49  ;;  %v2656_v53 = vpop.f32.mrf.mxu2 }
 0x294   : > { %v2657_v35 = vadd.f32 %v2656_v53, %v8167_v46  ;;  %v2560_v0 = vpop.f32.mrf.mxu0 }
 0x295   : > { %v2561_v24 = vadd.f32 %v2560_v0, %v8020_v15 }
 0x296   : > { %v2705_v19 = vpop.f32.mrf.mxu3  ;;  %v2609_v47 = vpop.f32.mrf.mxu1 }
 0x297   : > { %v8280_v50 = vadd.f32 %v2705_v19, %v2657_v35  ;;  %v2610_v4 = vadd.f32 %v2609_v47, %v2561_v24  ;;  %v6008_v47 = vld [vmem:[%s9129_s1 + $0x22c] sm:$0xf] }
 0x299   : > { %v3347_v43 = vmax.f32 %v2610_v4, 0.0  ;;  %v5086_v4 = vor.u32 %v6008_v47, %v5083_v12 }
 0x29b   : > { %v2658_v48 = vpop.f32.mrf.mxu2  ;;  %v8288_v10 = vpack.c.bf16 %v3347_v43, %v3343_v40  ;;  %3079 = vmatpush.bf16.msrb.mxu3 %v5086_v4 }
 0x29c   : > { %v2659_v15 = vadd.f32 %v2658_v48, %v8167_v46  ;;  %v2563_v62 = vpop.f32.mrf.mxu0 }
 0x29d   : > { %9314 = vst [vmem:[#allocation41_spill] sm:$0xff] %v8288_v10  ;;  %v2564_v35 = vadd.f32 %v2563_v62, %v8047_v1  ;;  %v4955_v1 = vld [vmem:[%s9129_s1 + $0x138] sm:$0xf0]  ;;  %v5944_v62 = vld [vmem:[%s9129_s1 + $0x2c] sm:$0xf] }
 0x29e   : > { %v2707_v53 = vpop.f32.mrf.mxu3  ;;  %v2612_v19 = vpop.f32.mrf.mxu1  ;;  %v4958_v24 = vor.u32 %v5976_v61, %v4955_v1 }
 0x29f   : > { %v8292_v0 = vadd.f32 %v2707_v53, %v2659_v15  ;;  %v2613_v39 = vadd.f32 %v2612_v19, %v2564_v35  ;;  %2758 = vmatmul.bf16.gmra.mxu0 %v7085_v27  ;;  %v4827_v35 = vld [vmem:[%s9129_s1 + $0x38] sm:$0xf0] }
 0x2a0   : > { %2856 = vmatmul.bf16.gmra.mxu2 %v7434_v9  ;;  %v4830_v61 = vor.u32 %v5944_v62, %v4827_v35  ;;  %v5067_v62 = vld [vmem:[%s9129_s1 + $0x218] sm:$0xf0] }
 0x2a1   : > { %2807 = vmatmul.bf16.gmra.mxu1 %v7087_v28  ;;  %3030 = vmatpush.bf16.msrb.mxu2 %v4958_v24  ;;  %v3351_v1 = vmax.f32 %v2613_v39, 0.0  ;;  %v5972_v39 = vld [vmem:[%s9129_s1 + $0x10c] sm:$0xf] }
 0x2a2   : > { %2981 = vmatpush.bf16.msrb.mxu1 %v4830_v61 }
 0x2a3   : > { %2905 = vmatmul.bf16.gmra.mxu3 %v9299_v59  ;;  %v2661_v51 = vpop.f32.mrf.mxu2 }
 0x2a4   : > { %v2662_v6 = vadd.f32 %v2661_v51, %v8167_v46  ;;  %v2565_v43 = vpop.f32.mrf.mxu0 }
 0x2a5   : > { %v2566_v48 = vadd.f32 %v2565_v43, %v8057_v34 }
 0x2a6   : > { %v2710_v40 = vpop.f32.mrf.mxu3  ;;  %v2614_v15 = vpop.f32.mrf.mxu1 }
 0x2a7   : > { %v8312_v53 = vadd.f32 %v2710_v40, %v2662_v6  ;;  %v2615_v19 = vadd.f32 %v2614_v15, %v2566_v48  ;;  %v6004_v15 = vld [vmem:[%s9129_s1 + $0x20c] sm:$0xf] }
 0x2a9   : > { %v3355_v47 = vmax.f32 %v2615_v19, 0.0  ;;  %v5070_v19 = vor.u32 %v6004_v15, %v5067_v62 }
 0x2ab   : > { %v2663_v24 = vpop.f32.mrf.mxu2  ;;  %v8320_v12 = vpack.c.bf16 %v3355_v47, %v3351_v1  ;;  %3080 = vmatpush.bf16.msrb.mxu3 %v5070_v19 }
 0x2ac   : > { %v2664_v34 = vadd.f32 %v2663_v24, %v8167_v46  ;;  %v2568_v4 = vpop.f32.mrf.mxu0 }
 0x2ad   : > { %9315 = vst [vmem:[#allocation43_spill] sm:$0xff] %v8320_v12  ;;  %v2569_v6 = vadd.f32 %v2568_v4, %v8084_v26  ;;  %v4939_v26 = vld [vmem:[%s9129_s1 + $0x118] sm:$0xf0]  ;;  %v5940_v4 = vld [vmem:[%s9129_s1 + $0xc] sm:$0xf] }
 0x2ae   : > { %v2712_v51 = vpop.f32.mrf.mxu3  ;;  %v2617_v40 = vpop.f32.mrf.mxu1  ;;  %v4942_v48 = vor.u32 %v5972_v39, %v4939_v26 }
 0x2af   : > { %v8324_v43 = vadd.f32 %v2712_v51, %v2664_v34  ;;  %v2618_v10 = vadd.f32 %v2617_v40, %v2569_v6  ;;  %2763 = vmatmul.bf16.gmra.mxu0 %v7123_v56  ;;  %v4811_v6 = vld [vmem:[%s9129_s1 + $0x18] sm:$0xf0] }
 0x2b0   : > { %2861 = vmatmul.bf16.gmra.mxu2 %v7481_v7  ;;  %v4814_v39 = vor.u32 %v5940_v4, %v4811_v6  ;;  %v6064_v4 = vld [vmem:[%s9129_s1 + $0x3ec] sm:$0xf]  ;;  %v5307_v6 = vld [vmem:[%s9129_s1 + $0x3f8] sm:$0xf0] }
 0x2b1   : > { %2812 = vmatmul.bf16.gmra.mxu1 %v7125_v57  ;;  %3031 = vmatpush.bf16.msrb.mxu2 %v4942_v48  ;;  %v3359_v26 = vmax.f32 %v2618_v10, 0.0  ;;  %v9317_v10 = vld [vmem:[#allocation47_spill] sm:$0xff] }
 0x2b2   : > { %2982 = vmatpush.bf16.msrb.mxu1 %v4814_v39 }
 0x2b3   : > { %2910 = vmatmul.bf16.gmra.mxu3 %v9302_v23  ;;  %v2666_v35 = vpop.f32.mrf.mxu2 }
 0x2b4   : > { %v2667_v61 = vadd.f32 %v2666_v35, %v8167_v46  ;;  %v2570_v47 = vpop.f32.mrf.mxu0 }
 0x2b5   : > { %v2571_v24 = vadd.f32 %v2570_v47, %v8094_v13 }
 0x2b6   : > { %v2715_v1 = vpop.f32.mrf.mxu3  ;;  %v2619_v34 = vpop.f32.mrf.mxu1 }
 0x2b7   : > { %v8344_v51 = vadd.f32 %v2715_v1, %v2667_v61  ;;  %v2620_v40 = vadd.f32 %v2619_v34, %v2571_v24  ;;  %v6128_v24 = vld [vmem:[%s9129_s1 + $0x5ec] sm:$0xf] }
 0x2b9   : > { %v3363_v15 = vmax.f32 %v2620_v40, 0.0  ;;  %v6132_v40 = vld [vmem:[%s9129_s1 + $0x60c] sm:$0xf] }
 0x2bb   : > { %v2668_v48 = vpop.f32.mrf.mxu2  ;;  %v8352_v62 = vpack.c.bf16 %v3363_v15, %v3359_v26  ;;  %v5310_v26 = vor.u32 %v6064_v4, %v5307_v6  ;;  %v5579_v15 = vld [vmem:[%s9129_s1 + $0x618] sm:$0xf0] }
 0x2bc   : > { %v2669_v13 = vadd.f32 %v2668_v48, %v8167_v46  ;;  %v2573_v19 = vpop.f32.mrf.mxu0  ;;  %v5435_v4 = vld [vmem:[%s9129_s1 + $0x4f8] sm:$0xf0] }
 0x2bd   : > { %9316 = vst [vmem:[#allocation45_spill] sm:$0xff] %v8352_v62  ;;  %v2574_v61 = vadd.f32 %v2573_v19, %v8121_v54  ;;  %v5563_v54 = vld [vmem:[%s9129_s1 + $0x5f8] sm:$0xf0]  ;;  %v5582_v19 = vor.u32 %v6132_v40, %v5579_v15  ;;  %3122 = vmatpush.bf16.msra.mxu0 %v5310_v26 }
 0x2be   : > { %v2717_v35 = vpop.f32.mrf.mxu3  ;;  %v2622_v1 = vpop.f32.mrf.mxu1  ;;  %v5566_v34 = vor.u32 %v6128_v24, %v5563_v54  ;;  %v6096_v54 = vld [vmem:[%s9129_s1 + $0x4ec] sm:$0xf] }
 0x2bf   : > { %v8356_v47 = vadd.f32 %v2717_v35, %v2669_v13  ;;  %v2623_v12 = vadd.f32 %v2622_v1, %v2574_v61  ;;  %2768 = vmatmul.bf16.gmra.mxu0 %v7161_v17  ;;  %3276 = vmatpush.bf16.msra.mxu3 %v5582_v19 }
 0x2c0   : > { %2866 = vmatmul.bf16.gmra.mxu2 %v9317_v10  ;;  %v9319_v10 = vld [vmem:[#allocation32_spill] sm:$0xff] }
 0x2c1   : > { %2817 = vmatmul.bf16.gmra.mxu1 %v7163_v22  ;;  %3220 = vmatpush.bf16.msra.mxu2 %v5566_v34  ;;  %v3367_v62 = vmax.f32 %v2623_v12, 0.0  ;;  %v9321_v12 = vld [vmem:[#allocation50_spill] sm:$0xff] }
 0x2c3   : > { %2915 = vmatmul.bf16.gmra.mxu3 %v9305_v60  ;;  %v2671_v39 = vpop.f32.mrf.mxu2 }
 0x2c4   : > { %v2672_v48 = vadd.f32 %v2671_v39, %v8167_v46  ;;  %v2575_v35 = vpop.f32.mrf.mxu0  ;;  %v5438_v39 = vor.u32 %v6096_v54, %v5435_v4  ;;  %v6060_v54 = vld [vmem:[%s9129_s1 + $0x3cc] sm:$0xf]  ;;  %v5291_v4 = vld [vmem:[%s9129_s1 + $0x3d8] sm:$0xf0] }
 0x2c5   : > { %v2576_v61 = vadd.f32 %v2575_v35, %v8131_v63 }
 0x2c6   : > { %v2720_v13 = vpop.f32.mrf.mxu3  ;;  %v2624_v1 = vpop.f32.mrf.mxu1  ;;  %3171 = vmatpush.bf16.msra.mxu1 %v5438_v39  ;;  %v5294_v39 = vor.u32 %v6060_v54, %v5291_v4 }
 0x2c7   : > { %v8382_v24 = vadd.f32 %v2720_v13, %v2672_v48  ;;  %v2625_v6 = vadd.f32 %v2624_v1, %v2576_v61  ;;  %v9320_v61 = vld [vmem:[#allocation33_spill] sm:$0xff] }
 0x2c8   : > { %3123 = vmatpush.bf16.msra.mxu0 %v5294_v39 }
 0x2c9   : > { %v3371_v34 = vmax.f32 %v2625_v6, 0.0 }
 0x2cb   : > { %v2673_v40 = vpop.f32.mrf.mxu2  ;;  %v8390_v63 = vpack.c.bf16 %v3371_v34, %v3367_v62  ;;  %v6124_v62 = vld [vmem:[%s9129_s1 + $0x5cc] sm:$0xf] }
 0x2cc   : > { %v2674_v26 = vadd.f32 %v2673_v40, %v8167_v46  ;;  %v2578_v48 = vpop.f32.mrf.mxu0 }
 0x2cd   : > { %9318 = vst [vmem:[#allocation52_spill] sm:$0xff] %v8390_v63  ;;  %v2579_v13 = vadd.f32 %v2578_v48, %v8152_v18  ;;  %v5547_v18 = vld [vmem:[%s9129_s1 + $0x5d8] sm:$0xf0] }
 0x2ce   : > { %v2722_v15 = vpop.f32.mrf.mxu3  ;;  %v2627_v35 = vpop.f32.mrf.mxu1  ;;  %v5550_v1 = vor.u32 %v6124_v62, %v5547_v18  ;;  %v5419_v62 = vld [vmem:[%s9129_s1 + $0x4d8] sm:$0xf0] }
 0x2cf   : > { %v8394_v19 = vadd.f32 %v2722_v15, %v2674_v26  ;;  %v2628_v60 = vadd.f32 %v2627_v35, %v2579_v13  ;;  %2773 = vmatmul.bf16.gmra.mxu0 %v9319_v10  ;;  %v6092_v35 = vld [vmem:[%s9129_s1 + $0x4cc] sm:$0xf] }
 0x2d0   : > { %2871 = vmatmul.bf16.gmra.mxu2 %v9321_v12  ;;  %v5422_v54 = vor.u32 %v6092_v35, %v5419_v62 }
 0x2d1   : > { %2822 = vmatmul.bf16.gmra.mxu1 %v9320_v61  ;;  %3221 = vmatpush.bf16.msra.mxu2 %v5550_v1  ;;  %v3375_v4 = vmax.f32 %v2628_v60, 0.0  ;;  %v9322_v60 = vld [vmem:[#allocation17_spill] sm:$0xff] }
 0x2d2   : > { %3172 = vmatpush.bf16.msra.mxu1 %v5422_v54 }
 0x2d3   : > { %2920 = vmatmul.bf16.gmra.mxu3 %v9308_v25  ;;  %v2676_v6 = vpop.f32.mrf.mxu2 }
 0x2d4   : > { %v2677_v34 = vadd.f32 %v2676_v6, %v8167_v46  ;;  %v2580_v26 = vpop.f32.mrf.mxu0 }
 0x2d5   : > { %v2581_v15 = vadd.f32 %v2580_v26, %v8161_v38 }
 0x2d6   : > { %v2725_v40 = vpop.f32.mrf.mxu3  ;;  %v2629_v48 = vpop.f32.mrf.mxu1 }
 0x2d7   : > { %v8414_v13 = vadd.f32 %v2725_v40, %v2677_v34  ;;  %v2630_v18 = vadd.f32 %v2629_v48, %v2581_v15  ;;  %v6056_v15 = vld [vmem:[%s9129_s1 + $0x3ac] sm:$0xf] }
 0x2d9   : > { %v3379_v6 = vmax.f32 %v2630_v18, 0.0 }
 0x2db   : > { %v2678_v1 = vpop.f32.mrf.mxu2  ;;  %v8422_v63 = vpack.c.bf16 %v3379_v6, %v3375_v4 }
 0x2dc   : > { %v2679_v38 = vadd.f32 %v2678_v1, %v8167_v46  ;;  %v2739_v34 = vpop.f32.mrf.mxu0  ;;  %v6120_v46 = vld [vmem:[%s9129_s1 + $0x5ac] sm:$0xf] }
 0x2dd   : > { %v2740_v40 = vadd.f32 %v2739_v34, %v8184_v30  ;;  %v5531_v30 = vld [vmem:[%s9129_s1 + $0x5b8] sm:$0xf0] }
 0x2de   : > { %v2727_v39 = vpop.f32.mrf.mxu3  ;;  %v2788_v26 = vpop.f32.mrf.mxu1  ;;  %v5534_v48 = vor.u32 %v6120_v46, %v5531_v30 }
 0x2df   : > { %v8426_v25 = vadd.f32 %v2727_v39, %v2679_v38  ;;  %v2789_v12 = vadd.f32 %v2788_v26, %v2740_v40  ;;  %5599 = vmatmul.msk.bf16.vlgmr.msrb.gmra.mxu0 %vm1921_vm0, %v9287_v14  ;;  %v6088_v38 = vld [vmem:[%s9129_s1 + $0x4ac] sm:$0xf]  ;;  %v5403_v39 = vld [vmem:[%s9129_s1 + $0x4b8] sm:$0xf0] }
 0x2e0   : > { %3032 = vmatmul.bf16.vlgmr.msrb.gmra.mxu2 %v9322_v60  ;;  %v5406_v40 = vor.u32 %v6088_v38, %v5403_v39 }
 0x2e1   : > { %2983 = vmatmul.bf16.vlgmr.msrb.gmra.mxu1 %v9288_v29  ;;  %v5275_v29 = vld [vmem:[%s9129_s1 + $0x3b8] sm:$0xf0]  ;;  %3222 = vmatpush.bf16.msra.mxu2 %v5534_v48 }
 0x2e2   : > { %v5278_v62 = vor.u32 %v6056_v15, %v5275_v29  ;;  %3173 = vmatpush.bf16.msra.mxu1 %v5406_v40  ;;  %v9323_v29 = vld [vmem:[#allocation38_spill] sm:$0xff] }
 0x2e3   : > { %3081 = vmatmul.bf16.vlgmr.msrb.gmra.mxu3 %v6915_v52  ;;  %v2837_v35 = vpop.f32.mrf.mxu2 }
 0x2e4   : > { %v2838_v52 = vadd.f32 %v2837_v35, %v2789_v12  ;;  %v2741_v54 = vpop.f32.mrf.mxu0  ;;  %3124 = vmatpush.bf16.msra.mxu0 %v5278_v62  ;;  %v9324_v35 = vld [vmem:[#allocation18_spill] sm:$0xff]  ;;  %v9325_v62 = vld [vmem:[#allocation19_spill] sm:$0xff] }
 0x2e5   : > { %v2742_v4 = vadd.f32 %v2741_v54, %v8196_v36 }
 0x2e6   : > { %v2886_v18 = vpop.f32.mrf.mxu3  ;;  %v2790_v6 = vpop.f32.mrf.mxu1 }
 0x2e7   : > { %v8446_v1 = vadd.f32 %v2886_v18, %v2838_v52  ;;  %v2791_v34 = vadd.f32 %v2790_v6, %v2742_v4  ;;  %v6116_v52 = vld [vmem:[%s9129_s1 + $0x58c] sm:$0xf]  ;;  %v5259_v4 = vld [vmem:[%s9129_s1 + $0x398] sm:$0xf0] }
 0x2e8   : > { %v6052_v18 = vld [vmem:[%s9129_s1 + $0x38c] sm:$0xf] }
 0x2e9   : > { %v5262_v38 = vor.u32 %v6052_v18, %v5259_v4  ;;  %v9326_v4 = vld [vmem:[#allocation40_spill] sm:$0xff] }
 0x2eb   : > { %v2839_v12 = vpop.f32.mrf.mxu2  ;;  %3125 = vmatpush.bf16.msra.mxu0 %v5262_v38  ;;  %v9328_v38 = vld [vmem:[#allocation21_spill] sm:$0xff] }
 0x2ec   : > { %v2840_v26 = vadd.f32 %v2839_v12, %v2791_v34  ;;  %v2744_v46 = vpop.f32.mrf.mxu0 }
 0x2ed   : > { %v2745_v36 = vadd.f32 %v2744_v46, %v8216_v33  ;;  %v5515_v33 = vld [vmem:[%s9129_s1 + $0x598] sm:$0xf0] }
 0x2ee   : > { %v2888_v60 = vpop.f32.mrf.mxu3  ;;  %v2793_v30 = vpop.f32.mrf.mxu1  ;;  %v5518_v54 = vor.u32 %v6116_v52, %v5515_v33  ;;  %v5387_v46 = vld [vmem:[%s9129_s1 + $0x498] sm:$0xf0] }
 0x2ef   : > { %v8455_v15 = vadd.f32 %v2888_v60, %v2840_v26  ;;  %v2794_v48 = vadd.f32 %v2793_v30, %v2745_v36  ;;  %5600 = vmatmul.msk.bf16.gmra.mxu0 %vm1921_vm0, %v9323_v29  ;;  %v6084_v60 = vld [vmem:[%s9129_s1 + $0x48c] sm:$0xf] }
 0x2f0   : > { %3037 = vmatmul.bf16.gmra.mxu2 %v9325_v62  ;;  %v5390_v30 = vor.u32 %v6084_v60, %v5387_v46 }
 0x2f1   : > { %2988 = vmatmul.bf16.gmra.mxu1 %v9324_v35  ;;  %3223 = vmatpush.bf16.msra.mxu2 %v5518_v54 }
 0x2f2   : > { %3174 = vmatpush.bf16.msra.mxu1 %v5390_v30 }
 0x2f3   : > { %3086 = vmatmul.bf16.gmra.mxu3 %v6971_v20  ;;  %v2842_v6 = vpop.f32.mrf.mxu2 }
 0x2f4   : > { %v2843_v20 = vadd.f32 %v2842_v6, %v2794_v48  ;;  %v2746_v34 = vpop.f32.mrf.mxu0  ;;  %v9327_v6 = vld [vmem:[#allocation20_spill] sm:$0xff] }
 0x2f5   : > { %v2747_v40 = vadd.f32 %v2746_v34, %v8228_v44 }
 0x2f6   : > { %v2891_v39 = vpop.f32.mrf.mxu3  ;;  %v2795_v12 = vpop.f32.mrf.mxu1 }
 0x2f7   : > { %v8475_v26 = vadd.f32 %v2891_v39, %v2843_v20  ;;  %v2796_v36 = vadd.f32 %v2795_v12, %v2747_v40  ;;  %v6112_v20 = vld [vmem:[%s9129_s1 + $0x56c] sm:$0xf]  ;;  %v5243_v40 = vld [vmem:[%s9129_s1 + $0x378] sm:$0xf0] }
 0x2f8   : > { %v6048_v39 = vld [vmem:[%s9129_s1 + $0x36c] sm:$0xf] }
 0x2f9   : > { %v5246_v60 = vor.u32 %v6048_v39, %v5243_v40  ;;  %v9329_v40 = vld [vmem:[#allocation42_spill] sm:$0xff] }
 0x2fb   : > { %v2844_v48 = vpop.f32.mrf.mxu2  ;;  %3126 = vmatpush.bf16.msra.mxu0 %v5246_v60  ;;  %v9331_v60 = vld [vmem:[#allocation23_spill] sm:$0xff] }
 0x2fc   : > { %v2845_v35 = vadd.f32 %v2844_v48, %v2796_v36  ;;  %v2749_v52 = vpop.f32.mrf.mxu0 }
 0x2fd   : > { %v2750_v44 = vadd.f32 %v2749_v52, %v8248_v31  ;;  %v5499_v31 = vld [vmem:[%s9129_s1 + $0x578] sm:$0xf0] }
 0x2fe   : > { %v2893_v62 = vpop.f32.mrf.mxu3  ;;  %v2798_v33 = vpop.f32.mrf.mxu1  ;;  %v5502_v34 = vor.u32 %v6112_v20, %v5499_v31  ;;  %v5371_v52 = vld [vmem:[%s9129_s1 + $0x478] sm:$0xf0] }
 0x2ff   : > { %v8484_v18 = vadd.f32 %v2893_v62, %v2845_v35  ;;  %v2799_v54 = vadd.f32 %v2798_v33, %v2750_v44  ;;  %5601 = vmatmul.msk.bf16.gmra.mxu0 %vm1921_vm0, %v9326_v4  ;;  %v6080_v62 = vld [vmem:[%s9129_s1 + $0x46c] sm:$0xf] }
 0x300   : > { %3042 = vmatmul.bf16.gmra.mxu2 %v9328_v38  ;;  %v5374_v33 = vor.u32 %v6080_v62, %v5371_v52 }
 0x301   : > { %2993 = vmatmul.bf16.gmra.mxu1 %v9327_v6  ;;  %3224 = vmatpush.bf16.msra.mxu2 %v5502_v34 }
 0x302   : > { %3175 = vmatpush.bf16.msra.mxu1 %v5374_v33 }
 0x303   : > { %3091 = vmatmul.bf16.gmra.mxu3 %v7009_v41  ;;  %v2847_v12 = vpop.f32.mrf.mxu2 }
 0x304   : > { %v2848_v41 = vadd.f32 %v2847_v12, %v2799_v54  ;;  %v2751_v36 = vpop.f32.mrf.mxu0  ;;  %v9330_v12 = vld [vmem:[#allocation22_spill] sm:$0xff] }
 0x305   : > { %v2752_v30 = vadd.f32 %v2751_v36, %v8260_v37 }
 0x306   : > { %v2896_v46 = vpop.f32.mrf.mxu3  ;;  %v2800_v48 = vpop.f32.mrf.mxu1 }
 0x307   : > { %v8504_v35 = vadd.f32 %v2896_v46, %v2848_v41  ;;  %v2801_v44 = vadd.f32 %v2800_v48, %v2752_v30  ;;  %v6108_v41 = vld [vmem:[%s9129_s1 + $0x54c] sm:$0xf]  ;;  %v5227_v30 = vld [vmem:[%s9129_s1 + $0x358] sm:$0xf0] }
 0x308   : > { %v6044_v46 = vld [vmem:[%s9129_s1 + $0x34c] sm:$0xf] }
 0x309   : > { %v5230_v62 = vor.u32 %v6044_v46, %v5227_v30  ;;  %v9332_v30 = vld [vmem:[#allocation44_spill] sm:$0xff] }
 0x30b   : > { %v2849_v54 = vpop.f32.mrf.mxu2  ;;  %3127 = vmatpush.bf16.msra.mxu0 %v5230_v62  ;;  %v9334_v62 = vld [vmem:[#allocation25_spill] sm:$0xff] }
 0x30c   : > { %v2850_v6 = vadd.f32 %v2849_v54, %v2801_v44  ;;  %v2754_v20 = vpop.f32.mrf.mxu0 }
 0x30d   : > { %v2755_v37 = vadd.f32 %v2754_v20, %v8280_v50  ;;  %v5483_v50 = vld [vmem:[%s9129_s1 + $0x558] sm:$0xf0] }
 0x30e   : > { %v2898_v38 = vpop.f32.mrf.mxu3  ;;  %v2803_v31 = vpop.f32.mrf.mxu1  ;;  %v5486_v36 = vor.u32 %v6108_v41, %v5483_v50  ;;  %v5355_v20 = vld [vmem:[%s9129_s1 + $0x458] sm:$0xf0] }
 0x30f   : > { %v8513_v39 = vadd.f32 %v2898_v38, %v2850_v6  ;;  %v2804_v34 = vadd.f32 %v2803_v31, %v2755_v37  ;;  %5602 = vmatmul.msk.bf16.gmra.mxu0 %vm1921_vm0, %v9329_v40  ;;  %v6076_v38 = vld [vmem:[%s9129_s1 + $0x44c] sm:$0xf] }
 0x310   : > { %3047 = vmatmul.bf16.gmra.mxu2 %v9331_v60  ;;  %v5358_v31 = vor.u32 %v6076_v38, %v5355_v20 }
 0x311   : > { %2998 = vmatmul.bf16.gmra.mxu1 %v9330_v12  ;;  %3225 = vmatpush.bf16.msra.mxu2 %v5486_v36 }
 0x312   : > { %3176 = vmatpush.bf16.msra.mxu1 %v5358_v31 }
 0x313   : > { %3096 = vmatmul.bf16.gmra.mxu3 %v7047_v2  ;;  %v2852_v48 = vpop.f32.mrf.mxu2 }
 0x314   : > { %v2853_v2 = vadd.f32 %v2852_v48, %v2804_v34  ;;  %v2756_v44 = vpop.f32.mrf.mxu0  ;;  %v9333_v48 = vld [vmem:[#allocation24_spill] sm:$0xff] }
 0x315   : > { %v2757_v33 = vadd.f32 %v2756_v44, %v8292_v0 }
 0x316   : > { %v2901_v52 = vpop.f32.mrf.mxu3  ;;  %v2805_v54 = vpop.f32.mrf.mxu1 }
 0x317   : > { %v8533_v6 = vadd.f32 %v2901_v52, %v2853_v2  ;;  %v2806_v37 = vadd.f32 %v2805_v54, %v2757_v33  ;;  %v6104_v2 = vld [vmem:[%s9129_s1 + $0x52c] sm:$0xf]  ;;  %v5211_v33 = vld [vmem:[%s9129_s1 + $0x338] sm:$0xf0] }
 0x318   : > { %v6040_v52 = vld [vmem:[%s9129_s1 + $0x32c] sm:$0xf] }
 0x319   : > { %v5214_v38 = vor.u32 %v6040_v52, %v5211_v33  ;;  %v9335_v33 = vld [vmem:[#allocation46_spill] sm:$0xff] }
 0x31b   : > { %v2854_v34 = vpop.f32.mrf.mxu2  ;;  %3128 = vmatpush.bf16.msra.mxu0 %v5214_v38  ;;  %v9337_v38 = vld [vmem:[#allocation27_spill] sm:$0xff] }
 0x31c   : > { %v2855_v12 = vadd.f32 %v2854_v34, %v2806_v37  ;;  %v2759_v41 = vpop.f32.mrf.mxu0 }
 0x31d   : > { %v2760_v0 = vadd.f32 %v2759_v41, %v8312_v53  ;;  %v5467_v53 = vld [vmem:[%s9129_s1 + $0x538] sm:$0xf0] }
 0x31e   : > { %v2903_v60 = vpop.f32.mrf.mxu3  ;;  %v2808_v50 = vpop.f32.mrf.mxu1  ;;  %v5470_v44 = vor.u32 %v6104_v2, %v5467_v53  ;;  %v5339_v41 = vld [vmem:[%s9129_s1 + $0x438] sm:$0xf0] }
 0x31f   : > { %v8542_v46 = vadd.f32 %v2903_v60, %v2855_v12  ;;  %v2809_v36 = vadd.f32 %v2808_v50, %v2760_v0  ;;  %5603 = vmatmul.msk.bf16.gmra.mxu0 %vm1921_vm0, %v9332_v30  ;;  %v6072_v60 = vld [vmem:[%s9129_s1 + $0x42c] sm:$0xf] }
 0x320   : > { %3052 = vmatmul.bf16.gmra.mxu2 %v9334_v62  ;;  %v5342_v50 = vor.u32 %v6072_v60, %v5339_v41 }
 0x321   : > { %3003 = vmatmul.bf16.gmra.mxu1 %v9333_v48  ;;  %3226 = vmatpush.bf16.msra.mxu2 %v5470_v44 }
 0x322   : > { %3177 = vmatpush.bf16.msra.mxu1 %v5342_v50 }
 0x323   : > { %3101 = vmatmul.bf16.gmra.mxu3 %v7085_v27  ;;  %v2857_v54 = vpop.f32.mrf.mxu2 }
 0x324   : > { %v2858_v27 = vadd.f32 %v2857_v54, %v2809_v36  ;;  %v2761_v37 = vpop.f32.mrf.mxu0  ;;  %v9336_v54 = vld [vmem:[#allocation26_spill] sm:$0xff] }
 0x325   : > { %v2762_v31 = vadd.f32 %v2761_v37, %v8324_v43 }
 0x326   : > { %v2906_v20 = vpop.f32.mrf.mxu3  ;;  %v2810_v34 = vpop.f32.mrf.mxu1 }
 0x327   : > { %v8562_v12 = vadd.f32 %v2906_v20, %v2858_v27  ;;  %v2811_v0 = vadd.f32 %v2810_v34, %v2762_v31  ;;  %v6100_v27 = vld [vmem:[%s9129_s1 + $0x50c] sm:$0xf]  ;;  %v5195_v31 = vld [vmem:[%s9129_s1 + $0x318] sm:$0xf0] }
 0x328   : > { %v6036_v20 = vld [vmem:[%s9129_s1 + $0x30c] sm:$0xf] }
 0x329   : > { %v5198_v60 = vor.u32 %v6036_v20, %v5195_v31  ;;  %v9338_v31 = vld [vmem:[#allocation49_spill] sm:$0xff] }
 0x32b   : > { %v2859_v36 = vpop.f32.mrf.mxu2  ;;  %3129 = vmatpush.bf16.msra.mxu0 %v5198_v60  ;;  %v9340_v60 = vld [vmem:[#allocation29_spill] sm:$0xff] }
 0x32c   : > { %v2860_v48 = vadd.f32 %v2859_v36, %v2811_v0  ;;  %v2764_v2 = vpop.f32.mrf.mxu0 }
 0x32d   : > { %v2765_v43 = vadd.f32 %v2764_v2, %v8344_v51  ;;  %v5451_v51 = vld [vmem:[%s9129_s1 + $0x518] sm:$0xf0] }
 0x32e   : > { %v2908_v62 = vpop.f32.mrf.mxu3  ;;  %v2813_v53 = vpop.f32.mrf.mxu1  ;;  %v5454_v37 = vor.u32 %v6100_v27, %v5451_v51  ;;  %v5323_v2 = vld [vmem:[%s9129_s1 + $0x418] sm:$0xf0] }
 0x32f   : > { %v8571_v52 = vadd.f32 %v2908_v62, %v2860_v48  ;;  %v2814_v44 = vadd.f32 %v2813_v53, %v2765_v43  ;;  %5604 = vmatmul.msk.bf16.gmra.mxu0 %vm1921_vm0, %v9335_v33  ;;  %v6068_v62 = vld [vmem:[%s9129_s1 + $0x40c] sm:$0xf] }
 0x330   : > { %3057 = vmatmul.bf16.gmra.mxu2 %v9337_v38  ;;  %v5326_v53 = vor.u32 %v6068_v62, %v5323_v2 }
 0x331   : > { %3008 = vmatmul.bf16.gmra.mxu1 %v9336_v54  ;;  %3227 = vmatpush.bf16.msra.mxu2 %v5454_v37 }
 0x332   : > { %3178 = vmatpush.bf16.msra.mxu1 %v5326_v53 }
 0x333   : > { %3106 = vmatmul.bf16.gmra.mxu3 %v7123_v56  ;;  %v2862_v34 = vpop.f32.mrf.mxu2 }
 0x334   : > { %v2863_v56 = vadd.f32 %v2862_v34, %v2814_v44  ;;  %v2766_v0 = vpop.f32.mrf.mxu0  ;;  %v9339_v34 = vld [vmem:[#allocation28_spill] sm:$0xff] }
 0x335   : > { %v2767_v50 = vadd.f32 %v2766_v0, %v8356_v47 }
 0x336   : > { %v2911_v41 = vpop.f32.mrf.mxu3  ;;  %v2815_v36 = vpop.f32.mrf.mxu1 }
 0x337   : > { %v8591_v48 = vadd.f32 %v2911_v41, %v2863_v56  ;;  %v2816_v43 = vadd.f32 %v2815_v36, %v2767_v50 }
 0x33b   : > { %v2864_v44 = vpop.f32.mrf.mxu2 }
 0x33c   : > { %v2865_v54 = vadd.f32 %v2864_v44, %v2816_v43  ;;  %v2769_v27 = vpop.f32.mrf.mxu0 }
 0x33d   : > { %v2770_v47 = vadd.f32 %v2769_v27, %v8382_v24 }
 0x33e   : > { %v2913_v38 = vpop.f32.mrf.mxu3  ;;  %v2818_v51 = vpop.f32.mrf.mxu1 }
 0x33f   : > { %v8600_v20 = vadd.f32 %v2913_v38, %v2865_v54  ;;  %v2819_v37 = vadd.f32 %v2818_v51, %v2770_v47  ;;  %5605 = vmatmul.msk.bf16.gmra.mxu0 %vm1921_vm0, %v9338_v31  ;;  %v5801_v51 = vld [vmem:[#allocation2 + $0x170] sm:$0xf] }
 0x340   : > { %3062 = vmatmul.bf16.gmra.mxu2 %v9340_v60 }
 0x341   : > { %3013 = vmatmul.bf16.gmra.mxu1 %v9339_v34 }
 0x343   : > { %3111 = vmatmul.bf16.gmra.mxu3 %v7161_v17  ;;  %v2867_v56 = vpop.f32.mrf.mxu2 }
 0x344   : > { %v2868_v41 = vadd.f32 %v2867_v56, %v2819_v37  ;;  %v2771_v50 = vpop.f32.mrf.mxu0  ;;  %v6182_v37 = vld [vmem:[#allocation2 + $0x174] sm:$0xf0] }
 0x345   : > { %v2772_v36 = vadd.f32 %v2771_v50, %v8394_v19  ;;  %v9341_v19 = vld [vmem:[#allocation31_spill] sm:$0xff]  ;;  %v5802_v34 = vor.u32 %v6182_v37, %v5801_v51  ;;  %v6307_v37 = vld [vmem:[%s9130_s2] sm:$0xf] }
 0x346   : > { %v2916_v0 = vpop.f32.mrf.mxu3  ;;  %v2820_v24 = vpop.f32.mrf.mxu1 }
 0x347   : > { %v8608_v62 = vadd.f32 %v2916_v0, %v2868_v41  ;;  %v2821_v2 = vadd.f32 %v2820_v24, %v2772_v36  ;;  %3902 = vmatpush.bf16.msrb.mxu2 %v5802_v34  ;;  %v5673_v24 = vld [vmem:[#allocation2 + $0x70] sm:$0xf]  ;;  %v8624_v34 = vperm.slane %v6307_v37, 3  ;;  %v5729_v37 = vld [vmem:[#allocation2 + $0xe0] sm:$0xf] }
 0x34b   : > { %v2869_v43 = vpop.f32.mrf.mxu2 }
 0x34c   : > { %v2870_v53 = vadd.f32 %v2869_v43, %v2821_v2  ;;  %v2774_v54 = vpop.f32.mrf.mxu0  ;;  %v6150_v2 = vld [vmem:[#allocation2 + $0x74] sm:$0xf0] }
 0x34d   : > { %v2775_v38 = vadd.f32 %v2774_v54, %v8414_v13  ;;  %v6166_v54 = vld [vmem:[#allocation2 + $0xf4] sm:$0xf0] }
 0x34e   : > { %v2918_v44 = vpop.f32.mrf.mxu3  ;;  %v2823_v27 = vpop.f32.mrf.mxu1 }
 0x34f   : > { %v8611_v47 = vadd.f32 %v2918_v44, %v2870_v53  ;;  %v2824_v17 = vadd.f32 %v2823_v27, %v2775_v38  ;;  %5606 = vmatmul.msk.bf16.gmra.mxu0 %vm1921_vm0, %v9309_v32  ;;  %v5674_v53 = vor.u32 %v6150_v2, %v5673_v24  ;;  %v6198_v44 = vld [vmem:[#allocation2 + $0x1f4] sm:$0xf0]  ;;  %v5793_v24 = vld [vmem:[#allocation2 + $0x160] sm:$0xf]  ;;  %v6180_v2 = vld [vmem:[#allocation2 + $0x164] sm:$0xf0] }
 0x350   : > { %3067 = vmatmul.bf16.gmra.mxu2 %v9341_v19 }
 0x351   : > { %3018 = vmatmul.bf16.gmra.mxu1 %v9310_v16  ;;  %v5865_v16 = vld [vmem:[#allocation2 + $0x1f0] sm:$0xf]  ;;  %3804 = vmatpush.bf16.msrb.mxu0 %v5674_v53 }
 0x352   : > { %v5866_v38 = vor.u32 %v6198_v44, %v5865_v16  ;;  %v5794_v16 = vor.u32 %v6180_v2, %v5793_v24 }
 0x353   : > { %3116 = vmatmul.bf16.gmra.mxu3 %v9319_v10  ;;  %v2872_v60 = vpop.f32.mrf.mxu2  ;;  %v5737_v10 = vld [vmem:[#allocation2 + $0xf0] sm:$0xf] }
 0x354   : > { %v2873_v56 = vadd.f32 %v2872_v60, %v2824_v17  ;;  %v2776_v13 = vpop.f32.mrf.mxu0  ;;  %v5738_v27 = vor.u32 %v6166_v54, %v5737_v10  ;;  %3951 = vmatpush.bf16.msrb.mxu3 %v5866_v38  ;;  %3903 = vmatpush.bf16.msrb.mxu2 %v5794_v16  ;;  %v5665_v38 = vld [vmem:[#allocation2 + $0x60] sm:$0xf] }
 0x355   : > { %v2777_v0 = vadd.f32 %v2776_v13, %v8426_v25 }
 0x356   : > { %v2921_v41 = vpop.f32.mrf.mxu3  ;;  %v2825_v50 = vpop.f32.mrf.mxu1  ;;  %3853 = vmatpush.bf16.msrb.mxu1 %v5738_v27  ;;  %v6148_v27 = vld [vmem:[#allocation2 + $0x64] sm:$0xf0] }
 0x357   : > { %v8619_v36 = vadd.f32 %v2921_v41, %v2873_v56  ;;  %v2826_v43 = vadd.f32 %v2825_v50, %v2777_v0  ;;  %v9342_v0 = vld [vmem:[#allocation34_spill] sm:$0xff]  ;;  %v9343_v50 = vld [vmem:[#allocation35_spill] sm:$0xff] }
 0x35b   : > { %v2874_v17 = vpop.f32.mrf.mxu2 }
 0x35c   : > { %v2875_v19 = vadd.f32 %v2874_v17, %v2826_v43  ;;  %v2935_v25 = vpop.f32.mrf.mxu0  ;;  %v5857_v17 = vld [vmem:[#allocation2 + $0x1e0] sm:$0xf] }
 0x35d   : > { %v2936_v60 = vadd.f32 %v2935_v25, %v8446_v1  ;;  %v5666_v25 = vor.u32 %v6148_v27, %v5665_v38 }
 0x35e   : > { %v2923_v51 = vpop.f32.mrf.mxu3  ;;  %v2984_v56 = vpop.f32.mrf.mxu1 }
 0x35f   : > { %v8627_v41 = vadd.f32 %v2923_v51, %v2875_v19  ;;  %3130 = vmatmul.bf16.vlgmr.msra.gmra.mxu0 %v6923_v55  ;;  %v2985_v13 = vadd.f32 %v2984_v56, %v8624_v34  ;;  %v3320_v19 = vmax.f32 %v2936_v60, 0.0 }
 0x360   : > { %3228 = vmatmul.bf16.vlgmr.msra.gmra.mxu2 %v9343_v50  ;;  %3805 = vmatpush.bf16.msrb.mxu0 %v5666_v25 }
 0x361   : > { %3179 = vmatmul.bf16.vlgmr.msra.gmra.mxu1 %v9342_v0  ;;  %v6164_v0 = vld [vmem:[#allocation2 + $0xe4] sm:$0xf0] }
 0x363   : > { %5607 = vmatmul.msk.bf16.vlgmr.msra.gmra.mxu3 %vm1921_vm0, %v9287_v14  ;;  %v3033_v43 = vpop.f32.mrf.mxu2  ;;  %v6196_v14 = vld [vmem:[#allocation2 + $0x1e4] sm:$0xf0] }
 0x364   : > { %v3034_v53 = vadd.f32 %v3033_v43, %v2985_v13  ;;  %v2937_v44 = vpop.f32.mrf.mxu0  ;;  %v5858_v56 = vor.u32 %v6196_v14, %v5857_v17  ;;  %v5730_v13 = vor.u32 %v6164_v0, %v5729_v37  ;;  %v5657_v14 = vld [vmem:[#allocation2 + $0x50] sm:$0xf] }
 0x365   : > { %v2938_v10 = vadd.f32 %v2937_v44, %v8455_v15  ;;  %v5849_v37 = vld [vmem:[#allocation2 + $0x1d0] sm:$0xf] }
 0x366   : > { %v3082_v1 = vpop.f32.mrf.mxu3  ;;  %v2986_v55 = vpop.f32.mrf.mxu1  ;;  %3952 = vmatpush.bf16.msrb.mxu3 %v5858_v56  ;;  %3854 = vmatpush.bf16.msrb.mxu1 %v5730_v13  ;;  %v5721_v13 = vld [vmem:[#allocation2 + $0xd0] sm:$0xf] }
 0x367   : > { %v8636_v54 = vadd.f32 %v3082_v1, %v3034_v53  ;;  %v3324_v51 = vmax.f32 %v2938_v10, 0.0  ;;  %v2987_v24 = vadd.f32 %v2986_v55, %v8624_v34  ;;  %v5785_v10 = vld [vmem:[#allocation2 + $0x150] sm:$0xf]  ;;  %v6178_v55 = vld [vmem:[#allocation2 + $0x154] sm:$0xf0] }
 0x368   : > { %v5786_v38 = vor.u32 %v6178_v55, %v5785_v10 }
 0x369   : > { %v8638_v50 = vpack.c.bf16 %v3324_v51, %v3320_v19 }
 0x36a   : > { %3904 = vmatpush.bf16.msrb.mxu2 %v5786_v38 }
 0x36b   : > { %v3035_v15 = vpop.f32.mrf.mxu2 }
 0x36c   : > { %v3036_v2 = vadd.f32 %v3035_v15, %v2987_v24  ;;  %v2940_v43 = vpop.f32.mrf.mxu0  ;;  %v6162_v15 = vld [vmem:[#allocation2 + $0xd4] sm:$0xf0] }
 0x36d   : > { %v2941_v60 = vadd.f32 %v2940_v43, %v8475_v26 }
 0x36e   : > { %v3084_v16 = vpop.f32.mrf.mxu3  ;;  %v2989_v53 = vpop.f32.mrf.mxu1 }
 0x36f   : > { %v8642_v1 = vadd.f32 %v3084_v16, %v3036_v2  ;;  %3135 = vmatmul.bf16.gmra.mxu0 %v6973_v21  ;;  %v2990_v44 = vadd.f32 %v2989_v53, %v8624_v34  ;;  %v5722_v2 = vor.u32 %v6162_v15, %v5721_v13  ;;  %v5713_v13 = vld [vmem:[#allocation2 + $0xc0] sm:$0xf]  ;;  %v6160_v15 = vld [vmem:[#allocation2 + $0xc4] sm:$0xf0] }
 0x370   : > { %3233 = vmatmul.bf16.gmra.mxu2 %v9290_v58  ;;  %v3328_v58 = vmax.f32 %v2941_v60, 0.0 }
 0x371   : > { %3184 = vmatmul.bf16.gmra.mxu1 %v7293_v45  ;;  %v6146_v45 = vld [vmem:[#allocation2 + $0x54] sm:$0xf0] }
 0x372   : > { %v5658_v0 = vor.u32 %v6146_v45, %v5657_v14  ;;  %3855 = vmatpush.bf16.msrb.mxu1 %v5722_v2  ;;  %v5714_v2 = vor.u32 %v6160_v15, %v5713_v13 }
 0x373   : > { %5608 = vmatmul.msk.bf16.gmra.mxu3 %vm1921_vm0, %v9323_v29  ;;  %v3038_v27 = vpop.f32.mrf.mxu2  ;;  %v6194_v29 = vld [vmem:[#allocation2 + $0x1d4] sm:$0xf0] }
 0x374   : > { %v3039_v17 = vadd.f32 %v3038_v27, %v2990_v44  ;;  %v2942_v19 = vpop.f32.mrf.mxu0  ;;  %v5850_v24 = vor.u32 %v6194_v29, %v5849_v37  ;;  %3806 = vmatpush.bf16.msrb.mxu0 %v5658_v0 }
 0x375   : > { %v2943_v51 = vadd.f32 %v2942_v19, %v8484_v18 }
 0x376   : > { %v3087_v26 = vpop.f32.mrf.mxu3  ;;  %v2991_v21 = vpop.f32.mrf.mxu1  ;;  %3953 = vmatpush.bf16.msrb.mxu3 %v5850_v24  ;;  %3856 = vmatpush.bf16.msrb.mxu1 %v5714_v2 }
 0x377   : > { %v8651_v25 = vadd.f32 %v3087_v26, %v3039_v17  ;;  %v3332_v56 = vmax.f32 %v2943_v51, 0.0  ;;  %v2992_v43 = vadd.f32 %v2991_v21, %v8624_v34  ;;  %v5777_v17 = vld [vmem:[#allocation2 + $0x140] sm:$0xf]  ;;  %v6176_v26 = vld [vmem:[#allocation2 + $0x144] sm:$0xf0] }
 0x378   : > { %v5778_v19 = vor.u32 %v6176_v26, %v5777_v17  ;;  %v5769_v26 = vld [vmem:[#allocation2 + $0x130] sm:$0xf] }
 0x379   : > { %v8653_v16 = vpack.c.bf16 %v3332_v56, %v3328_v58  ;;  %v5649_v58 = vld [vmem:[#allocation2 + $0x40] sm:$0xf] }
 0x37a   : > { %3905 = vmatpush.bf16.msrb.mxu2 %v5778_v19  ;;  %v5841_v56 = vld [vmem:[#allocation2 + $0x1c0] sm:$0xf]  ;;  %v6174_v19 = vld [vmem:[#allocation2 + $0x134] sm:$0xf0] }
 0x37b   : > { %v3040_v18 = vpop.f32.mrf.mxu2 }
 0x37c   : > { %v3041_v53 = vadd.f32 %v3040_v18, %v2992_v43  ;;  %v2945_v10 = vpop.f32.mrf.mxu0 }
 0x37d   : > { %v2946_v60 = vadd.f32 %v2945_v10, %v8504_v35 }
 0x37e   : > { %v3089_v44 = vpop.f32.mrf.mxu3  ;;  %v2994_v55 = vpop.f32.mrf.mxu1 }
 0x37f   : > { %v8657_v38 = vadd.f32 %v3089_v44, %v3041_v53  ;;  %3140 = vmatmul.bf16.gmra.mxu0 %v7011_v42  ;;  %v2995_v27 = vadd.f32 %v2994_v55, %v8624_v34 }
 0x380   : > { %3238 = vmatmul.bf16.gmra.mxu2 %v9293_v5  ;;  %v3336_v5 = vmax.f32 %v2946_v60, 0.0 }
 0x381   : > { %3189 = vmatmul.bf16.gmra.mxu1 %v7340_v11  ;;  %v6144_v11 = vld [vmem:[#allocation2 + $0x44] sm:$0xf0] }
 0x382   : > { %v5650_v29 = vor.u32 %v6144_v11, %v5649_v58  ;;  %v5641_v58 = vld [vmem:[#allocation2 + $0x30] sm:$0xf] }
 0x383   : > { %5609 = vmatmul.msk.bf16.gmra.mxu3 %vm1921_vm0, %v9326_v4  ;;  %v3043_v51 = vpop.f32.mrf.mxu2  ;;  %v6192_v4 = vld [vmem:[#allocation2 + $0x1c4] sm:$0xf0]  ;;  %v5833_v11 = vld [vmem:[#allocation2 + $0x1b0] sm:$0xf] }
 0x384   : > { %v3044_v21 = vadd.f32 %v3043_v51, %v2995_v27  ;;  %v2947_v14 = vpop.f32.mrf.mxu0  ;;  %v5842_v24 = vor.u32 %v6192_v4, %v5841_v56  ;;  %3807 = vmatpush.bf16.msrb.mxu0 %v5650_v29  ;;  %v5770_v51 = vor.u32 %v6174_v19, %v5769_v26  ;;  %v6158_v4 = vld [vmem:[#allocation2 + $0xb4] sm:$0xf0] }
 0x385   : > { %v2948_v45 = vadd.f32 %v2947_v14, %v8513_v39 }
 0x386   : > { %v3092_v35 = vpop.f32.mrf.mxu3  ;;  %v2996_v42 = vpop.f32.mrf.mxu1  ;;  %3954 = vmatpush.bf16.msrb.mxu3 %v5842_v24  ;;  %3906 = vmatpush.bf16.msrb.mxu2 %v5770_v51 }
 0x387   : > { %v8666_v37 = vadd.f32 %v3092_v35, %v3044_v21  ;;  %v3340_v0 = vmax.f32 %v2948_v45, 0.0  ;;  %v2997_v18 = vadd.f32 %v2996_v42, %v8624_v34 }
 0x389   : > { %v8668_v43 = vpack.c.bf16 %v3340_v0, %v3336_v5  ;;  %v5705_v0 = vld [vmem:[#allocation2 + $0xb0] sm:$0xf] }
 0x38a   : > { %v5706_v13 = vor.u32 %v6158_v4, %v5705_v0 }
 0x38b   : > { %v3045_v39 = vpop.f32.mrf.mxu2 }
 0x38c   : > { %v3046_v53 = vadd.f32 %v3045_v39, %v2997_v18  ;;  %v2950_v10 = vpop.f32.mrf.mxu0  ;;  %3857 = vmatpush.bf16.msrb.mxu1 %v5706_v13 }
 0x38d   : > { %v2951_v60 = vadd.f32 %v2950_v10, %v8533_v6 }
 0x38e   : > { %v3094_v44 = vpop.f32.mrf.mxu3  ;;  %v2999_v55 = vpop.f32.mrf.mxu1 }
 0x38f   : > { %v8672_v27 = vadd.f32 %v3094_v44, %v3046_v53  ;;  %3145 = vmatmul.bf16.gmra.mxu0 %v7049_v3  ;;  %v3000_v17 = vadd.f32 %v2999_v55, %v8624_v34  ;;  %v5761_v55 = vld [vmem:[#allocation2 + $0x120] sm:$0xf] }
 0x390   : > { %3243 = vmatmul.bf16.gmra.mxu2 %v9296_v49  ;;  %v3344_v49 = vmax.f32 %v2951_v60, 0.0 }
 0x391   : > { %3194 = vmatmul.bf16.gmra.mxu1 %v7387_v8  ;;  %v6142_v8 = vld [vmem:[#allocation2 + $0x34] sm:$0xf0] }
 0x392   : > { %v5642_v5 = vor.u32 %v6142_v8, %v5641_v58  ;;  %v5697_v8 = vld [vmem:[#allocation2 + $0xa0] sm:$0xf] }
 0x393   : > { %5610 = vmatmul.msk.bf16.gmra.mxu3 %vm1921_vm0, %v9329_v40  ;;  %v3048_v21 = vpop.f32.mrf.mxu2  ;;  %v6190_v40 = vld [vmem:[#allocation2 + $0x1b4] sm:$0xf0] }
 0x394   : > { %v3049_v35 = vadd.f32 %v3048_v21, %v3000_v17  ;;  %v2952_v14 = vpop.f32.mrf.mxu0  ;;  %v5834_v29 = vor.u32 %v6190_v40, %v5833_v11  ;;  %3808 = vmatpush.bf16.msrb.mxu0 %v5642_v5  ;;  %v6172_v17 = vld [vmem:[#allocation2 + $0x124] sm:$0xf0] }
 0x395   : > { %v2953_v45 = vadd.f32 %v2952_v14, %v8542_v46  ;;  %v5762_v26 = vor.u32 %v6172_v17, %v5761_v55  ;;  %v5633_v14 = vld [vmem:[#allocation2 + $0x20] sm:$0xf] }
 0x396   : > { %v3097_v6 = vpop.f32.mrf.mxu3  ;;  %v3001_v3 = vpop.f32.mrf.mxu1  ;;  %3955 = vmatpush.bf16.msrb.mxu3 %v5834_v29 }
 0x397   : > { %v8681_v42 = vadd.f32 %v3097_v6, %v3049_v35  ;;  %v3348_v56 = vmax.f32 %v2953_v45, 0.0  ;;  %v3002_v15 = vadd.f32 %v3001_v3, %v8624_v34  ;;  %3907 = vmatpush.bf16.msrb.mxu2 %v5762_v26  ;;  %v5825_v45 = vld [vmem:[#allocation2 + $0x1a0] sm:$0xf]  ;;  %v5625_v26 = vld [vmem:[#allocation2 + $0x10] sm:$0xf] }
 0x399   : > { %v8683_v24 = vpack.c.bf16 %v3348_v56, %v3344_v49  ;;  %v6156_v49 = vld [vmem:[#allocation2 + $0xa4] sm:$0xf0] }
 0x39a   : > { %v5698_v56 = vor.u32 %v6156_v49, %v5697_v8 }
 0x39b   : > { %v3050_v46 = vpop.f32.mrf.mxu2 }
 0x39c   : > { %v3051_v2 = vadd.f32 %v3050_v46, %v3002_v15  ;;  %v2955_v39 = vpop.f32.mrf.mxu0  ;;  %3858 = vmatpush.bf16.msrb.mxu1 %v5698_v56  ;;  %v6152_v56 = vld [vmem:[#allocation2 + $0x84] sm:$0xf0] }
 0x39d   : > { %v2956_v53 = vadd.f32 %v2955_v39, %v8562_v12 }
 0x39e   : > { %v3099_v18 = vpop.f32.mrf.mxu3  ;;  %v3004_v44 = vpop.f32.mrf.mxu1 }
 0x39f   : > { %v8687_v10 = vadd.f32 %v3099_v18, %v3051_v2  ;;  %3150 = vmatmul.bf16.gmra.mxu0 %v7087_v28  ;;  %v3005_v60 = vadd.f32 %v3004_v44, %v8624_v34  ;;  %v5753_v2 = vld [vmem:[#allocation2 + $0x110] sm:$0xf]  ;;  %v6170_v18 = vld [vmem:[#allocation2 + $0x114] sm:$0xf0] }
 0x3a0   : > { %3248 = vmatmul.bf16.gmra.mxu2 %v9299_v59  ;;  %v3352_v59 = vmax.f32 %v2956_v53, 0.0  ;;  %v5754_v39 = vor.u32 %v6170_v18, %v5753_v2  ;;  %v9344_v18 = vld [vmem:[#allocation47_spill] sm:$0xff] }
 0x3a1   : > { %3199 = vmatmul.bf16.gmra.mxu1 %v7434_v9  ;;  %v6140_v9 = vld [vmem:[#allocation2 + $0x24] sm:$0xf0] }
 0x3a2   : > { %v5634_v58 = vor.u32 %v6140_v9, %v5633_v14  ;;  %3908 = vmatpush.bf16.msrb.mxu2 %v5754_v39  ;;  %v9345_v39 = vld [vmem:[#allocation48_spill] sm:$0xff] }
 0x3a3   : > { %5611 = vmatmul.msk.bf16.gmra.mxu3 %vm1921_vm0, %v9332_v30  ;;  %v3053_v19 = vpop.f32.mrf.mxu2  ;;  %v6188_v30 = vld [vmem:[#allocation2 + $0x1a4] sm:$0xf0] }
 0x3a4   : > { %v3054_v51 = vadd.f32 %v3053_v19, %v3005_v60  ;;  %v2957_v21 = vpop.f32.mrf.mxu0  ;;  %v5826_v11 = vor.u32 %v6188_v30, %v5825_v45  ;;  %3809 = vmatpush.bf16.msrb.mxu0 %v5634_v58  ;;  %v5817_v19 = vld [vmem:[#allocation2 + $0x190] sm:$0xf]  ;;  %v5681_v58 = vld [vmem:[#allocation2 + $0x80] sm:$0xf] }
 0x3a5   : > { %v2958_v35 = vadd.f32 %v2957_v21, %v8571_v52  ;;  %v5689_v21 = vld [vmem:[#allocation2 + $0x90] sm:$0xf] }
 0x3a6   : > { %v3102_v12 = vpop.f32.mrf.mxu3  ;;  %v3006_v28 = vpop.f32.mrf.mxu1  ;;  %3956 = vmatpush.bf16.msrb.mxu3 %v5826_v11 }
 0x3a7   : > { %v8696_v6 = vadd.f32 %v3102_v12, %v3054_v51  ;;  %v3356_v3 = vmax.f32 %v2958_v35, 0.0  ;;  %v3007_v40 = vadd.f32 %v3006_v28, %v8624_v34  ;;  %v6154_v28 = vld [vmem:[#allocation2 + $0x94] sm:$0xf0] }
 0x3a8   : > { %v5690_v14 = vor.u32 %v6154_v28, %v5689_v21 }
 0x3a9   : > { %v8698_v5 = vpack.c.bf16 %v3356_v3, %v3352_v59  ;;  %v5617_v59 = vld [vmem:[#allocation2] sm:$0xf]  ;;  %v6136_v3 = vld [vmem:[#allocation2 + $0x4] sm:$0xf0] }
 0x3aa   : > { %3859 = vmatpush.bf16.msrb.mxu1 %v5690_v14  ;;  %v5618_v49 = vor.u32 %v6136_v3, %v5617_v59  ;;  %v6181_v59 = vld [vmem:[#allocation2 + $0x174] sm:$0xf]  ;;  %v5803_v3 = vld [vmem:[#allocation2 + $0x178] sm:$0xf0] }
 0x3ab   : > { %v3055_v52 = vpop.f32.mrf.mxu2 }
 0x3ac   : > { %v8701_v0 = vadd.f32 %v3055_v52, %v3007_v40  ;;  %v2960_v4 = vpop.f32.mrf.mxu0  ;;  %v5745_v40 = vld [vmem:[#allocation2 + $0x100] sm:$0xf]  ;;  %v6168_v52 = vld [vmem:[#allocation2 + $0x104] sm:$0xf0] }
 0x3ad   : > { %v2961_v13 = vadd.f32 %v2960_v4, %v8591_v48 }
 0x3ae   : > { %v8703_v29 = vpop.f32.mrf.mxu3  ;;  %v3009_v15 = vpop.f32.mrf.mxu1 }
 0x3af   : > { %3155 = vmatmul.bf16.gmra.mxu0 %v7125_v57  ;;  %v3010_v46 = vadd.f32 %v3009_v15, %v8624_v34  ;;  %v5682_v15 = vor.u32 %v6152_v56, %v5681_v58 }
 0x3b0   : > { %3253 = vmatmul.bf16.gmra.mxu2 %v9302_v23  ;;  %v3360_v23 = vmax.f32 %v2961_v13, 0.0 }
 0x3b1   : > { %3204 = vmatmul.bf16.gmra.mxu1 %v7481_v7  ;;  %v6138_v7 = vld [vmem:[#allocation2 + $0x14] sm:$0xf0] }
 0x3b2   : > { %v5626_v12 = vor.u32 %v6138_v7, %v5625_v26  ;;  %3860 = vmatpush.bf16.msrb.mxu1 %v5682_v15  ;;  %v5809_v7 = vld [vmem:[#allocation2 + $0x180] sm:$0xf]  ;;  %v6149_v15 = vld [vmem:[#allocation2 + $0x74] sm:$0xf] }
 0x3b3   : > { %5612 = vmatmul.msk.bf16.gmra.mxu3 %vm1921_vm0, %v9335_v33  ;;  %v3058_v53 = vpop.f32.mrf.mxu2  ;;  %v6186_v33 = vld [vmem:[#allocation2 + $0x194] sm:$0xf0] }
 0x3b4   : > { %v3059_v44 = vadd.f32 %v3058_v53, %v3010_v46  ;;  %v2962_v55 = vpop.f32.mrf.mxu0  ;;  %v5818_v35 = vor.u32 %v6186_v33, %v5817_v19  ;;  %3810 = vmatpush.bf16.msrb.mxu0 %v5626_v12  ;;  %v5746_v46 = vor.u32 %v6168_v52, %v5745_v40  ;;  %v6184_v19 = vld [vmem:[#allocation2 + $0x184] sm:$0xf0] }
 0x3b5   : > { %v2963_v48 = vadd.f32 %v2962_v55, %v8600_v20 }
 0x3b6   : > { %v3107_v60 = vpop.f32.mrf.mxu3  ;;  %v3011_v57 = vpop.f32.mrf.mxu1  ;;  %3957 = vmatpush.bf16.msrb.mxu3 %v5818_v35  ;;  %3909 = vmatpush.bf16.msrb.mxu2 %v5746_v46  ;;  %v5675_v46 = vld [vmem:[#allocation2 + $0x78] sm:$0xf0] }
 0x3b7   : > { %v8713_v17 = vadd.f32 %v3107_v60, %v3059_v44  ;;  %v3364_v51 = vmax.f32 %v2963_v48, 0.0  ;;  %v3012_v45 = vadd.f32 %v3011_v57, %v8624_v34 }
 0x3b8   : > { %3811 = vmatpush.bf16.msrb.mxu0 %v5618_v49 }
 0x3b9   : > { %v8715_v9 = vpack.c.bf16 %v3364_v51, %v3360_v23  ;;  %v5810_v23 = vor.u32 %v6184_v19, %v5809_v7  ;;  %v9348_v19 = vld [vmem:[#allocation53_spill] sm:$0xff] }
 0x3bb   : > { %v3060_v20 = vpop.f32.mrf.mxu2  ;;  %3958 = vmatpush.bf16.msrb.mxu3 %v5810_v23  ;;  %v9349_v23 = vld [vmem:[#allocation16_spill] sm:$0xff] }
 0x3bc   : > { %v8718_v30 = vadd.f32 %v3060_v20, %v3012_v45  ;;  %v2965_v11 = vpop.f32.mrf.mxu0  ;;  %v9346_v45 = vld [vmem:[#allocation50_spill] sm:$0xff]  ;;  %v9347_v20 = vld [vmem:[#allocation51_spill] sm:$0xff] }
 0x3bd   : > { %v2966_v4 = vadd.f32 %v2965_v11, %v8608_v62  ;;  %v5806_v11 = vor.u32 %v6181_v59, %v5803_v3 }
 0x3be   : > { %v8720_v8 = vpop.f32.mrf.mxu3  ;;  %v3014_v13 = vpop.f32.mrf.mxu1 }
 0x3bf   : > { %3160 = vmatmul.bf16.gmra.mxu0 %v7163_v22  ;;  %v3015_v2 = vadd.f32 %v3014_v13, %v8624_v34  ;;  %v3368_v22 = vmax.f32 %v2966_v4, 0.0  ;;  %4098 = vmatpush.bf16.msra.mxu2 %v5806_v11  ;;  %v5667_v11 = vld [vmem:[#allocation2 + $0x68] sm:$0xf0] }
 0x3c0   : > { %3258 = vmatmul.bf16.gmra.mxu2 %v9345_v39  ;;  %v6165_v39 = vld [vmem:[#allocation2 + $0xf4] sm:$0xf] }
 0x3c1   : > { %3209 = vmatmul.bf16.gmra.mxu1 %v9344_v18  ;;  %v5678_v18 = vor.u32 %v6149_v15, %v5675_v46 }
 0x3c3   : > { %5613 = vmatmul.msk.bf16.gmra.mxu3 %vm1921_vm0, %v9338_v31  ;;  %v3063_v53 = vpop.f32.mrf.mxu2  ;;  %4000 = vmatpush.bf16.msra.mxu0 %v5678_v18 }
 0x3c4   : > { %v3064_v44 = vadd.f32 %v3063_v53, %v3015_v2  ;;  %v2967_v60 = vpop.f32.mrf.mxu0  ;;  %v6197_v2 = vld [vmem:[#allocation2 + $0x1f4] sm:$0xf]  ;;  %v5739_v53 = vld [vmem:[#allocation2 + $0xf8] sm:$0xf0] }
 0x3c5   : > { %v2968_v55 = vadd.f32 %v2967_v60, %v8611_v47 }
 0x3c6   : > { %v3112_v62 = vpop.f32.mrf.mxu3  ;;  %v3016_v48 = vpop.f32.mrf.mxu1 }
 0x3c7   : > { %v8730_v57 = vadd.f32 %v3112_v62, %v3064_v44  ;;  %v3372_v26 = vmax.f32 %v2968_v55, 0.0  ;;  %v3017_v12 = vadd.f32 %v3016_v48, %v8624_v34  ;;  %v5742_v55 = vor.u32 %v6165_v39, %v5739_v53  ;;  %v9350_v53 = vld [vmem:[#allocation54_spill] sm:$0xff] }
 0x3c9   : > { %v8732_v51 = vpack.c.bf16 %v3372_v26, %v3368_v22  ;;  %4049 = vmatpush.bf16.msra.mxu1 %v5742_v55  ;;  %v9351_v55 = vld [vmem:[#allocation37_spill] sm:$0xff] }
 0x3cb   : > { %v3065_v31 = vpop.f32.mrf.mxu2 }
 0x3cc   : > { %v8735_v33 = vadd.f32 %v3065_v31, %v3017_v12  ;;  %v2970_v35 = vpop.f32.mrf.mxu0  ;;  %v6179_v12 = vld [vmem:[#allocation2 + $0x164] sm:$0xf] }
 0x3cd   : > { %v2971_v47 = vadd.f32 %v2970_v35, %v8619_v36 }
 0x3ce   : > { %v8737_v21 = vpop.f32.mrf.mxu3  ;;  %v3019_v28 = vpop.f32.mrf.mxu1 }
 0x3cf   : > { %3165 = vmatmul.bf16.gmra.mxu0 %v9320_v61  ;;  %v3020_v14 = vadd.f32 %v3019_v28, %v8624_v34  ;;  %v3376_v4 = vmax.f32 %v2971_v47, 0.0 }
 0x3d0   : > { %3263 = vmatmul.bf16.gmra.mxu2 %v9347_v20 }
 0x3d1   : > { %3214 = vmatmul.bf16.gmra.mxu1 %v9346_v45 }
 0x3d3   : > { %5614 = vmatmul.msk.bf16.gmra.mxu3 %vm1921_vm0, %v9309_v32  ;;  %v3068_v58 = vpop.f32.mrf.mxu2  ;;  %v5867_v32 = vld [vmem:[#allocation2 + $0x1f8] sm:$0xf0] }
 0x3d4   : > { %v3069_v49 = vadd.f32 %v3068_v58, %v3020_v14  ;;  %v2972_v40 = vpop.f32.mrf.mxu0  ;;  %v5870_v60 = vor.u32 %v6197_v2, %v5867_v32  ;;  %v6147_v58 = vld [vmem:[#allocation2 + $0x64] sm:$0xf] }
 0x3d5   : > { %v2973_v36 = vadd.f32 %v2972_v40, %v8627_v41  ;;  %v5859_v40 = vld [vmem:[#allocation2 + $0x1e8] sm:$0xf0] }
 0x3d6   : > { %v3117_v56 = vpop.f32.mrf.mxu3  ;;  %v3021_v52 = vpop.f32.mrf.mxu1  ;;  %4147 = vmatpush.bf16.msra.mxu3 %v5870_v60 }
 0x3d7   : > { %v8747_v61 = vadd.f32 %v3117_v56, %v3069_v49  ;;  %v3380_v13 = vmax.f32 %v2973_v36, 0.0  ;;  %v3022_v62 = vadd.f32 %v3021_v52, %v8624_v34  ;;  %v5795_v34 = vld [vmem:[#allocation2 + $0x168] sm:$0xf0]  ;;  %v5670_v49 = vor.u32 %v6147_v58, %v5667_v11  ;;  %v6195_v56 = vld [vmem:[#allocation2 + $0x1e4] sm:$0xf] }
 0x3d8   : > { %v5798_v31 = vor.u32 %v6179_v12, %v5795_v34  ;;  %v6163_v36 = vld [vmem:[#allocation2 + $0xe4] sm:$0xf]  ;;  %v6193_v11 = vld [vmem:[#allocation2 + $0x1d4] sm:$0xf] }
 0x3d9   : > { %v8749_v44 = vpack.c.bf16 %v3380_v13, %v3376_v4  ;;  %v5862_v4 = vor.u32 %v6195_v56, %v5859_v40  ;;  %v5731_v13 = vld [vmem:[#allocation2 + $0xe8] sm:$0xf0]  ;;  %4001 = vmatpush.bf16.msra.mxu0 %v5670_v49  ;;  %v5851_v49 = vld [vmem:[#allocation2 + $0x1d8] sm:$0xf0]  ;;  %v6161_v56 = vld [vmem:[#allocation2 + $0xd4] sm:$0xf] }
 0x3da   : > { %4099 = vmatpush.bf16.msra.mxu2 %v5798_v31 }
 0x3db   : > { %v3070_v41 = vpop.f32.mrf.mxu2  ;;  %4148 = vmatpush.bf16.msra.mxu3 %v5862_v4 }
 0x3dc   : > { %v8752_v48 = vadd.f32 %v3070_v41, %v3022_v62  ;;  %v3131_v26 = vpop.f32.mrf.mxu0  ;;  %v6177_v41 = vld [vmem:[#allocation2 + $0x154] sm:$0xf] }
 0x3dd   : > { %v3132_v35 = vadd.f32 %v3131_v26, %v8636_v54  ;;  %v5734_v54 = vor.u32 %v6163_v36, %v5731_v13  ;;  %v5787_v26 = vld [vmem:[#allocation2 + $0x158] sm:$0xf0]  ;;  %v5854_v36 = vor.u32 %v6193_v11, %v5851_v49  ;;  %v5843_v11 = vld [vmem:[#allocation2 + $0x1c8] sm:$0xf0]  ;;  %v6159_v49 = vld [vmem:[#allocation2 + $0xc4] sm:$0xf] }
 0x3de   : > { %v8754_v22 = vpop.f32.mrf.mxu3  ;;  %v3180_v7 = vpop.f32.mrf.mxu1 }
 0x3df   : > { %3812 = vmatmul.bf16.vlgmr.msrb.gmra.mxu0 %v9348_v19  ;;  %v3181_v20 = vadd.f32 %v3180_v7, %v3132_v35  ;;  %4050 = vmatpush.bf16.msra.mxu1 %v5734_v54  ;;  %v5790_v7 = vor.u32 %v6177_v41, %v5787_v26 }
 0x3e0   : > { %3910 = vmatmul.bf16.vlgmr.msrb.gmra.mxu2 %v8638_v50  ;;  %4149 = vmatpush.bf16.msra.mxu3 %v5854_v36 }
 0x3e1   : > { %3861 = vmatmul.bf16.vlgmr.msrb.gmra.mxu1 %v9349_v23  ;;  %4100 = vmatpush.bf16.msra.mxu2 %v5790_v7 }
 0x3e3   : > { %v3229_v47 = vpop.f32.mrf.mxu2 }
 0x3e4   : > { %v3133_v14 = vpop.f32.mrf.mxu0  ;;  %v3230_v3 = vadd.f32 %v3229_v47, %v3181_v20 }
 0x3e5   : > { %v3134_v59 = vadd.f32 %v3133_v14, %v8642_v1 }
 0x3e6   : > { %v3278_v28 = vpop.f32.mrf.mxu3  ;;  %v3182_v45 = vpop.f32.mrf.mxu1 }
 0x3e7   : > { %v3183_v52 = vadd.f32 %v3182_v45, %v3134_v59  ;;  %v3279_v46 = vadd.f32 %v3278_v28, %v3230_v3  ;;  %v6145_v59 = vld [vmem:[#allocation2 + $0x54] sm:$0xf]  ;;  %v5659_v3 = vld [vmem:[#allocation2 + $0x58] sm:$0xf0] }
 0x3e8   : > { %v5662_v58 = vor.u32 %v6145_v59, %v5659_v3  ;;  %v5651_v59 = vld [vmem:[#allocation2 + $0x48] sm:$0xf0] }
 0x3e9   : > { %v3321_v62 = vmax.f32 %v3279_v46, 0.0 }
 0x3ea   : > { %4002 = vmatpush.bf16.msra.mxu0 %v5662_v58  ;;  %v6191_v58 = vld [vmem:[#allocation2 + $0x1c4] sm:$0xf] }
 0x3eb   : > { %v3231_v15 = vpop.f32.mrf.mxu2 }
 0x3ec   : > { %v3232_v2 = vadd.f32 %v3231_v15, %v3183_v52  ;;  %v3136_v32 = vpop.f32.mrf.mxu0 }
 0x3ed   : > { %v3137_v34 = vadd.f32 %v3136_v32, %v8651_v25  ;;  %v5723_v25 = vld [vmem:[#allocation2 + $0xd8] sm:$0xf0] }
 0x3ee   : > { %v3280_v18 = vpop.f32.mrf.mxu3  ;;  %v3185_v39 = vpop.f32.mrf.mxu1  ;;  %v5726_v4 = vor.u32 %v6161_v56, %v5723_v25  ;;  %v5846_v56 = vor.u32 %v6191_v58, %v5843_v11  ;;  %v6189_v58 = vld [vmem:[#allocation2 + $0x1b4] sm:$0xf]  ;;  %v5835_v11 = vld [vmem:[#allocation2 + $0x1b8] sm:$0xf0] }
 0x3ef   : > { %v3281_v1 = vadd.f32 %v3280_v18, %v3232_v2  ;;  %3817 = vmatmul.bf16.gmra.mxu0 %v9350_v53  ;;  %v3186_v14 = vadd.f32 %v3185_v39, %v3137_v34  ;;  %v9352_v18 = vld [vmem:[#allocation55_spill] sm:$0xff] }
 0x3f0   : > { %3915 = vmatmul.bf16.gmra.mxu2 %v8653_v16  ;;  %4051 = vmatpush.bf16.msra.mxu1 %v5726_v4 }
 0x3f1   : > { %v3325_v60 = vmax.f32 %v3281_v1, 0.0  ;;  %3866 = vmatmul.bf16.gmra.mxu1 %v9351_v55  ;;  %v9353_v1 = vld [vmem:[#allocation39_spill] sm:$0xff]  ;;  %4150 = vmatpush.bf16.msra.mxu3 %v5846_v56 }
 0x3f2   : > { %v5707_v56 = vld [vmem:[#allocation2 + $0xb8] sm:$0xf0] }
 0x3f3   : > { %v8764_v12 = vpack.c.bf16 %v3325_v60, %v3321_v62  ;;  %v3234_v31 = vpop.f32.mrf.mxu2  ;;  %v6175_v62 = vld [vmem:[#allocation2 + $0x144] sm:$0xf]  ;;  %v5779_v60 = vld [vmem:[#allocation2 + $0x148] sm:$0xf0] }
 0x3f4   : > { %v3138_v47 = vpop.f32.mrf.mxu0  ;;  %v3235_v20 = vadd.f32 %v3234_v31, %v3186_v14  ;;  %v5782_v41 = vor.u32 %v6175_v62, %v5779_v60  ;;  %v5771_v62 = vld [vmem:[#allocation2 + $0x138] sm:$0xf0] }
 0x3f5   : > { %3959 = vmatmul.bf16.vlgmr.msrb.gmra.mxu3 %v8764_v12  ;;  %v3139_v45 = vadd.f32 %v3138_v47, %v8657_v38 }
 0x3f6   : > { %v3283_v35 = vpop.f32.mrf.mxu3  ;;  %v3187_v28 = vpop.f32.mrf.mxu1  ;;  %4101 = vmatpush.bf16.msra.mxu2 %v5782_v41 }
 0x3f7   : > { %v3188_v40 = vadd.f32 %v3187_v28, %v3139_v45  ;;  %v3284_v13 = vadd.f32 %v3283_v35, %v3235_v20  ;;  %v6143_v20 = vld [vmem:[#allocation2 + $0x44] sm:$0xf] }
 0x3f8   : > { %v5654_v3 = vor.u32 %v6143_v20, %v5651_v59  ;;  %v6141_v20 = vld [vmem:[#allocation2 + $0x34] sm:$0xf]  ;;  %v5643_v59 = vld [vmem:[#allocation2 + $0x38] sm:$0xf0] }
 0x3f9   : > { %v3329_v32 = vmax.f32 %v3284_v13, 0.0 }
 0x3fa   : > { %4003 = vmatpush.bf16.msra.mxu0 %v5654_v3  ;;  %v5646_v3 = vor.u32 %v6141_v20, %v5643_v59 }
 0x3fb   : > { %v3236_v52 = vpop.f32.mrf.mxu2 }
 0x3fc   : > { %v3237_v15 = vadd.f32 %v3236_v52, %v3188_v40  ;;  %v3141_v46 = vpop.f32.mrf.mxu0  ;;  %v5715_v40 = vld [vmem:[#allocation2 + $0xc8] sm:$0xf0] }
 0x3fd   : > { %v3142_v26 = vadd.f32 %v3141_v46, %v8666_v37  ;;  %v5718_v25 = vor.u32 %v6159_v49, %v5715_v40  ;;  %v9354_v46 = vld [vmem:[#allocation56_spill] sm:$0xff]  ;;  %v6157_v49 = vld [vmem:[#allocation2 + $0xb4] sm:$0xf] }
 0x3fe   : > { %v3285_v54 = vpop.f32.mrf.mxu3  ;;  %v3190_v2 = vpop.f32.mrf.mxu1  ;;  %4004 = vmatpush.bf16.msra.mxu0 %v5646_v3  ;;  %v6139_v3 = vld [vmem:[#allocation2 + $0x24] sm:$0xf] }
 0x3ff   : > { %v3286_v38 = vadd.f32 %v3285_v54, %v3237_v15  ;;  %3822 = vmatmul.bf16.gmra.mxu0 %v9352_v18  ;;  %v3191_v28 = vadd.f32 %v3190_v2, %v3142_v26  ;;  %4052 = vmatpush.bf16.msra.mxu1 %v5718_v25 }
 0x400   : > { %3920 = vmatmul.bf16.gmra.mxu2 %v8668_v43 }
 0x401   : > { %v3333_v39 = vmax.f32 %v3286_v38, 0.0  ;;  %3871 = vmatmul.bf16.gmra.mxu1 %v9353_v1 }
 0x403   : > { %v8773_v7 = vpack.c.bf16 %v3333_v39, %v3329_v32  ;;  %v3239_v34 = vpop.f32.mrf.mxu2  ;;  %v9355_v32 = vld [vmem:[#allocation41_spill] sm:$0xff]  ;;  %v6173_v39 = vld [vmem:[#allocation2 + $0x134] sm:$0xf] }
 0x404   : > { %v3143_v35 = vpop.f32.mrf.mxu0  ;;  %v3240_v45 = vadd.f32 %v3239_v34, %v3191_v28  ;;  %v5774_v60 = vor.u32 %v6173_v39, %v5771_v62  ;;  %v6171_v39 = vld [vmem:[#allocation2 + $0x124] sm:$0xf]  ;;  %v5763_v62 = vld [vmem:[#allocation2 + $0x128] sm:$0xf0] }
 0x405   : > { %3964 = vmatmul.bf16.gmra.mxu3 %v8773_v7  ;;  %v3144_v14 = vadd.f32 %v3143_v35, %v8672_v27 }
 0x406   : > { %v3288_v31 = vpop.f32.mrf.mxu3  ;;  %v3192_v47 = vpop.f32.mrf.mxu1  ;;  %4102 = vmatpush.bf16.msra.mxu2 %v5774_v60  ;;  %v5766_v60 = vor.u32 %v6171_v39, %v5763_v62  ;;  %v9359_v39 = vld [vmem:[#allocation45_spill] sm:$0xff]  ;;  %v6169_v62 = vld [vmem:[#allocation2 + $0x114] sm:$0xf] }
 0x407   : > { %v3193_v37 = vadd.f32 %v3192_v47, %v3144_v14  ;;  %v3289_v52 = vadd.f32 %v3288_v31, %v3240_v45 }
 0x409   : > { %v3337_v2 = vmax.f32 %v3289_v52, 0.0 }
 0x40a   : > { %4103 = vmatpush.bf16.msra.mxu2 %v5766_v60  ;;  %v5755_v60 = vld [vmem:[#allocation2 + $0x118] sm:$0xf0] }
 0x40b   : > { %v3241_v36 = vpop.f32.mrf.mxu2 }
 0x40c   : > { %v3242_v4 = vadd.f32 %v3241_v36, %v3193_v37  ;;  %v3146_v15 = vpop.f32.mrf.mxu0  ;;  %v5838_v37 = vor.u32 %v6189_v58, %v5835_v11  ;;  %v5710_v36 = vor.u32 %v6157_v49, %v5707_v56  ;;  %v5635_v58 = vld [vmem:[#allocation2 + $0x28] sm:$0xf0]  ;;  %v6187_v49 = vld [vmem:[#allocation2 + $0x1a4] sm:$0xf] }
 0x40d   : > { %v3147_v41 = vadd.f32 %v3146_v15, %v8681_v42  ;;  %v5638_v11 = vor.u32 %v6139_v3, %v5635_v58  ;;  %v6137_v58 = vld [vmem:[#allocation2 + $0x14] sm:$0xf] }
 0x40e   : > { %v3290_v13 = vpop.f32.mrf.mxu3  ;;  %v3195_v54 = vpop.f32.mrf.mxu1  ;;  %4151 = vmatpush.bf16.msra.mxu3 %v5838_v37  ;;  %4053 = vmatpush.bf16.msra.mxu1 %v5710_v36 }
 0x40f   : > { %v3291_v27 = vadd.f32 %v3290_v13, %v3242_v4  ;;  %3827 = vmatmul.bf16.gmra.mxu0 %v9354_v46  ;;  %v3196_v28 = vadd.f32 %v3195_v54, %v3147_v41  ;;  %v9356_v54 = vld [vmem:[#allocation57_spill] sm:$0xff] }
 0x410   : > { %3925 = vmatmul.bf16.gmra.mxu2 %v8683_v24  ;;  %4005 = vmatpush.bf16.msra.mxu0 %v5638_v11  ;;  %v5627_v11 = vld [vmem:[#allocation2 + $0x18] sm:$0xf0] }
 0x411   : > { %v3341_v38 = vmax.f32 %v3291_v27, 0.0  ;;  %3876 = vmatmul.bf16.gmra.mxu1 %v9355_v32 }
 0x413   : > { %v8781_v26 = vpack.c.bf16 %v3341_v38, %v3337_v2  ;;  %v3244_v34 = vpop.f32.mrf.mxu2  ;;  %v9357_v38 = vld [vmem:[#allocation43_spill] sm:$0xff] }
 0x414   : > { %v3148_v35 = vpop.f32.mrf.mxu0  ;;  %v3245_v45 = vadd.f32 %v3244_v34, %v3196_v28 }
 0x415   : > { %3969 = vmatmul.bf16.gmra.mxu3 %v8781_v26  ;;  %v3149_v14 = vadd.f32 %v3148_v35, %v8687_v10  ;;  %v3105_v35 = vadd.f32 %v8703_v29, %v8701_v0 }
 0x416   : > { %v3293_v31 = vpop.f32.mrf.mxu3  ;;  %v3197_v47 = vpop.f32.mrf.mxu1 }
 0x417   : > { %v3198_v42 = vadd.f32 %v3197_v47, %v3149_v14  ;;  %v3294_v25 = vadd.f32 %v3293_v31, %v3245_v45 }
 0x419   : > { %v3345_v27 = vmax.f32 %v3294_v25, 0.0 }
 0x41b   : > { %v3246_v40 = vpop.f32.mrf.mxu2 }
 0x41c   : > { %v3247_v52 = vadd.f32 %v3246_v40, %v3198_v42  ;;  %v3151_v13 = vpop.f32.mrf.mxu0  ;;  %v6155_v42 = vld [vmem:[#allocation2 + $0xa4] sm:$0xf]  ;;  %v5699_v40 = vld [vmem:[#allocation2 + $0xa8] sm:$0xf0] }
 0x41d   : > { %v3152_v41 = vadd.f32 %v3151_v13, %v8696_v6  ;;  %v5827_v6 = vld [vmem:[#allocation2 + $0x1a8] sm:$0xf0]  ;;  %v5702_v0 = vor.u32 %v6155_v42, %v5699_v40  ;;  %v5630_v42 = vor.u32 %v6137_v58, %v5627_v11  ;;  %v5691_v40 = vld [vmem:[#allocation2 + $0x98] sm:$0xf0] }
 0x41e   : > { %v3295_v4 = vpop.f32.mrf.mxu3  ;;  %v3200_v15 = vpop.f32.mrf.mxu1  ;;  %v5830_v56 = vor.u32 %v6187_v49, %v5827_v6  ;;  %v6153_v49 = vld [vmem:[#allocation2 + $0x94] sm:$0xf] }
 0x41f   : > { %v3296_v10 = vadd.f32 %v3295_v4, %v3247_v52  ;;  %3832 = vmatmul.bf16.gmra.mxu0 %v9356_v54  ;;  %v3201_v45 = vadd.f32 %v3200_v15, %v3152_v41  ;;  %4054 = vmatpush.bf16.msra.mxu1 %v5702_v0  ;;  %v5758_v41 = vor.u32 %v6169_v62, %v5755_v60  ;;  %v6167_v62 = vld [vmem:[#allocation2 + $0x104] sm:$0xf] }
 0x420   : > { %3930 = vmatmul.bf16.gmra.mxu2 %v8698_v5  ;;  %4152 = vmatpush.bf16.msra.mxu3 %v5830_v56  ;;  %v5694_v0 = vor.u32 %v6153_v49, %v5691_v40  ;;  %v3115_v49 = vadd.f32 %v8737_v21, %v8735_v33  ;;  %v9362_v21 = vld [vmem:[#allocation36_spill] sm:$0xff] }
 0x421   : > { %v3349_v2 = vmax.f32 %v3296_v10, 0.0  ;;  %3881 = vmatmul.bf16.gmra.mxu1 %v9357_v38  ;;  %v9358_v10 = vld [vmem:[#allocation58_spill] sm:$0xff]  ;;  %4104 = vmatpush.bf16.msra.mxu2 %v5758_v41 }
 0x422   : > { %4006 = vmatpush.bf16.msra.mxu0 %v5630_v42 }
 0x423   : > { %v8789_v34 = vpack.c.bf16 %v3349_v2, %v3345_v27  ;;  %v3249_v31 = vpop.f32.mrf.mxu2  ;;  %4055 = vmatpush.bf16.msra.mxu1 %v5694_v0 }
 0x424   : > { %v3153_v28 = vpop.f32.mrf.mxu0  ;;  %v3250_v59 = vadd.f32 %v3249_v31, %v3201_v45 }
 0x425   : > { %3974 = vmatmul.bf16.gmra.mxu3 %v8789_v34  ;;  %v3154_v20 = vadd.f32 %v3153_v28, %v3105_v35  ;;  %v3110_v28 = vadd.f32 %v8720_v8, %v8718_v30  ;;  %v6135_v8 = vld [vmem:[#allocation2 + $0x4] sm:$0xf] }
 0x426   : > { %v3298_v47 = vpop.f32.mrf.mxu3  ;;  %v3202_v14 = vpop.f32.mrf.mxu1 }
 0x427   : > { %v3203_v37 = vadd.f32 %v3202_v14, %v3154_v20  ;;  %v3299_v29 = vadd.f32 %v3298_v47, %v3250_v59 }
 0x429   : > { %v3353_v27 = vmax.f32 %v3299_v29, 0.0  ;;  %v5619_v29 = vld [vmem:[#allocation2 + $0x8] sm:$0xf0] }
 0x42b   : > { %v3251_v36 = vpop.f32.mrf.mxu2 }
 0x42c   : > { %v3252_v25 = vadd.f32 %v3251_v36, %v3203_v37  ;;  %v3156_v4 = vpop.f32.mrf.mxu0  ;;  %v5819_v37 = vld [vmem:[#allocation2 + $0x198] sm:$0xf0] }
 0x42d   : > { %v3157_v31 = vadd.f32 %v3156_v4, %v8713_v17  ;;  %v6185_v17 = vld [vmem:[#allocation2 + $0x194] sm:$0xf] }
 0x42e   : > { %v3300_v52 = vpop.f32.mrf.mxu3  ;;  %v3205_v13 = vpop.f32.mrf.mxu1  ;;  %v5822_v56 = vor.u32 %v6185_v17, %v5819_v37  ;;  %v6183_v17 = vld [vmem:[#allocation2 + $0x184] sm:$0xf]  ;;  %v5811_v37 = vld [vmem:[#allocation2 + $0x188] sm:$0xf0] }
 0x42f   : > { %v3301_v15 = vadd.f32 %v3300_v52, %v3252_v25  ;;  %3837 = vmatmul.bf16.gmra.mxu0 %v9358_v10  ;;  %v3206_v59 = vadd.f32 %v3205_v13, %v3157_v31  ;;  %v6151_v25 = vld [vmem:[#allocation2 + $0x84] sm:$0xf]  ;;  %v5747_v31 = vld [vmem:[#allocation2 + $0x108] sm:$0xf0]  ;;  %v5814_v40 = vor.u32 %v6183_v17, %v5811_v37 }
 0x430   : > { %3935 = vmatmul.bf16.gmra.mxu2 %v8715_v9  ;;  %4153 = vmatpush.bf16.msra.mxu3 %v5822_v56 }
 0x431   : > { %v3357_v2 = vmax.f32 %v3301_v15, 0.0  ;;  %3886 = vmatmul.bf16.gmra.mxu1 %v9359_v39 }
 0x433   : > { %v8798_v35 = vpack.c.bf16 %v3357_v2, %v3353_v27  ;;  %v3254_v47 = vpop.f32.mrf.mxu2  ;;  %v5622_v27 = vor.u32 %v6135_v8, %v5619_v29  ;;  %v5683_v2 = vld [vmem:[#allocation2 + $0x88] sm:$0xf0] }
 0x434   : > { %v3158_v45 = vpop.f32.mrf.mxu0  ;;  %v3255_v6 = vadd.f32 %v3254_v47, %v3206_v59  ;;  %v5686_v41 = vor.u32 %v6151_v25, %v5683_v2  ;;  %4154 = vmatpush.bf16.msra.mxu3 %v5814_v40 }
 0x435   : > { %3979 = vmatmul.bf16.gmra.mxu3 %v8798_v35  ;;  %v3159_v3 = vadd.f32 %v3158_v45, %v3110_v28  ;;  %4007 = vmatpush.bf16.msra.mxu0 %v5622_v27  ;;  %v5750_v28 = vor.u32 %v6167_v62, %v5747_v31  ;;  %v9360_v45 = vld [vmem:[#allocation59_spill] sm:$0xff] }
 0x436   : > { %v3303_v14 = vpop.f32.mrf.mxu3  ;;  %v3207_v20 = vpop.f32.mrf.mxu1  ;;  %4056 = vmatpush.bf16.msra.mxu1 %v5686_v41  ;;  %v3120_v41 = vadd.f32 %v8754_v22, %v8752_v48 }
 0x437   : > { %v3208_v36 = vadd.f32 %v3207_v20, %v3159_v3  ;;  %v3304_v52 = vadd.f32 %v3303_v14, %v3255_v6  ;;  %v9361_v3 = vld [vmem:[#allocation52_spill] sm:$0xff]  ;;  %4105 = vmatpush.bf16.msra.mxu2 %v5750_v28 }
 0x439   : > { %v3361_v20 = vmax.f32 %v3304_v52, 0.0 }
 0x43b   : > { %v3256_v30 = vpop.f32.mrf.mxu2 }
 0x43c   : > { %v3257_v4 = vadd.f32 %v3256_v30, %v3208_v36  ;;  %v3161_v15 = vpop.f32.mrf.mxu0 }
 0x43d   : > { %v3162_v14 = vadd.f32 %v3161_v15, %v8730_v57 }
 0x43e   : > { %v3305_v13 = vpop.f32.mrf.mxu3  ;;  %v3210_v60 = vpop.f32.mrf.mxu1 }
 0x43f   : > { %v3306_v47 = vadd.f32 %v3305_v13, %v3257_v4  ;;  %3842 = vmatmul.bf16.gmra.mxu0 %v9360_v45  ;;  %v3211_v36 = vadd.f32 %v3210_v60, %v3162_v14 }
 0x440   : > { %3940 = vmatmul.bf16.gmra.mxu2 %v8732_v51 }
 0x441   : > { %v3365_v59 = vmax.f32 %v3306_v47, 0.0  ;;  %3891 = vmatmul.bf16.gmra.mxu1 %v9361_v3 }
 0x443   : > { %v8807_v58 = vpack.c.bf16 %v3365_v59, %v3361_v20  ;;  %v3259_v11 = vpop.f32.mrf.mxu2 }
 0x444   : > { %v3163_v42 = vpop.f32.mrf.mxu0  ;;  %v3260_v30 = vadd.f32 %v3259_v11, %v3211_v36 }
 0x445   : > { %3984 = vmatmul.bf16.gmra.mxu3 %v8807_v58  ;;  %v3164_v0 = vadd.f32 %v3163_v42, %v3115_v49 }
 0x446   : > { %v3308_v6 = vpop.f32.mrf.mxu3  ;;  %v3212_v56 = vpop.f32.mrf.mxu1 }
 0x447   : > { %v3213_v8 = vadd.f32 %v3212_v56, %v3164_v0  ;;  %v3309_v29 = vadd.f32 %v3308_v6, %v3260_v30 }
 0x449   : > { %v3369_v15 = vmax.f32 %v3309_v29, 0.0 }
 0x44b   : > { %v3261_v57 = vpop.f32.mrf.mxu2 }
 0x44c   : > { %v3262_v25 = vadd.f32 %v3261_v57, %v3213_v8  ;;  %v3166_v4 = vpop.f32.mrf.mxu0  ;;  %v8830_v8 = vld [vmem:[%s9132_s4] sm:$0x3] }
 0x44d   : > { %v3167_v2 = vadd.f32 %v3166_v4, %v8747_v61 }
 0x44e   : > { %v3310_v52 = vpop.f32.mrf.mxu3  ;;  %v3215_v13 = vpop.f32.mrf.mxu1 }
 0x44f   : > { %v3311_v33 = vadd.f32 %v3310_v52, %v3262_v25  ;;  %3847 = vmatmul.bf16.gmra.mxu0 %v9362_v21  ;;  %v3216_v20 = vadd.f32 %v3215_v13, %v3167_v2 }
 0x450   : > { %3945 = vmatmul.bf16.gmra.mxu2 %v8749_v44 }
 0x451   : > { %v3373_v27 = vmax.f32 %v3311_v33, 0.0  ;;  %3896 = vmatmul.bf16.gmra.mxu1 %v8422_v63 }
 0x453   : > { %v8816_v62 = vpack.c.bf16 %v3373_v27, %v3369_v15  ;;  %v3264_v60 = vpop.f32.mrf.mxu2 }
 0x454   : > { %v3168_v47 = vpop.f32.mrf.mxu0  ;;  %v3265_v14 = vadd.f32 %v3264_v60, %v3216_v20 }
 0x455   : > { %3989 = vmatmul.bf16.gmra.mxu3 %v8816_v62  ;;  %v3169_v59 = vadd.f32 %v3168_v47, %v3120_v41 }
 0x456   : > { %v3313_v31 = vpop.f32.mrf.mxu3  ;;  %v3217_v28 = vpop.f32.mrf.mxu1 }
 0x457   : > { %v3218_v11 = vadd.f32 %v3217_v28, %v3169_v59  ;;  %v3314_v6 = vadd.f32 %v3313_v31, %v3265_v14 }
 0x459   : > { %v3377_v40 = vmax.f32 %v3314_v6, 0.0 }
 0x45b   : > { %v3266_v49 = vpop.f32.mrf.mxu2 }
 0x45c   : > { %v3267_v42 = vadd.f32 %v3266_v49, %v3218_v11  ;;  %v3813_v17 = vpop.f32.mrf.mxu0 }
 0x45e   : > { %v3315_v61 = vpop.f32.mrf.mxu3  ;;  %v3862_v37 = vpop.f32.mrf.mxu1 }
 0x45f   : > { %v3316_v56 = vadd.f32 %v3315_v61, %v3267_v42  ;;  %4008 = vmatmul.bf16.vlgmr.msra.gmra.mxu0 %v9348_v19  ;;  %v8833_v19 = vperm.slane %v8830_v8, 0 }
 0x460   : > { %4106 = vmatmul.bf16.vlgmr.msra.gmra.mxu2 %v8638_v50 }
 0x461   : > { %v3381_v48 = vmax.f32 %v3316_v56, 0.0  ;;  %4057 = vmatmul.bf16.vlgmr.msra.gmra.mxu1 %v9349_v23  ;;  %v3814_v50 = vadd.f32 %v3813_v17, %v8833_v19 }
 0x463   : > { %v8824_v22 = vpack.c.bf16 %v3381_v48, %v3377_v40  ;;  %v3911_v36 = vpop.f32.mrf.mxu2  ;;  %v3863_v52 = vadd.f32 %v3862_v37, %v3814_v50 }
 0x464   : > { %v3815_v0 = vpop.f32.mrf.mxu0 }
 0x465   : > { %3994 = vmatmul.bf16.gmra.mxu3 %v8824_v22  ;;  %v3912_v33 = vadd.f32 %v3911_v36, %v3863_v52  ;;  %v3816_v27 = vadd.f32 %v3815_v0, %v8833_v19 }
 0x466   : > { %v3864_v30 = vpop.f32.mrf.mxu1 }
 0x46b   : > { %v3913_v57 = vpop.f32.mrf.mxu2 }
 0x46c   : > { %v3818_v23 = vpop.f32.mrf.mxu0 }
 0x46d   : > { %v3819_v31 = vadd.f32 %v3818_v23, %v8833_v19 }
 0x46e   : > { %v3867_v29 = vpop.f32.mrf.mxu1 }
 0x46f   : > { %4013 = vmatmul.bf16.gmra.mxu0 %v9350_v53  ;;  %v3868_v20 = vadd.f32 %v3867_v29, %v3819_v31 }
 0x470   : > { %4111 = vmatmul.bf16.gmra.mxu2 %v8653_v16  ;;  %v3865_v16 = vadd.f32 %v3864_v30, %v3816_v27 }
 0x471   : > { %4062 = vmatmul.bf16.gmra.mxu1 %v9351_v55 }
 0x472   : > { %v3914_v41 = vadd.f32 %v3913_v57, %v3865_v16 }
 0x473   : > { %v3916_v25 = vpop.f32.mrf.mxu2 }
 0x474   : > { %v3820_v4 = vpop.f32.mrf.mxu0  ;;  %v3917_v11 = vadd.f32 %v3916_v25, %v3868_v20 }
 0x475   : > { %4155 = vmatmul.bf16.vlgmr.msra.gmra.mxu3 %v8764_v12 }
 0x476   : > { %v3869_v13 = vpop.f32.mrf.mxu1 }
 0x478   : > { %v3960_v15 = vpop.f32.mrf.mxu3 }
 0x479   : > { %v8841_v2 = vadd.f32 %v3960_v15, %v3912_v33 }
 0x47b   : > { %4308 = vst [vmem:[%s8844_s17] sm:$0xff] %v8841_v2  ;;  %v3918_v53 = vpop.f32.mrf.mxu2 }
 0x47c   : > { %v3823_v55 = vpop.f32.mrf.mxu0 }
 0x47e   : > { %v3872_v60 = vpop.f32.mrf.mxu1 }
 0x47f   : > { %4018 = vmatmul.bf16.gmra.mxu0 %v9352_v18  ;;  %v3821_v18 = vadd.f32 %v3820_v4, %v8833_v19 }
 0x480   : > { %v3962_v12 = vpop.f32.mrf.mxu3  ;;  %4116 = vmatmul.bf16.gmra.mxu2 %v8668_v43 }
 0x481   : > { %v8850_v47 = vadd.f32 %v3962_v12, %v3914_v41  ;;  %4067 = vmatmul.bf16.gmra.mxu1 %v9353_v1  ;;  %v3870_v42 = vadd.f32 %v3869_v13, %v3821_v18 }
 0x483   : > { %4309 = vst [vmem:[%s8844_s17 + $0x8] sm:$0xff] %v8850_v47  ;;  %v3921_v28 = vpop.f32.mrf.mxu2  ;;  %v3919_v61 = vadd.f32 %v3918_v53, %v3870_v42 }
 0x484   : > { %v3825_v59 = vpop.f32.mrf.mxu0 }
 0x485   : > { %4160 = vmatmul.bf16.gmra.mxu3 %v8773_v7  ;;  %v3824_v7 = vadd.f32 %v3823_v55, %v8833_v19 }
 0x486   : > { %v3874_v14 = vpop.f32.mrf.mxu1 }
 0x487   : > { %v3873_v48 = vadd.f32 %v3872_v60, %v3824_v7 }
 0x488   : > { %v3965_v49 = vpop.f32.mrf.mxu3 }
 0x489   : > { %v8858_v6 = vadd.f32 %v3965_v49, %v3917_v11  ;;  %v3922_v30 = vadd.f32 %v3921_v28, %v3873_v48 }
 0x48b   : > { %4310 = vst [vmem:[%s8844_s17 + $0x10] sm:$0xff] %v8858_v6  ;;  %v3923_v1 = vpop.f32.mrf.mxu2 }
 0x48c   : > { %v3828_v43 = vpop.f32.mrf.mxu0 }
 0x48e   : > { %v3877_v17 = vpop.f32.mrf.mxu1 }
 0x48f   : > { %4023 = vmatmul.bf16.gmra.mxu0 %v9354_v46  ;;  %v3826_v46 = vadd.f32 %v3825_v59, %v8833_v19 }
 0x490   : > { %v3967_v37 = vpop.f32.mrf.mxu3  ;;  %4121 = vmatmul.bf16.gmra.mxu2 %v8683_v24 }
 0x491   : > { %v8864_v56 = vadd.f32 %v3967_v37, %v3919_v61  ;;  %4072 = vmatmul.bf16.gmra.mxu1 %v9355_v32  ;;  %v3875_v29 = vadd.f32 %v3874_v14, %v3826_v46 }
 0x493   : > { %4311 = vst [vmem:[%s8844_s17 + $0x18] sm:$0xff] %v8864_v56  ;;  %v3926_v40 = vpop.f32.mrf.mxu2  ;;  %v3924_v25 = vadd.f32 %v3923_v1, %v3875_v29 }
 0x494   : > { %v3830_v36 = vpop.f32.mrf.mxu0 }
 0x495   : > { %4165 = vmatmul.bf16.gmra.mxu3 %v8781_v26  ;;  %v3829_v26 = vadd.f32 %v3828_v43, %v8833_v19 }
 0x496   : > { %v3879_v0 = vpop.f32.mrf.mxu1 }
 0x497   : > { %v3878_v33 = vadd.f32 %v3877_v17, %v3829_v26 }
 0x498   : > { %v3970_v57 = vpop.f32.mrf.mxu3 }
 0x499   : > { %v8872_v23 = vadd.f32 %v3970_v57, %v3922_v30  ;;  %v3927_v53 = vadd.f32 %v3926_v40, %v3878_v33 }
 0x49b   : > { %4312 = vst [vmem:[%s8844_s17 + $0x20] sm:$0xff] %v8872_v23  ;;  %v3928_v32 = vpop.f32.mrf.mxu2 }
 0x49c   : > { %v3833_v24 = vpop.f32.mrf.mxu0 }
 0x49e   : > { %v3882_v50 = vpop.f32.mrf.mxu1 }
 0x49f   : > { %4028 = vmatmul.bf16.gmra.mxu0 %v9356_v54  ;;  %v3831_v54 = vadd.f32 %v3830_v36, %v8833_v19 }
 0x4a0   : > { %v3972_v52 = vpop.f32.mrf.mxu3  ;;  %4126 = vmatmul.bf16.gmra.mxu2 %v8698_v5 }
 0x4a1   : > { %v8878_v4 = vadd.f32 %v3972_v52, %v3924_v25  ;;  %4077 = vmatmul.bf16.gmra.mxu1 %v9357_v38  ;;  %v3880_v60 = vadd.f32 %v3879_v0, %v3831_v54 }
 0x4a3   : > { %4313 = vst [vmem:[%s8844_s17 + $0x28] sm:$0xff] %v8878_v4  ;;  %v3931_v13 = vpop.f32.mrf.mxu2  ;;  %v3929_v12 = vadd.f32 %v3928_v32, %v3880_v60 }
 0x4a4   : > { %v3835_v15 = vpop.f32.mrf.mxu0 }
 0x4a5   : > { %4170 = vmatmul.bf16.gmra.mxu3 %v8789_v34  ;;  %v3834_v34 = vadd.f32 %v3833_v24, %v8833_v19 }
 0x4a6   : > { %v3884_v27 = vpop.f32.mrf.mxu1 }
 0x4a7   : > { %v3883_v59 = vadd.f32 %v3882_v50, %v3834_v34 }
 0x4a8   : > { %v3975_v16 = vpop.f32.mrf.mxu3 }
 0x4a9   : > { %v8886_v55 = vadd.f32 %v3975_v16, %v3927_v53  ;;  %v3932_v49 = vadd.f32 %v3931_v13, %v3883_v59 }
 0x4ab   : > { %4314 = vst [vmem:[%s8844_s17 + $0x30] sm:$0xff] %v8886_v55  ;;  %v3933_v38 = vpop.f32.mrf.mxu2 }
 0x4ac   : > { %v3838_v5 = vpop.f32.mrf.mxu0 }
 0x4ae   : > { %v3887_v41 = vpop.f32.mrf.mxu1 }
 0x4af   : > { %4033 = vmatmul.bf16.gmra.mxu0 %v9358_v10  ;;  %v3836_v10 = vadd.f32 %v3835_v15, %v8833_v19 }
 0x4b0   : > { %v3977_v31 = vpop.f32.mrf.mxu3  ;;  %4131 = vmatmul.bf16.gmra.mxu2 %v8715_v9 }
 0x4b1   : > { %v8892_v28 = vadd.f32 %v3977_v31, %v3929_v12  ;;  %4082 = vmatmul.bf16.gmra.mxu1 %v9359_v39  ;;  %v3885_v42 = vadd.f32 %v3884_v27, %v3836_v10 }
 0x4b3   : > { %4315 = vst [vmem:[%s8844_s17 + $0x38] sm:$0xff] %v8892_v28  ;;  %v3936_v20 = vpop.f32.mrf.mxu2  ;;  %v3934_v17 = vadd.f32 %v3933_v38, %v3885_v42 }
 0x4b4   : > { %v3840_v14 = vpop.f32.mrf.mxu0 }
 0x4b5   : > { %4175 = vmatmul.bf16.gmra.mxu3 %v8798_v35  ;;  %v3839_v35 = vadd.f32 %v3838_v5, %v8833_v19 }
 0x4b6   : > { %v3889_v11 = vpop.f32.mrf.mxu1 }
 0x4b7   : > { %v3888_v40 = vadd.f32 %v3887_v41, %v3839_v35 }
 0x4b8   : > { %v3980_v18 = vpop.f32.mrf.mxu3 }
 0x4b9   : > { %v8900_v1 = vadd.f32 %v3980_v18, %v3932_v49  ;;  %v3937_v0 = vadd.f32 %v3936_v20, %v3888_v40  ;;  %v8944_v18 = vperm.slane %v8830_v8, 1 }
 0x4bb   : > { %4316 = vst [vmem:[%s8844_s17 + $0x40] sm:$0xff] %v8900_v1  ;;  %v3938_v39 = vpop.f32.mrf.mxu2 }
 0x4bc   : > { %v3843_v9 = vpop.f32.mrf.mxu0 }
 0x4be   : > { %v3892_v43 = vpop.f32.mrf.mxu1 }
 0x4bf   : > { %4038 = vmatmul.bf16.gmra.mxu0 %v9360_v45  ;;  %v3841_v45 = vadd.f32 %v3840_v14, %v8833_v19 }
 0x4c0   : > { %v3982_v61 = vpop.f32.mrf.mxu3  ;;  %4136 = vmatmul.bf16.gmra.mxu2 %v8732_v51 }
 0x4c1   : > { %v8906_v37 = vadd.f32 %v3982_v61, %v3934_v17  ;;  %4087 = vmatmul.bf16.gmra.mxu1 %v9361_v3  ;;  %v3890_v46 = vadd.f32 %v3889_v11, %v3841_v45 }
 0x4c3   : > { %4317 = vst [vmem:[%s8844_s17 + $0x48] sm:$0xff] %v8906_v37  ;;  %v3941_v7 = vpop.f32.mrf.mxu2  ;;  %v3939_v29 = vadd.f32 %v3938_v39, %v3890_v46 }
 0x4c4   : > { %v3845_v48 = vpop.f32.mrf.mxu0 }
 0x4c5   : > { %4180 = vmatmul.bf16.gmra.mxu3 %v8807_v58  ;;  %v3844_v58 = vadd.f32 %v3843_v9, %v8833_v19 }
 0x4c6   : > { %v3894_v36 = vpop.f32.mrf.mxu1 }
 0x4c7   : > { %v3893_v52 = vadd.f32 %v3892_v43, %v3844_v58  ;;  %v4244_v58 = vld [vmem:[%s6662_s20] sm:$0xff] }
 0x4c8   : > { %v3985_v30 = vpop.f32.mrf.mxu3 }
 0x4c9   : > { %v8914_v57 = vadd.f32 %v3985_v30, %v3937_v0  ;;  %v3942_v33 = vadd.f32 %v3941_v7, %v3893_v52 }
 0x4cb   : > { %4318 = vst [vmem:[%s8844_s17 + $0x50] sm:$0xff] %v8914_v57  ;;  %v3943_v3 = vpop.f32.mrf.mxu2 }
 0x4cc   : > { %v3848_v51 = vpop.f32.mrf.mxu0 }
 0x4ce   : > { %v3897_v32 = vpop.f32.mrf.mxu1 }
 0x4cf   : > { %4043 = vmatmul.bf16.gmra.mxu0 %v9362_v21  ;;  %v3846_v21 = vadd.f32 %v3845_v48, %v8833_v19 }
 0x4d0   : > { %v3987_v24 = vpop.f32.mrf.mxu3  ;;  %4141 = vmatmul.bf16.gmra.mxu2 %v8749_v44 }
 0x4d1   : > { %v8920_v50 = vadd.f32 %v3987_v24, %v3939_v29  ;;  %4092 = vmatmul.bf16.gmra.mxu1 %v8422_v63  ;;  %v3895_v53 = vadd.f32 %v3894_v36, %v3846_v21 }
 0x4d3   : > { %4319 = vst [vmem:[%s8844_s17 + $0x58] sm:$0xff] %v8920_v50  ;;  %v3946_v25 = vpop.f32.mrf.mxu2  ;;  %v3944_v54 = vadd.f32 %v3943_v3, %v3895_v53 }
 0x4d4   : > { %v3850_v26 = vpop.f32.mrf.mxu0 }
 0x4d5   : > { %4185 = vmatmul.bf16.gmra.mxu3 %v8816_v62  ;;  %v3849_v62 = vadd.f32 %v3848_v51, %v8833_v19  ;;  %v3851_v59 = vadd.f32 %v3850_v26, %v8833_v19 }
 0x4d6   : > { %v3899_v13 = vpop.f32.mrf.mxu1 }
 0x4d7   : > { %v3898_v41 = vadd.f32 %v3897_v32, %v3849_v62  ;;  %v3900_v49 = vadd.f32 %v3899_v13, %v3851_v59 }
 0x4d8   : > { %v3990_v15 = vpop.f32.mrf.mxu3 }
 0x4d9   : > { %v8928_v27 = vadd.f32 %v3990_v15, %v3942_v33  ;;  %v3947_v34 = vadd.f32 %v3946_v25, %v3898_v41 }
 0x4db   : > { %4320 = vst [vmem:[%s8844_s17 + $0x60] sm:$0xff] %v8928_v27  ;;  %v3948_v63 = vpop.f32.mrf.mxu2 }
 0x4dc   : > { %v4009_v44 = vpop.f32.mrf.mxu0 }
 0x4dd   : > { %v4010_v9 = vadd.f32 %v4009_v44, %v8944_v18 }
 0x4de   : > { %v4058_v16 = vpop.f32.mrf.mxu1 }
 0x4df   : > { %v4059_v17 = vadd.f32 %v4058_v16, %v4010_v9 }
 0x4e0   : > { %v3992_v38 = vpop.f32.mrf.mxu3 }
 0x4e1   : > { %v8933_v60 = vadd.f32 %v3992_v38, %v3944_v54 }
 0x4e3   : > { %4321 = vst [vmem:[%s8844_s17 + $0x68] sm:$0xff] %v8933_v60  ;;  %v4107_v5 = vpop.f32.mrf.mxu2 }
 0x4e4   : > { %v4011_v12 = vpop.f32.mrf.mxu0  ;;  %v4108_v7 = vadd.f32 %v4107_v5, %v4059_v17 }
 0x4e5   : > { %4190 = vmatmul.bf16.gmra.mxu3 %v8824_v22  ;;  %v3949_v22 = vadd.f32 %v3948_v63, %v3900_v49  ;;  %v4012_v40 = vadd.f32 %v4011_v12, %v8944_v18 }
 0x4e6   : > { %v4060_v31 = vpop.f32.mrf.mxu1 }
 0x4e7   : > { %v4061_v30 = vadd.f32 %v4060_v31, %v4012_v40 }
 0x4e8   : > { %v3995_v20 = vpop.f32.mrf.mxu3 }
 0x4e9   : > { %v8939_v14 = vadd.f32 %v3995_v20, %v3947_v34 }
 0x4eb   : > { %4322 = vst [vmem:[%s8844_s17 + $0x70] sm:$0xff] %v8939_v14  ;;  %v4109_v11 = vpop.f32.mrf.mxu2 }
 0x4ec   : > { %v4014_v10 = vpop.f32.mrf.mxu0  ;;  %v4110_v51 = vadd.f32 %v4109_v11, %v4061_v30 }
 0x4ed   : > { %v4015_v29 = vadd.f32 %v4014_v10, %v8944_v18 }
 0x4ee   : > { %v4063_v39 = vpop.f32.mrf.mxu1 }
 0x4ef   : > { %v4064_v13 = vadd.f32 %v4063_v39, %v4015_v29 }
 0x4f0   : > { %v3997_v42 = vpop.f32.mrf.mxu3 }
 0x4f1   : > { %v8947_v43 = vadd.f32 %v3997_v42, %v3949_v22 }
 0x4f3   : > { %4323 = vst [vmem:[%s8844_s17 + $0x78] sm:$0xff] %v8947_v43  ;;  %v4112_v19 = vpop.f32.mrf.mxu2  ;;  %s6388_s17 = scalar_lea.hbm %s9135_s7, 256 }
 0x4f4   : > { %v4016_v61 = vpop.f32.mrf.mxu0  ;;  %p6390_p2 = scmp.lt.s32.totalorder %s6388_s17, %s6384_s26 }
 0x4f6   : > { %v8951_v35 = vpop.f32.mrf.mxu1  ;;  %p6391_p10 = por %p6390_p2, %p6389_p9 }
 0x4f8   : > { %v4156_v8 = vpop.f32.mrf.mxu3  ;;  %p6392_p12 = pnand %p6391_p10, %p6387_p11 }
 0x4f9   : > { %v4157_v48 = vadd.f32 %v4156_v8, %v4108_v7 }
 0x4fb   : > { %v4196_v36 = vmul.f32 0.5, %v4157_v48  ;;  %4324 = vst [vmem:[%s8955_s16] sm:$0xff] %v4157_v48  ;;  %v4114_v0 = vpop.f32.mrf.mxu2 }
 0x4fc   : > { %v4019_v3 = vpop.f32.mrf.mxu0 }
 0x4fd   : > { %v4212_v45 = vmul.f32 1.442695, %v4196_v36 }
 0x4fe   : > { %v8958_v46 = vpop.f32.mrf.mxu1 }
 0x4ff   : > { %6274 = vpow2.f32 %v4212_v45 }
 0x500   : > { %v4158_v32 = vpop.f32.mrf.mxu3 }
 0x501   : > { %v4159_v24 = vadd.f32 %v4158_v32, %v4110_v51 }
 0x503   : > { %v4197_v25 = vmul.f32 0.5, %v4159_v24  ;;  %4325 = vst [vmem:[%s8955_s16 + $0x8] sm:$0xff] %v4159_v24  ;;  %v4117_v52 = vpop.f32.mrf.mxu2 }
 0x504   : > { %v4021_v15 = vpop.f32.mrf.mxu0 }
 0x505   : > { %v6275_v26 = vpop.eup %6274  ;;  %v4214_v33 = vmul.f32 1.442695, %v4197_v25 }
 0x506   : > { %v4260_v21 = vmul.f32 %v6275_v26, %v4244_v58 }
 0x507   : > { %6395 = shalt.err (!%p6392_p12)
}
 0x508   : > { %s6503_s22 = smov 128   ;;  %s6504_s18 = smov 8   ;;  %v4113_v63 = vadd.f32 %v4112_v19, %v4064_v13  ;;  %6276 = vpow2.f32 %v4214_v33  ;;  %v4070_v53 = vpop.f32.mrf.mxu1  ;;  %v4276_v44 = vadd.f32 %v4260_v21, %v8841_v2  ;;  %v4161_v16 = vpop.f32.mrf.mxu3  ;;  %v4017_v54 = vadd.f32 %v4016_v61, %v8944_v18  ;;  %v4245_v62 = vld [vmem:[%s6662_s20 + $0x8] sm:$0xff]  ;;  %v4246_v42 = vld [vmem:[%s6662_s20 + $0x10] sm:$0xff]  ;;  %v4247_v30 = vld [vmem:[%s6662_s20 + $0x18] sm:$0xff] }
 0x509   : > { %6210 = dma.vmem_to_hbm [thread:$0]  (%p6621_p3), %s4381_s5, 2048, %s4383_s10, %s8972_s21, %s6503_s22, %s6503_s22, %s6504_s18   ;;  %v4020_v10 = vadd.f32 %v4019_v3, %v8944_v18  ;;  %v4022_v36 = vadd.f32 %v4021_v15, %v8944_v18 }
 0x50a   : > { %v4162_v38 = vadd.f32 %v4161_v16, %v4113_v63  ;;  %s8991_s13 = scalar_lea.vmem [#allocation7], %s6658_s24  ;;  %v4066_v31 = vadd.f32 %v8951_v35, %v4017_v54  ;;  %v4248_v33 = vld [vmem:[%s6662_s20 + $0x20] sm:$0xff]  ;;  %s4396_s10 = scalar_lea.hbm %s9136_s8, %s8961_s15 }
 0x50b   : > { %4292 = vst [vmem:[%s8991_s13] sm:$0xff] %v4276_v44  ;;  %v4119_v41 = vpop.f32.mrf.mxu2  ;;  %v4069_v61 = vadd.f32 %v8958_v46, %v4020_v10  ;;  %v4071_v32 = vadd.f32 %v4070_v53, %v4022_v36  ;;  %s9062_s26 = sshll.u32 %s4396_s10, 4  ;;  %s4397_s9 = sshll.u32 %s8955_s16, 4  ;;  %s4400_s26 = int_to_ptr.hbm [resolvable:$true] %s9062_s26  ;;  %s4398_s9 = int_to_ptr.vmem [resolvable:$true] %s4397_s9 }
 0x50c   : > { %v4198_v5 = vmul.f32 0.5, %v4162_v38  ;;  %4326 = vst [vmem:[%s8955_s16 + $0x10] sm:$0xff] %v4162_v38  ;;  %v4024_v2 = vpop.f32.mrf.mxu0  ;;  %v4115_v59 = vadd.f32 %v4114_v0, %v4066_v31  ;;  %v4249_v31 = vld [vmem:[%s6662_s20 + $0x28] sm:$0xff]  ;;  %s6410_s14 = sshra.s32 %s4400_s26, 4  ;;  %s6416_s24 = scalar_lea.hbm %s9136_s8, 256  ;;  %s6411_s14 = int_to_ptr.hbm [resolvable:$true] %s6410_s14 }
 0x50d   : > { %v4120_v58 = vadd.f32 %v4119_v41, %v4071_v32  ;;  %v4025_v26 = vadd.f32 %v4024_v2, %v8944_v18  ;;  %s6412_s17 = scalar_lea.hbm %s6411_s14, 128  ;;  %p6417_p7 = scmp.lt.s32.totalorder %s6411_s14, %s9136_s8 }
 0x50e   : > { %v6277_v12 = vpop.eup %6276  ;;  %v4216_v34 = vmul.f32 1.442695, %v4198_v5  ;;  %p6413_p13 = scmp.ne.s32.totalorder %s6411_s14, %s6412_s17  ;;  %p6418_p1 = scmp.lt.s32.totalorder %s6416_s24, %s6412_s17 }
 0x50f   : > { %v4261_v20 = vmul.f32 %v6277_v12, %v4245_v62 }
 0x510   : > { %6278 = vpow2.f32 %v4216_v34  ;;  %v4163_v49 = vpop.f32.mrf.mxu3  ;;  %v4073_v39 = vpop.f32.mrf.mxu1  ;;  %p6414_p0 = pnand %p6413_p13, %p6621_p3  ;;  %p6419_p4 = por %p6418_p1, %p6417_p7 }
 0x511   : > { %v4277_v11 = vadd.f32 %v4261_v20, %v8850_v47  ;;  %v4164_v22 = vadd.f32 %v4163_v49, %v4115_v59  ;;  %v4118_v47 = vadd.f32 %v4117_v52, %v4069_v61  ;;  %v4074_v63 = vadd.f32 %v4073_v39, %v4025_v26 }
 0x512   : > { %p6415_p5 = pneg %p6414_p0 }
 0x513   : > { %4293 = vst [vmem:[%s8991_s13 + $0x8] sm:$0xff] %v4277_v11  ;;  %v4199_v9 = vmul.f32 0.5, %v4164_v22  ;;  %v4122_v19 = vpop.f32.mrf.mxu2 }
 0x514   : > { %4327 = vst [vmem:[%s8955_s16 + $0x18] sm:$0xff] %v4164_v22  ;;  %v4026_v8 = vpop.f32.mrf.mxu0  ;;  %v4123_v38 = vadd.f32 %v4122_v19, %v4074_v63  ;;  %v4250_v19 = vld [vmem:[%s6662_s20 + $0x30] sm:$0xff]  ;;  %p6420_p8 = pnand %p6419_p4, %p6415_p5 }
 0x515   : > { %v4218_v35 = vmul.f32 1.442695, %v4199_v9  ;;  %v4027_v5 = vadd.f32 %v4026_v8, %v8944_v18 }
 0x516   : > { %v6279_v17 = vpop.eup %6278 }
 0x517   : > { %v4262_v7 = vmul.f32 %v6279_v17, %v4246_v42  ;;  %6280 = vpow2.f32 %v4218_v35 }
 0x518   : > { %v4166_v48 = vpop.f32.mrf.mxu3  ;;  %v4075_v45 = vpop.f32.mrf.mxu1 }
 0x519   : > { %v4278_v40 = vadd.f32 %v4262_v7, %v8858_v6  ;;  %v4167_v0 = vadd.f32 %v4166_v48, %v4118_v47  ;;  %v4076_v20 = vadd.f32 %v4075_v45, %v4027_v5 }
 0x51b   : > { %4294 = vst [vmem:[%s8991_s13 + $0x10] sm:$0xff] %v4278_v40  ;;  %v4200_v3 = vmul.f32 0.5, %v4167_v0  ;;  %v4124_v46 = vpop.f32.mrf.mxu2 }
 0x51c   : > { %4328 = vst [vmem:[%s8955_s16 + $0x20] sm:$0xff] %v4167_v0  ;;  %v4029_v25 = vpop.f32.mrf.mxu0  ;;  %v4125_v49 = vadd.f32 %v4124_v46, %v4076_v20 }
 0x51d   : > { %v6281_v51 = vpop.eup %6280  ;;  %v4220_v29 = vmul.f32 1.442695, %v4200_v3  ;;  %v4030_v42 = vadd.f32 %v4029_v25, %v8944_v18  ;;  %v4251_v3 = vld [vmem:[%s6662_s20 + $0x38] sm:$0xff] }
 0x51e   : > { %v4263_v24 = vmul.f32 %v6281_v51, %v4247_v30 }
 0x51f   : > { %6282 = vpow2.f32 %v4220_v29 }
 0x520   : > { %v4279_v6 = vadd.f32 %v4263_v24, %v8864_v56  ;;  %v4168_v52 = vpop.f32.mrf.mxu3  ;;  %v4078_v53 = vpop.f32.mrf.mxu1 }
 0x521   : > { %v4169_v13 = vadd.f32 %v4168_v52, %v4120_v58  ;;  %v4079_v7 = vadd.f32 %v4078_v53, %v4030_v42  ;;  %v4254_v42 = vld [vmem:[%s6662_s20 + $0x50] sm:$0xff] }
 0x522   : > { %4295 = vst [vmem:[%s8991_s13 + $0x18] sm:$0xff] %v4279_v6 }
 0x523   : > { %v4201_v15 = vmul.f32 0.5, %v4169_v13  ;;  %4329 = vst [vmem:[%s8955_s16 + $0x28] sm:$0xff] %v4169_v13  ;;  %v4127_v54 = vpop.f32.mrf.mxu2 }
 0x524   : > { %v4031_v12 = vpop.f32.mrf.mxu0  ;;  %v4128_v40 = vadd.f32 %v4127_v54, %v4079_v7 }
 0x525   : > { %v6283_v21 = vpop.eup %6282  ;;  %v4222_v44 = vmul.f32 1.442695, %v4201_v15  ;;  %v4032_v36 = vadd.f32 %v4031_v12, %v8944_v18 }
 0x526   : > { %v4264_v16 = vmul.f32 %v6283_v21, %v4248_v33  ;;  %v4252_v33 = vld [vmem:[%s6662_s20 + $0x40] sm:$0xff] }
 0x527   : > { %6284 = vpow2.f32 %v4222_v44 }
 0x528   : > { %v4280_v56 = vadd.f32 %v4264_v16, %v8872_v23  ;;  %v4171_v62 = vpop.f32.mrf.mxu3  ;;  %v4080_v10 = vpop.f32.mrf.mxu1 }
 0x529   : > { %v4172_v41 = vadd.f32 %v4171_v62, %v4123_v38  ;;  %v4081_v32 = vadd.f32 %v4080_v10, %v4032_v36  ;;  %v4255_v36 = vld [vmem:[%s6662_s20 + $0x58] sm:$0xff] }
 0x52a   : > { %4296 = vst [vmem:[%s8991_s13 + $0x20] sm:$0xff] %v4280_v56 }
 0x52b   : > { %v4202_v34 = vmul.f32 0.5, %v4172_v41  ;;  %4330 = vst [vmem:[%s8955_s16 + $0x30] sm:$0xff] %v4172_v41  ;;  %v4129_v39 = vpop.f32.mrf.mxu2  ;;  %v4253_v41 = vld [vmem:[%s6662_s20 + $0x48] sm:$0xff] }
 0x52c   : > { %v4034_v61 = vpop.f32.mrf.mxu0  ;;  %v4130_v6 = vadd.f32 %v4129_v39, %v4081_v32 }
 0x52d   : > { %v6285_v2 = vpop.eup %6284  ;;  %v4224_v59 = vmul.f32 1.442695, %v4202_v34  ;;  %v4035_v52 = vadd.f32 %v4034_v61, %v8944_v18 }
 0x52e   : > { %v4265_v11 = vmul.f32 %v6285_v2, %v4249_v31 }
 0x52f   : > { %6286 = vpow2.f32 %v4224_v59 }
 0x530   : > { %v4281_v23 = vadd.f32 %v4265_v11, %v8878_v4  ;;  %v4173_v22 = vpop.f32.mrf.mxu3  ;;  %v4083_v0 = vpop.f32.mrf.mxu1 }
 0x531   : > { %v4174_v9 = vadd.f32 %v4173_v22, %v4125_v49  ;;  %v4084_v53 = vadd.f32 %v4083_v0, %v4035_v52 }
 0x532   : > { %4297 = vst [vmem:[%s8991_s13 + $0x28] sm:$0xff] %v4281_v23 }
 0x533   : > { %v4203_v17 = vmul.f32 0.5, %v4174_v9  ;;  %4331 = vst [vmem:[%s8955_s16 + $0x38] sm:$0xff] %v4174_v9  ;;  %v4132_v45 = vpop.f32.mrf.mxu2 }
 0x534   : > { %v4036_v58 = vpop.f32.mrf.mxu0  ;;  %v4133_v54 = vadd.f32 %v4132_v45, %v4084_v53 }
 0x535   : > { %v6287_v35 = vpop.eup %6286  ;;  %v4226_v8 = vmul.f32 1.442695, %v4203_v17  ;;  %v4037_v62 = vadd.f32 %v4036_v58, %v8944_v18 }
 0x536   : > { %v4266_v47 = vmul.f32 %v6287_v35, %v4250_v19 }
 0x537   : > { %6288 = vpow2.f32 %v4226_v8 }
 0x538   : > { %v4282_v4 = vadd.f32 %v4266_v47, %v8886_v55  ;;  %v4176_v48 = vpop.f32.mrf.mxu3  ;;  %v4085_v13 = vpop.f32.mrf.mxu1 }
 0x539   : > { %v4177_v30 = vadd.f32 %v4176_v48, %v4128_v40  ;;  %v4086_v34 = vadd.f32 %v4085_v13, %v4037_v62 }
 0x53a   : > { %4298 = vst [vmem:[%s8991_s13 + $0x30] sm:$0xff] %v4282_v4 }
 0x53b   : > { %v4204_v46 = vmul.f32 0.5, %v4177_v30  ;;  %4332 = vst [vmem:[%s8955_s16 + $0x40] sm:$0xff] %v4177_v30  ;;  %v4134_v21 = vpop.f32.mrf.mxu2 }
 0x53c   : > { %v4039_v38 = vpop.f32.mrf.mxu0  ;;  %v4135_v49 = vadd.f32 %v4134_v21, %v4086_v34 }
 0x53d   : > { %v6289_v51 = vpop.eup %6288  ;;  %v4228_v29 = vmul.f32 1.442695, %v4204_v46  ;;  %v4040_v23 = vadd.f32 %v4039_v38, %v8944_v18 }
 0x53e   : > { %v4267_v24 = vmul.f32 %v6289_v51, %v4251_v3 }
 0x53f   : > { %6290 = vpow2.f32 %v4228_v29 }
 0x540   : > { %v4283_v55 = vadd.f32 %v4267_v24, %v8892_v28  ;;  %v4178_v25 = vpop.f32.mrf.mxu3  ;;  %v4088_v2 = vpop.f32.mrf.mxu1 }
 0x541   : > { %v4179_v26 = vadd.f32 %v4178_v25, %v4130_v6  ;;  %v4089_v17 = vadd.f32 %v4088_v2, %v4040_v23  ;;  %v4256_v25 = vld [vmem:[%s6662_s20 + $0x60] sm:$0xff]  ;;  %v4258_v2 = vld [vmem:[%s6662_s20 + $0x70] sm:$0xff] }
 0x542   : > { %4299 = vst [vmem:[%s8991_s13 + $0x38] sm:$0xff] %v4283_v55 }
 0x543   : > { %v4205_v15 = vmul.f32 0.5, %v4179_v26  ;;  %4333 = vst [vmem:[%s8955_s16 + $0x48] sm:$0xff] %v4179_v26  ;;  %v4137_v11 = vpop.f32.mrf.mxu2 }
 0x544   : > { %v4041_v22 = vpop.f32.mrf.mxu0  ;;  %v4138_v7 = vadd.f32 %v4137_v11, %v4089_v17 }
 0x545   : > { %v6291_v63 = vpop.eup %6290  ;;  %v4230_v44 = vmul.f32 1.442695, %v4205_v15  ;;  %v4042_v4 = vadd.f32 %v4041_v22, %v8944_v18 }
 0x546   : > { %v4268_v16 = vmul.f32 %v6291_v63, %v4252_v33 }
 0x547   : > { %6292 = vpow2.f32 %v4230_v44 }
 0x548   : > { %v4284_v28 = vadd.f32 %v4268_v16, %v8900_v1  ;;  %v4181_v56 = vpop.f32.mrf.mxu3  ;;  %v4090_v8 = vpop.f32.mrf.mxu1 }
 0x549   : > { %v4182_v5 = vadd.f32 %v4181_v56, %v4133_v54  ;;  %v4091_v3 = vadd.f32 %v4090_v8, %v4042_v4  ;;  %v4257_v54 = vld [vmem:[%s6662_s20 + $0x68] sm:$0xff] }
 0x54a   : > { %4300 = vst [vmem:[%s8991_s13 + $0x40] sm:$0xff] %v4284_v28 }
 0x54b   : > { %v4206_v12 = vmul.f32 0.5, %v4182_v5  ;;  %4334 = vst [vmem:[%s8955_s16 + $0x50] sm:$0xff] %v4182_v5  ;;  %v4139_v47 = vpop.f32.mrf.mxu2 }
 0x54c   : > { %v4044_v30 = vpop.f32.mrf.mxu0  ;;  %v4140_v32 = vadd.f32 %v4139_v47, %v4091_v3 }
 0x54d   : > { %v6293_v31 = vpop.eup %6292  ;;  %v4232_v20 = vmul.f32 1.442695, %v4206_v12  ;;  %v4045_v24 = vadd.f32 %v4044_v30, %v8944_v18 }
 0x54e   : > { %v4269_v59 = vmul.f32 %v6293_v31, %v4253_v41 }
 0x54f   : > { %6294 = vpow2.f32 %v4232_v20 }
 0x550   : > { %v4285_v1 = vadd.f32 %v4269_v59, %v8906_v37  ;;  %v4183_v10 = vpop.f32.mrf.mxu3  ;;  %v4093_v6 = vpop.f32.mrf.mxu1 }
 0x551   : > { %v4184_v39 = vadd.f32 %v4183_v10, %v4135_v49  ;;  %v4094_v13 = vadd.f32 %v4093_v6, %v4045_v24 }
 0x552   : > { %4301 = vst [vmem:[%s8991_s13 + $0x48] sm:$0xff] %v4285_v1 }
 0x553   : > { %v4207_v9 = vmul.f32 0.5, %v4184_v39  ;;  %4335 = vst [vmem:[%s8955_s16 + $0x58] sm:$0xff] %v4184_v39  ;;  %v4142_v55 = vpop.f32.mrf.mxu2 }
 0x554   : > { %v4046_v15 = vpop.f32.mrf.mxu0 }
 0x555   : > { %v6295_v19 = vpop.eup %6294  ;;  %v4234_v61 = vmul.f32 1.442695, %v4207_v9  ;;  %v4047_v44 = vadd.f32 %v4046_v15, %v8944_v18 }
 0x556   : > { %v4270_v35 = vmul.f32 %v6295_v19, %v4254_v42 }
 0x557   : > { %6296 = vpow2.f32 %v4234_v61 }
 0x558   : > { %v4286_v37 = vadd.f32 %v4270_v35, %v8914_v57  ;;  %v4186_v40 = vpop.f32.mrf.mxu3  ;;  %v4095_v38 = vpop.f32.mrf.mxu1 }
 0x559   : > { %v4187_v48 = vadd.f32 %v4186_v40, %v4138_v7 }
 0x55a   : > { %4302 = vst [vmem:[%s8991_s13 + $0x50] sm:$0xff] %v4286_v37 }
 0x55b   : > { %v4208_v0 = vmul.f32 0.5, %v4187_v48  ;;  %4336 = vst [vmem:[%s8955_s16 + $0x60] sm:$0xff] %v4187_v48  ;;  %v4144_v56 = vpop.f32.mrf.mxu2 }
 0x55d   : > { %v6297_v45 = vpop.eup %6296  ;;  %v4236_v46 = vmul.f32 1.442695, %v4208_v0 }
 0x55e   : > { %v4271_v51 = vmul.f32 %v6297_v45, %v4255_v36 }
 0x55f   : > { %6298 = vpow2.f32 %v4236_v46 }
 0x560   : > { %v4287_v57 = vadd.f32 %v4271_v51, %v8920_v50  ;;  %v4188_v29 = vpop.f32.mrf.mxu3  ;;  %v4143_v50 = vadd.f32 %v4142_v55, %v4094_v13 }
 0x561   : > { %v4189_v58 = vadd.f32 %v4188_v29, %v4140_v32 }
 0x562   : > { %4303 = vst [vmem:[%s8991_s13 + $0x58] sm:$0xff] %v4287_v57 }
 0x563   : > { %v4209_v52 = vmul.f32 0.5, %v4189_v58  ;;  %4337 = vst [vmem:[%s8955_s16 + $0x68] sm:$0xff] %v4189_v58 }
 0x565   : > { %v6299_v26 = vpop.eup %6298  ;;  %v4238_v33 = vmul.f32 1.442695, %v4209_v52 }
 0x566   : > { %v4272_v21 = vmul.f32 %v6299_v26, %v4256_v25 }
 0x567   : > { %6300 = vpow2.f32 %v4238_v33 }
 0x568   : > { %v4288_v63 = vadd.f32 %v4272_v21, %v8928_v27  ;;  %v4191_v53 = vpop.f32.mrf.mxu3  ;;  %v4096_v27 = vadd.f32 %v4095_v38, %v4047_v44 }
 0x569   : > { %v4192_v16 = vadd.f32 %v4191_v53, %v4143_v50 }
 0x56a   : > { %4304 = vst [vmem:[%s8991_s13 + $0x60] sm:$0xff] %v4288_v63  ;;  %v4145_v18 = vadd.f32 %v4144_v56, %v4096_v27 }
 0x56b   : > { %v4210_v28 = vmul.f32 0.5, %v4192_v16  ;;  %4338 = vst [vmem:[%s8955_s16 + $0x70] sm:$0xff] %v4192_v16 }
 0x56d   : > { %v6301_v62 = vpop.eup %6300  ;;  %v4240_v5 = vmul.f32 1.442695, %v4210_v28 }
 0x56e   : > { %v4273_v41 = vmul.f32 %v6301_v62, %v4257_v54 }
 0x56f   : > { %6302 = vpow2.f32 %v4240_v5 }
 0x570   : > { %v4289_v12 = vadd.f32 %v4273_v41, %v8933_v60  ;;  %v4193_v31 = vpop.f32.mrf.mxu3 }
 0x571   : > { %v4194_v34 = vadd.f32 %v4193_v31, %v4145_v18 }
 0x572   : > { %4305 = vst [vmem:[%s8991_s13 + $0x68] sm:$0xff] %v4289_v12 }
 0x573   : > { %v4211_v20 = vmul.f32 0.5, %v4194_v34  ;;  %4339 = vst [vmem:[%s8955_s16 + $0x78] sm:$0xff] %v4194_v34 }
 0x574   : > { %6423 = shalt.err (!%p6420_p8)
}
 0x575   : > { %6211 = dma.vmem_to_hbm [thread:$0]  (%p6621_p3), %s4398_s9, 2048, %s4400_s26, %s8972_s21, %s6503_s22, %s6503_s22, %s6504_s18   ;;  %v6303_v60 = vpop.eup %6302  ;;  %v4242_v59 = vmul.f32 1.442695, %v4211_v20 }
 0x576   : > { %v4274_v11 = vmul.f32 %v6303_v60, %v4258_v2  ;;  %s4362_s17 = scalar_lea.hbm %s9134_s6, %s8961_s15  ;;  %v4259_v1 = vld [vmem:[%s6662_s20 + $0x78] sm:$0xff]  ;;  %s4363_s11 = sshll.u32 %s8991_s13, 4  ;;  %s4364_s11 = int_to_ptr.vmem [resolvable:$true] %s4363_s11 }
 0x577   : > { %6304 = vpow2.f32 %v4242_v59  ;;  %s4365_s23 = sshll.u32 %s4362_s17, 4  ;;  %s4341_s21 = scalar_lea.sflag [#allocation4], %s6655_s3  ;;  %s4366_s23 = int_to_ptr.hbm [resolvable:$true] %s4365_s23 }
 0x578   : > { %v4290_v49 = vadd.f32 %v4274_v11, %v8939_v14  ;;  %s6438_s26 = sshra.s32 %s4366_s23, 4  ;;  %s6444_s20 = scalar_lea.hbm %s9134_s6, 256  ;;  %s6439_s26 = int_to_ptr.hbm [resolvable:$true] %s6438_s26 }
 0x579   : > { %s6440_s9 = scalar_lea.hbm %s6439_s26, 128  ;;  %p6445_p10 = scmp.lt.s32.totalorder %s6439_s26, %s9134_s6 }
 0x57a   : > { %4306 = vst [vmem:[%s8991_s13 + $0x70] sm:$0xff] %v4290_v49  ;;  %p6441_p11 = scmp.ne.s32.totalorder %s6439_s26, %s6440_s9  ;;  %p6446_p12 = scmp.lt.s32.totalorder %s6444_s20, %s6440_s9 }
 0x57c   : > { %p6442_p9 = pnand %p6441_p11, %p6621_p3  ;;  %p6447_p13 = por %p6446_p12, %p6445_p10 }
 0x57d   : > { %v6305_v10 = vpop.eup %6304 }
 0x57e   : > { %v4275_v23 = vmul.f32 %v6305_v10, %v4259_v1  ;;  %p6443_p2 = pneg %p6442_p9 }
 0x580   : > { %v4291_v39 = vadd.f32 %v4275_v23, %v8947_v43  ;;  %p6448_p0 = pnand %p6447_p13, %p6443_p2 }
 0x582   : > { %4307 = vst [vmem:[%s8991_s13 + $0x78] sm:$0xff] %v4291_v39 }
 0x583   : > { %6451 = shalt.err (!%p6448_p0)
}
 0x584   : > { %6209 = dma.vmem_to_hbm [thread:$0]  (%p6621_p3), %s4364_s11, 2048, %s4366_s23, %s4341_s21, %s6503_s22, %s6503_s22, %s6504_s18  }
 0x585 PF: > { %s4414_s3 = sand.u32 1, %s6486_s27   ;;  %p9363_p5 = scmp.ge.s32.totalorder %s6498_s30, 2 }
 0x586   : > { %s4415_s13 = scalar_lea.sflag [#allocation4], %s4414_s3 }
 0x587   : > { %p6224_p7 = pnand %p9363_p5, %p6587_p6 }
 0x589   : > { %p6225_p1 = pneg %p6224_p7 }
 0x58b   : > { %6477 = dma.done.wait (%p6225_p1), %s4415_s13, 2048  }
 0x58c   : > { %6479 = vsyncadd (%p6225_p1), %s4415_s13, 4294965248  ;;  %s9364_s16 = sadd.s32 4294967294, %s6498_s30  }
 0x58d   : > { %s4424_s14 = sand.u32 1, %s9364_s16  }
 0x58e   : > { %s4425_s25 = scalar_lea.sflag [#allocation9], %s4424_s14 }
 0x58f   : > { %6481 = dma.done.wait (%p6225_p1), %s4425_s25, 4096  }
 0x590   : > { %6483 = vsyncadd (%p6225_p1), %s4425_s25, 4294963200  ;;  %s9365_s22 = sld [smem:[#allocation15_spill]]  ;;  %p26_p3 = scmp.ge.s32.totalorder %s6605_s19, 4  }
 0x591   : > { %s9366_s27 = smov %s6490_s28  ;;  %s9367_s28 = smov %s6494_s29 }
 0x592   : > { %s9369_s30 = smov %s6605_s19  ;;  %28 = sbr.rel (!%p26_p3) target bundleno = 11 (0xb), region = 129 }
 0x596   : > { %s9368_s29 = smov %s9365_s22 }
 0x597   :  { %4441 = vsyncpa [#allocation3], 1 }
 0x598   :  { %4443 = vsyncpa [#allocation3 + $0x1], 1 }
 0x599   :  { %4444 = vsyncpa [#allocation6], 1 }
 0x59a   :  { %4446 = vsyncpa [#allocation6 + $0x1], 1 }
 0x59b   :  { %4447 = vsyncpa [#allocation4], 1 }
 0x59c   :  { %4449 = vsyncpa [#allocation4 + $0x1], 1 }
 0x59d   :  { %4450 = vsyncpa [#allocation9], 1 }
 0x59e   :  { %4452 = vsyncpa [#allocation9 + $0x1], 1 }

</bundles_post_ra>
